<compile_context>
chip_gen: v5e
topology: v5e:2x2
jax: 0.10.0
libtpu: 0.0.40
codegen_flags: <defaults>
</compile_context>

<pallas_src>
import functools

import jax
import jax.numpy as jnp
from jax.experimental import pallas as pl
from jax.experimental.pallas import tpu as pltpu


# ----------------------------------------------------------------------------
# Pass 1: conv3x3 (im2col matmul) + per-image per-channel sum / sumsq partials.
# ----------------------------------------------------------------------------
def _conv_stats_kernel(x_ref, w_ref, y_ref, sum_ref, sq_ref, col_ref, *,
                       row_chunk, c_pad):
    # x_ref:   (1, H+2, W+2, C)      zero-padded NHWC input, one image per grid step
    # w_ref:   (9*c_pad, C)          im2col weight, tap-major, zero rows for ci >= C
    # y_ref:   (1, H*W, C)           conv output (pre-BN)
    # sum_ref: (1, 1, C)             per-image per-channel sum of conv output
    # sq_ref:  (1, 1, C)             per-image per-channel sum of squares
    # col_ref: (row_chunk*W, 9*c_pad) im2col scratch, reused across row chunks
    _, hp, wp, c = x_ref.shape
    h, w = hp - 2, wp - 2
    th = row_chunk
    n_chunks = h // th

    if c_pad != c:
        # Padded tap columns are never written; zero them once so that
        # (garbage * zero-weight-row) cannot produce NaNs.
        col_ref[...] = jnp.zeros(col_ref.shape, col_ref.dtype)

    s_sum = jnp.zeros((1, c), jnp.float32)
    s_sq = jnp.zeros((1, c), jnp.float32)

    for chunk in range(n_chunks):            # static unroll; scratch ref reused
        r0 = chunk * th
        # Build im2col for output rows [r0, r0+th): one write per tap into an
        # aligned, lane-tile-offset column block of the scratch.
        for k in range(9):
            dy, dx = k // 3, k % 3
            patch = x_ref[0, r0 + dy:r0 + dy + th, dx:dx + w, :]
            col_ref[:, k * c_pad:k * c_pad + c] = (
                patch.reshape(th * w, c).astype(jnp.float32))
        # Single MXU matmul with contraction K = 9*c_pad (>= 9*C).
        acc = jnp.dot(col_ref[...], w_ref[...],
                      preferred_element_type=jnp.float32)      # (th*w, C)
        # BN partial statistics (f32 sum / sum-of-squares).
        s_sum = s_sum + jnp.sum(acc, axis=0, keepdims=True)
        s_sq = s_sq + jnp.sum(acc * acc, axis=0, keepdims=True)
        # Store this chunk of the conv output.
        y_ref[0, r0 * w:(r0 + th) * w, :] = acc

    sum_ref[...] = s_sum.reshape(1, 1, c)
    sq_ref[...] = s_sq.reshape(1, 1, c)


# ----------------------------------------------------------------------------
# Pass 2: apply folded BN affine (y * scale + shift), fully lane-dense layout.
# ----------------------------------------------------------------------------
def _bn_apply_kernel(y_ref, scale_ref, shift_ref, o_ref):
    # y_ref/o_ref: (TR, W*C)   scale_ref/shift_ref: (1, W*C)
    o_ref[...] = y_ref[...] * scale_ref[...] + shift_ref[...]


# ----------------------------------------------------------------------------
# Tiling helpers (trace-time, static shapes).
# ----------------------------------------------------------------------------
def _pick_row_chunk(h, w, k_dim):
    """Largest divisor of H with ~<=512 matmul rows and a modest im2col scratch."""
    best = 1
    for d in range(1, h + 1):
        if h % d == 0 and d * w <= 512 and d * w * k_dim * 4 <= (6 << 20):
            best = d
    return best


def _pick_row_tile(rows, row_bytes, cap_bytes=2 << 20):
    """Largest multiple-of-8 divisor of `rows` under the byte cap (else full)."""
    best = None
    for d in range(8, rows + 1):
        if rows % d == 0 and d % 8 == 0 and d * row_bytes <= cap_bytes:
            best = d
    return rows if best is None else best


# ----------------------------------------------------------------------------
# Wrapper: CB.forward (NCHW in / NCHW out, training-mode BN statistics).
# ----------------------------------------------------------------------------
@jax.jit
def cb_forward(x_nchw, w_oihw, gamma, beta):
    eps = 1e-5
    N, C, H, W = x_nchw.shape

    # Interface glue: NCHW -> NHWC + 1-pixel halo (fused by XLA into ~one pass).
    x_nhwc = jnp.transpose(x_nchw, (0, 2, 3, 1)).astype(jnp.float32)
    x_pad = jnp.pad(x_nhwc, ((0, 0), (1, 1), (1, 1), (0, 0)))

    # im2col weight: (Cout, Cin, 3, 3) -> rows (tap*Cpad + ci), cols Cout.
    # Cpad = lane-tile aligned stride per tap (tight when C % 128 == 0).
    c_pad = ((C + 127) // 128) * 128
    k_dim = 9 * c_pad
    w_taps = jnp.transpose(w_oihw, (2, 3, 1, 0)).reshape(9, C, C).astype(jnp.float32)
    w_mat = jnp.zeros((9, c_pad, C), jnp.float32).at[:, :C, :].set(w_taps)
    w_mat = w_mat.reshape(k_dim, C)

    row_chunk = _pick_row_chunk(H, W, k_dim)   # divides H

    conv_y, img_sum, img_sq = pl.pallas_call(
        functools.partial(_conv_stats_kernel, row_chunk=row_chunk, c_pad=c_pad),
        grid=(N,),
        in_specs=[
            pl.BlockSpec((1, H + 2, W + 2, C), lambda n: (n, 0, 0, 0)),
            pl.BlockSpec((k_dim, C), lambda n: (0, 0)),
        ],
        out_specs=[
            pl.BlockSpec((1, H * W, C), lambda n: (n, 0, 0)),
            pl.BlockSpec((1, 1, C), lambda n: (n, 0, 0)),
            pl.BlockSpec((1, 1, C), lambda n: (n, 0, 0)),
        ],
        out_shape=[
            jax.ShapeDtypeStruct((N, H * W, C), jnp.float32),
            jax.ShapeDtypeStruct((N, 1, C), jnp.float32),
            jax.ShapeDtypeStruct((N, 1, C), jnp.float32),
        ],
        scratch_shapes=[pltpu.VMEM((row_chunk * W, k_dim), jnp.float32)],
        compiler_params=pltpu.CompilerParams(
            dimension_semantics=("parallel",)),
    )(x_pad, w_mat)

    # Reduce the tiny per-image partials; fold BN into a per-channel affine.
    cnt = float(N * H * W)
    tot = jnp.sum(img_sum, axis=(0, 1))                 # (C,)
    tot_sq = jnp.sum(img_sq, axis=(0, 1))               # (C,)
    mean = tot / cnt
    var = jnp.maximum(tot_sq / cnt - mean * mean, 0.0)  # biased variance
    scale = gamma.astype(jnp.float32) * jax.lax.rsqrt(var + eps)
    shift = beta.astype(jnp.float32) - mean * scale

    # Free (metadata-only) reshape: (N, H*W, C) -> (N*H, W*C). Lane dim = W*C.
    y_flat = conv_y.reshape(N * H, W * C)
    scale_row = jnp.tile(scale, W).reshape(1, W * C)
    shift_row = jnp.tile(shift, W).reshape(1, W * C)

    rows = N * H
    tr = _pick_row_tile(rows, W * C * 4)

    out_flat = pl.pallas_call(
        _bn_apply_kernel,
        grid=(rows // tr,),
        in_specs=[
            pl.BlockSpec((tr, W * C), lambda i: (i, 0)),
            pl.BlockSpec((1, W * C), lambda i: (0, 0)),
            pl.BlockSpec((1, W * C), lambda i: (0, 0)),
        ],
        out_specs=pl.BlockSpec((tr, W * C), lambda i: (i, 0)),
        out_shape=jax.ShapeDtypeStruct((rows, W * C), jnp.float32),
        compiler_params=pltpu.CompilerParams(
            dimension_semantics=("parallel",)),
    )(y_flat, scale_row, shift_row)

    # Back to the PyTorch NCHW convention.
    out_nhwc = out_flat.reshape(N, H, W, C)
    return jnp.transpose(out_nhwc, (0, 3, 1, 2))


# ----------------------------------------------------------------------------
# Pure-JAX reference (conv + training-mode BN) for correctness checking.
# ----------------------------------------------------------------------------
def _reference(x_nchw, w_oihw, gamma, beta):
    y = jax.lax.conv_general_dilated(
        x_nchw.astype(jnp.float32), w_oihw.astype(jnp.float32),
        window_strides=(1, 1), padding=((1, 1), (1, 1)),
        dimension_numbers=("NCHW", "OIHW", "NCHW"))
    mean = jnp.mean(y, axis=(0, 2, 3), keepdims=True)
    var = jnp.mean((y - mean) ** 2, axis=(0, 2, 3), keepdims=True)
    inv = jax.lax.rsqrt(var + 1e-5)
    g = gamma.reshape(1, -1, 1, 1)
    b = beta.reshape(1, -1, 1, 1)
    return (y - mean) * inv * g + b


if __name__ == "__main__":
    key = jax.random.PRNGKey(0)
    k_x, k_w = jax.random.split(key)

    N, C, H, W = 2, 4, 16, 16

    x = jax.random.normal(k_x, (N, C, H, W), dtype=jnp.float32)

    # Conv weight: kaiming_normal_(mode='fan_out', nonlinearity='relu')
    fan_out = C * 3 * 3
    std = (2.0 / fan_out) ** 0.5
    w = jax.random.normal(k_w, (C, C, 3, 3), dtype=jnp.float32) * std

    # BatchNorm params: weight=1, bias=0 (as in CB.__init__).
    gamma = jnp.ones((C,), jnp.float32)
    beta = jnp.zeros((C,), jnp.float32)

    out = jax.block_until_ready(cb_forward(x, w, gamma, beta))
    ref = jax.block_until_ready(_reference(x, w, gamma, beta))

    assert out.shape == (N, C, H, W)
    assert jnp.allclose(out, ref, rtol=1e-3, atol=1e-3), "mismatch vs reference"

    print("KERNEL_OK")
</pallas_src>

<mosaic_0001>
module attributes {stable_mosaic.version = 11 : i64} {
  func.func @_conv_stats_kernel(%arg0: i32, %arg1: memref<1x18x18x4xf32, #tpu.memory_space<vmem>>, %arg2: memref<1152x4xf32, #tpu.memory_space<vmem>>, %arg3: memref<1x256x4xf32, #tpu.memory_space<vmem>>, %arg4: memref<1x1x4xf32, #tpu.memory_space<vmem>>, %arg5: memref<1x1x4xf32, #tpu.memory_space<vmem>>, %arg6: memref<256x1152xf32, #tpu.memory_space<vmem>>) attributes {dimension_semantics = [#tpu.dimension_semantics<parallel>], iteration_bounds = array<i64: 2>, scalar_prefetch = 0 : i64, scratch_operands = 1 : i64, tpu.core_type = #tpu.core_type<tc>, window_params = [{transform_indices = @transform_0, window_bounds = array<i64: 1, 18, 18, 4>}, {pipeline_mode = #tpu.pipeline_mode<synchronous>, transform_indices = @transform_1, window_bounds = array<i64: 1152, 4>}, {transform_indices = @transform_2, window_bounds = array<i64: 1, 256, 4>}, {transform_indices = @transform_3, window_bounds = array<i64: 1, 1, 4>}, {transform_indices = @transform_4, window_bounds = array<i64: 1, 1, 4>}]} {
    %cst = arith.constant 0.000000e+00 : f32
    %0 = vector.broadcast %cst : f32 to vector<256x1152xf32>
    %c0 = arith.constant 0 : index
    %c0_0 = arith.constant 0 : index
    %1 = vector.load %arg6[%c0, %c0_0] : memref<256x1152xf32, #tpu.memory_space<vmem>>, vector<256x1152xf32>
    tpu.vector_store %arg6[%c0, %c0_0], %0 {strides = array<i32>} : memref<256x1152xf32, #tpu.memory_space<vmem>>, vector<256x1152xf32>,
    %cst_1 = arith.constant 0.000000e+00 : f32
    %2 = vector.broadcast %cst_1 : f32 to vector<1x4xf32>
    %cst_2 = arith.constant 0.000000e+00 : f32
    %3 = vector.broadcast %cst_2 : f32 to vector<1x4xf32>
    %c0_3 = arith.constant 0 : index
    %c0_4 = arith.constant 0 : index
    %c0_5 = arith.constant 0 : index
    %c0_6 = arith.constant 0 : index
    %4 = vector.load %arg1[%c0_3, %c0_4, %c0_5, %c0_6] : memref<1x18x18x4xf32, #tpu.memory_space<vmem>>, vector<1x16x16x4xf32>
    %5 = vector.shape_cast %4 : vector<1x16x16x4xf32> to vector<16x16x4xf32>
    %6 = vector.shape_cast %5 : vector<16x16x4xf32> to vector<256x4xf32>
    %c0_7 = arith.constant 0 : index
    %c0_8 = arith.constant 0 : index
    %7 = vector.load %arg6[%c0_7, %c0_8] : memref<256x1152xf32, #tpu.memory_space<vmem>>, vector<256x4xf32>
    tpu.vector_store %arg6[%c0_7, %c0_8], %6 {strides = array<i32>} : memref<256x1152xf32, #tpu.memory_space<vmem>>, vector<256x4xf32>,
    %c0_9 = arith.constant 0 : index
    %c0_10 = arith.constant 0 : index
    %c1 = arith.constant 1 : index
    %c0_11 = arith.constant 0 : index
    %8 = vector.load %arg1[%c0_9, %c0_10, %c1, %c0_11] : memref<1x18x18x4xf32, #tpu.memory_space<vmem>>, vector<1x16x16x4xf32>
    %9 = vector.shape_cast %8 : vector<1x16x16x4xf32> to vector<16x16x4xf32>
    %10 = vector.shape_cast %9 : vector<16x16x4xf32> to vector<256x4xf32>
    %c0_12 = arith.constant 0 : index
    %c128 = arith.constant 128 : index
    %11 = vector.load %arg6[%c0_12, %c128] : memref<256x1152xf32, #tpu.memory_space<vmem>>, vector<256x4xf32>
    tpu.vector_store %arg6[%c0_12, %c128], %10 {strides = array<i32>} : memref<256x1152xf32, #tpu.memory_space<vmem>>, vector<256x4xf32>,
    %c0_13 = arith.constant 0 : index
    %c0_14 = arith.constant 0 : index
    %c2 = arith.constant 2 : index
    %c0_15 = arith.constant 0 : index
    %12 = vector.load %arg1[%c0_13, %c0_14, %c2, %c0_15] : memref<1x18x18x4xf32, #tpu.memory_space<vmem>>, vector<1x16x16x4xf32>
    %13 = vector.shape_cast %12 : vector<1x16x16x4xf32> to vector<16x16x4xf32>
    %14 = vector.shape_cast %13 : vector<16x16x4xf32> to vector<256x4xf32>
    %c0_16 = arith.constant 0 : index
    %c256 = arith.constant 256 : index
    %15 = vector.load %arg6[%c0_16, %c256] : memref<256x1152xf32, #tpu.memory_space<vmem>>, vector<256x4xf32>
    tpu.vector_store %arg6[%c0_16, %c256], %14 {strides = array<i32>} : memref<256x1152xf32, #tpu.memory_space<vmem>>, vector<256x4xf32>,
    %c0_17 = arith.constant 0 : index
    %c1_18 = arith.constant 1 : index
    %c0_19 = arith.constant 0 : index
    %c0_20 = arith.constant 0 : index
    %16 = vector.load %arg1[%c0_17, %c1_18, %c0_19, %c0_20] : memref<1x18x18x4xf32, #tpu.memory_space<vmem>>, vector<1x16x16x4xf32>
    %17 = vector.shape_cast %16 : vector<1x16x16x4xf32> to vector<16x16x4xf32>
    %18 = vector.shape_cast %17 : vector<16x16x4xf32> to vector<256x4xf32>
    %c0_21 = arith.constant 0 : index
    %c384 = arith.constant 384 : index
    %19 = vector.load %arg6[%c0_21, %c384] : memref<256x1152xf32, #tpu.memory_space<vmem>>, vector<256x4xf32>
    tpu.vector_store %arg6[%c0_21, %c384], %18 {strides = array<i32>} : memref<256x1152xf32, #tpu.memory_space<vmem>>, vector<256x4xf32>,
    %c0_22 = arith.constant 0 : index
    %c1_23 = arith.constant 1 : index
    %c1_24 = arith.constant 1 : index
    %c0_25 = arith.constant 0 : index
    %20 = vector.load %arg1[%c0_22, %c1_23, %c1_24, %c0_25] : memref<1x18x18x4xf32, #tpu.memory_space<vmem>>, vector<1x16x16x4xf32>
    %21 = vector.shape_cast %20 : vector<1x16x16x4xf32> to vector<16x16x4xf32>
    %22 = vector.shape_cast %21 : vector<16x16x4xf32> to vector<256x4xf32>
    %c0_26 = arith.constant 0 : index
    %c512 = arith.constant 512 : index
    %23 = vector.load %arg6[%c0_26, %c512] : memref<256x1152xf32, #tpu.memory_space<vmem>>, vector<256x4xf32>
    tpu.vector_store %arg6[%c0_26, %c512], %22 {strides = array<i32>} : memref<256x1152xf32, #tpu.memory_space<vmem>>, vector<256x4xf32>,
    %c0_27 = arith.constant 0 : index
    %c1_28 = arith.constant 1 : index
    %c2_29 = arith.constant 2 : index
    %c0_30 = arith.constant 0 : index
    %24 = vector.load %arg1[%c0_27, %c1_28, %c2_29, %c0_30] : memref<1x18x18x4xf32, #tpu.memory_space<vmem>>, vector<1x16x16x4xf32>
    %25 = vector.shape_cast %24 : vector<1x16x16x4xf32> to vector<16x16x4xf32>
    %26 = vector.shape_cast %25 : vector<16x16x4xf32> to vector<256x4xf32>
    %c0_31 = arith.constant 0 : index
    %c640 = arith.constant 640 : index
    %27 = vector.load %arg6[%c0_31, %c640] : memref<256x1152xf32, #tpu.memory_space<vmem>>, vector<256x4xf32>
    tpu.vector_store %arg6[%c0_31, %c640], %26 {strides = array<i32>} : memref<256x1152xf32, #tpu.memory_space<vmem>>, vector<256x4xf32>,
    %c0_32 = arith.constant 0 : index
    %c2_33 = arith.constant 2 : index
    %c0_34 = arith.constant 0 : index
    %c0_35 = arith.constant 0 : index
    %28 = vector.load %arg1[%c0_32, %c2_33, %c0_34, %c0_35] : memref<1x18x18x4xf32, #tpu.memory_space<vmem>>, vector<1x16x16x4xf32>
    %29 = vector.shape_cast %28 : vector<1x16x16x4xf32> to vector<16x16x4xf32>
    %30 = vector.shape_cast %29 : vector<16x16x4xf32> to vector<256x4xf32>
    %c0_36 = arith.constant 0 : index
    %c768 = arith.constant 768 : index
    %31 = vector.load %arg6[%c0_36, %c768] : memref<256x1152xf32, #tpu.memory_space<vmem>>, vector<256x4xf32>
    tpu.vector_store %arg6[%c0_36, %c768], %30 {strides = array<i32>} : memref<256x1152xf32, #tpu.memory_space<vmem>>, vector<256x4xf32>,
    %c0_37 = arith.constant 0 : index
    %c2_38 = arith.constant 2 : index
    %c1_39 = arith.constant 1 : index
    %c0_40 = arith.constant 0 : index
    %32 = vector.load %arg1[%c0_37, %c2_38, %c1_39, %c0_40] : memref<1x18x18x4xf32, #tpu.memory_space<vmem>>, vector<1x16x16x4xf32>
    %33 = vector.shape_cast %32 : vector<1x16x16x4xf32> to vector<16x16x4xf32>
    %34 = vector.shape_cast %33 : vector<16x16x4xf32> to vector<256x4xf32>
    %c0_41 = arith.constant 0 : index
    %c896 = arith.constant 896 : index
    %35 = vector.load %arg6[%c0_41, %c896] : memref<256x1152xf32, #tpu.memory_space<vmem>>, vector<256x4xf32>
    tpu.vector_store %arg6[%c0_41, %c896], %34 {strides = array<i32>} : memref<256x1152xf32, #tpu.memory_space<vmem>>, vector<256x4xf32>,
    %c0_42 = arith.constant 0 : index
    %c2_43 = arith.constant 2 : index
    %c2_44 = arith.constant 2 : index
    %c0_45 = arith.constant 0 : index
    %36 = vector.load %arg1[%c0_42, %c2_43, %c2_44, %c0_45] : memref<1x18x18x4xf32, #tpu.memory_space<vmem>>, vector<1x16x16x4xf32>
    %37 = vector.shape_cast %36 : vector<1x16x16x4xf32> to vector<16x16x4xf32>
    %38 = vector.shape_cast %37 : vector<16x16x4xf32> to vector<256x4xf32>
    %c0_46 = arith.constant 0 : index
    %c1024 = arith.constant 1024 : index
    %39 = vector.load %arg6[%c0_46, %c1024] : memref<256x1152xf32, #tpu.memory_space<vmem>>, vector<256x4xf32>
    tpu.vector_store %arg6[%c0_46, %c1024], %38 {strides = array<i32>} : memref<256x1152xf32, #tpu.memory_space<vmem>>, vector<256x4xf32>,
    %c0_47 = arith.constant 0 : index
    %c0_48 = arith.constant 0 : index
    %40 = vector.load %arg6[%c0_47, %c0_48] : memref<256x1152xf32, #tpu.memory_space<vmem>>, vector<256x1152xf32>
    %c0_49 = arith.constant 0 : index
    %c0_50 = arith.constant 0 : index
    %41 = vector.load %arg2[%c0_49, %c0_50] : memref<1152x4xf32, #tpu.memory_space<vmem>>, vector<1152x4xf32>
    %cst_51 = arith.constant dense<0.000000e+00> : vector<256x4xf32>
    %42 = tpu.matmul %40, %41, %cst_51 {dimension_numbers = #tpu.dot_dimension_numbers<[1], [0], [0], [1], [0, 0, 1, 1], [], []>} : vector<256x1152xf32>, vector<1152x4xf32>, vector<256x4xf32> -> vector<256x4xf32>
    %cst_52 = arith.constant dense<0.000000e+00> : vector<4xf32>
    %43 = vector.multi_reduction <add>, %42, %cst_52 [0] : vector<256x4xf32> to vector<4xf32>
    %44 = vector.shape_cast %43 : vector<4xf32> to vector<1x4xf32>
    %45 = arith.addf %2, %44 : vector<1x4xf32>
    %46 = arith.mulf %42, %42 : vector<256x4xf32>
    %cst_53 = arith.constant dense<0.000000e+00> : vector<4xf32>
    %47 = vector.multi_reduction <add>, %46, %cst_53 [0] : vector<256x4xf32> to vector<4xf32>
    %48 = vector.shape_cast %47 : vector<4xf32> to vector<1x4xf32>
    %49 = arith.addf %3, %48 : vector<1x4xf32>
    %c0_54 = arith.constant 0 : index
    %c0_55 = arith.constant 0 : index
    %c0_56 = arith.constant 0 : index
    %50 = vector.load %arg3[%c0_54, %c0_55, %c0_56] : memref<1x256x4xf32, #tpu.memory_space<vmem>>, vector<1x256x4xf32>
    %51 = vector.shape_cast %50 : vector<1x256x4xf32> to vector<256x4xf32>
    %52 = vector.shape_cast %42 : vector<256x4xf32> to vector<1x256x4xf32>
    tpu.vector_store %arg3[%c0_54, %c0_55, %c0_56], %52 {strides = array<i32>} : memref<1x256x4xf32, #tpu.memory_space<vmem>>, vector<1x256x4xf32>,
    %53 = vector.shape_cast %45 : vector<1x4xf32> to vector<1x1x4xf32>
    %c0_57 = arith.constant 0 : index
    %c0_58 = arith.constant 0 : index
    %c0_59 = arith.constant 0 : index
    %54 = vector.load %arg4[%c0_57, %c0_58, %c0_59] : memref<1x1x4xf32, #tpu.memory_space<vmem>>, vector<1x1x4xf32>
    tpu.vector_store %arg4[%c0_57, %c0_58, %c0_59], %53 {strides = array<i32>} : memref<1x1x4xf32, #tpu.memory_space<vmem>>, vector<1x1x4xf32>,
    %55 = vector.shape_cast %49 : vector<1x4xf32> to vector<1x1x4xf32>
    %c0_60 = arith.constant 0 : index
    %c0_61 = arith.constant 0 : index
    %c0_62 = arith.constant 0 : index
    %56 = vector.load %arg5[%c0_60, %c0_61, %c0_62] : memref<1x1x4xf32, #tpu.memory_space<vmem>>, vector<1x1x4xf32>
    tpu.vector_store %arg5[%c0_60, %c0_61, %c0_62], %55 {strides = array<i32>} : memref<1x1x4xf32, #tpu.memory_space<vmem>>, vector<1x1x4xf32>,
    return
  }
  func.func @transform_0(%arg0: i32) -> (i32, i32, i32, i32) {
    %c0_i32 = arith.constant 0 : i32
    %c0_i32_0 = arith.constant 0 : i32
    %c0_i32_1 = arith.constant 0 : i32
    %c0_i32_2 = arith.constant 0 : i32
    return %arg0, %c0_i32, %c0_i32_0, %c0_i32_1 : i32, i32, i32, i32
  }
  func.func @transform_1(%arg0: i32) -> (i32, i32) {
    %c0_i32 = arith.constant 0 : i32
    %c0_i32_0 = arith.constant 0 : i32
    %c0_i32_1 = arith.constant 0 : i32
    return %c0_i32, %c0_i32_0 : i32, i32
  }
  func.func @transform_2(%arg0: i32) -> (i32, i32, i32) {
    %c0_i32 = arith.constant 0 : i32
    %c0_i32_0 = arith.constant 0 : i32
    %c0_i32_1 = arith.constant 0 : i32
    return %arg0, %c0_i32, %c0_i32_0 : i32, i32, i32
  }
  func.func @transform_3(%arg0: i32) -> (i32, i32, i32) {
    %c0_i32 = arith.constant 0 : i32
    %c0_i32_0 = arith.constant 0 : i32
    %c0_i32_1 = arith.constant 0 : i32
    return %arg0, %c0_i32, %c0_i32_0 : i32, i32, i32
  }
  func.func @transform_4(%arg0: i32) -> (i32, i32, i32) {
    %c0_i32 = arith.constant 0 : i32
    %c0_i32_0 = arith.constant 0 : i32
    %c0_i32_1 = arith.constant 0 : i32
    return %arg0, %c0_i32, %c0_i32_0 : i32, i32, i32
  }
}

module attributes {stable_mosaic.version = 11 : i64} {
  func.func @_bn_apply_kernel(%arg0: i32, %arg1: memref<32x64xf32, #tpu.memory_space<vmem>>, %arg2: memref<1x64xf32, #tpu.memory_space<vmem>>, %arg3: memref<1x64xf32, #tpu.memory_space<vmem>>, %arg4: memref<32x64xf32, #tpu.memory_space<vmem>>) attributes {dimension_semantics = [#tpu.dimension_semantics<parallel>], iteration_bounds = array<i64: 1>, scalar_prefetch = 0 : i64, scratch_operands = 0 : i64, tpu.core_type = #tpu.core_type<tc>, window_params = [{transform_indices = @transform_0, window_bounds = array<i64: 32, 64>}, {pipeline_mode = #tpu.pipeline_mode<synchronous>, transform_indices = @transform_1, window_bounds = array<i64: 1, 64>}, {pipeline_mode = #tpu.pipeline_mode<synchronous>, transform_indices = @transform_2, window_bounds = array<i64: 1, 64>}, {transform_indices = @transform_3, window_bounds = array<i64: 32, 64>}]} {
    %c0 = arith.constant 0 : index
    %c0_0 = arith.constant 0 : index
    %0 = vector.load %arg1[%c0, %c0_0] : memref<32x64xf32, #tpu.memory_space<vmem>>, vector<32x64xf32>
    %c0_1 = arith.constant 0 : index
    %c0_2 = arith.constant 0 : index
    %1 = vector.load %arg2[%c0_1, %c0_2] : memref<1x64xf32, #tpu.memory_space<vmem>>, vector<1x64xf32>
    %2 = vector.broadcast %1 : vector<1x64xf32> to vector<32x64xf32>
    %3 = arith.mulf %0, %2 : vector<32x64xf32>
    %c0_3 = arith.constant 0 : index
    %c0_4 = arith.constant 0 : index
    %4 = vector.load %arg3[%c0_3, %c0_4] : memref<1x64xf32, #tpu.memory_space<vmem>>, vector<1x64xf32>
    %5 = vector.broadcast %4 : vector<1x64xf32> to vector<32x64xf32>
    %6 = arith.addf %3, %5 : vector<32x64xf32>
    %c0_5 = arith.constant 0 : index
    %c0_6 = arith.constant 0 : index
    %7 = vector.load %arg4[%c0_5, %c0_6] : memref<32x64xf32, #tpu.memory_space<vmem>>, vector<32x64xf32>
    tpu.vector_store %arg4[%c0_5, %c0_6], %6 {strides = array<i32>} : memref<32x64xf32, #tpu.memory_space<vmem>>, vector<32x64xf32>,
    return
  }
  func.func @transform_0(%arg0: i32) -> (i32, i32) {
    %c0_i32 = arith.constant 0 : i32
    %c0_i32_0 = arith.constant 0 : i32
    return %arg0, %c0_i32 : i32, i32
  }
  func.func @transform_1(%arg0: i32) -> (i32, i32) {
    %c0_i32 = arith.constant 0 : i32
    %c0_i32_0 = arith.constant 0 : i32
    %c0_i32_1 = arith.constant 0 : i32
    return %c0_i32, %c0_i32_0 : i32, i32
  }
  func.func @transform_2(%arg0: i32) -> (i32, i32) {
    %c0_i32 = arith.constant 0 : i32
    %c0_i32_0 = arith.constant 0 : i32
    %c0_i32_1 = arith.constant 0 : i32
    return %c0_i32, %c0_i32_0 : i32, i32
  }
  func.func @transform_3(%arg0: i32) -> (i32, i32) {
    %c0_i32 = arith.constant 0 : i32
    %c0_i32_0 = arith.constant 0 : i32
    return %arg0, %c0_i32 : i32, i32
  }
}

</mosaic_0001>

<bundles_post_ra>
// kernel: tile.18
= control target key start
LH: loop header
LB: loop body
LE: loop exit
PB: predicated region body
PF: predicated region fallthrough
CT: control target
= control target key end

     0   :  { %s28_s0 = inlined_call_operand.vmem [shape: f32[4], index: 0, kind: input, shape index: {}]   ;;  %s29_s1 = inlined_call_operand.vmem [shape: f32[16,4], index: 1, kind: output, shape index: {}]  }
   0x1   :  { %v4_v0 = vld [vmem:[%s28_s0] ss:$0 sm:$0xff] }
   0x2   :  { %5 = vst [vmem:[%s29_s1] sm:$0xff] %v4_v0 }
   0x3   :  { %8 = vst [vmem:[%s29_s1 + $0x8] sm:$0xff] %v4_v0 }

// kernel: tile.19
= control target key start
LH: loop header
LB: loop body
LE: loop exit
PB: predicated region body
PF: predicated region fallthrough
CT: control target
= control target key end

     0   :  { %s131_s10 = smov 60   ;;  %s132_s11 = smov 52   ;;  %vm3_vm0 = vcmask 31744   ;;  %vm9_vm1 = vcmask 523744   ;;  %vm15_vm2 = vcmask 490944   ;;  %vm21_vm3 = vcmask 458144   ;;  %s207_s0 = inlined_call_operand.vmem [shape: f32[16,4], index: 0, kind: input, shape index: {}]   ;;  %s208_s1 = inlined_call_operand.vmem [shape: f32[1,64], index: 1, kind: output, shape index: {}]  }
   0x1   :  { %v101_v0 = vld [vmem:[%s207_s0 + $0xf] sm:$0x1]   ;;  %v103_v1 = vld [vmem:[%s207_s0 + $0xd] sm:$0x1]   ;;  %v105_v2 = vld [vmem:[%s207_s0 + $0xb] sm:$0x1]  }
   0x2   :  { %7 = vrot.lane.b32.xlu0 %v101_v0, %s131_s10  ;;  %19 = vrot.lane.b32.xlu1 %v103_v1, %s132_s11  ;;  %s133_s14 = smov 44   ;;  %v102_v3 = vld [vmem:[%s207_s0 + $0xe] sm:$0x1]   ;;  %v104_v4 = vld [vmem:[%s207_s0 + $0xc] sm:$0x1]   ;;  %s134_s19 = smov 56  }
   0x3   :  { %31 = vrot.lane.b32.xlu2 %v105_v2, %s133_s14  ;;  %s135_s20 = smov 48   ;;  %v106_v5 = vld [vmem:[%s207_s0 + $0xa] sm:$0x1]   ;;  %s136_s23 = smov 40   ;;  %v107_v6 = vld [vmem:[%s207_s0 + $0x9] sm:$0x1]  }
   0x4   :  { %v108_v7 = vld [vmem:[%s207_s0 + $0x8] sm:$0x1]   ;;  %s137_s28 = smov 36   ;;  %s138_s29 = smov 32   ;;  %v109_v8 = vld [vmem:[%s207_s0 + $0x7] sm:$0x1]  }
   0x5   :  { %s139_s3 = smov 28   ;;  %v110_v9 = vld [vmem:[%s207_s0 + $0x6] sm:$0x1]   ;;  %v111_v10 = vld [vmem:[%s207_s0 + $0x5] sm:$0x1]   ;;  %s140_s8 = smov 24  }
   0x6   :  { %s141_s9 = smov 20   ;;  %v112_v11 = vld [vmem:[%s207_s0 + $0x4] sm:$0x1]   ;;  %s142_s12 = smov 16   ;;  %v113_v12 = vld [vmem:[%s207_s0 + $0x3] sm:$0x1]  }
   0x7   :  { %v114_v13 = vld [vmem:[%s207_s0 + $0x2] sm:$0x1]   ;;  %s143_s17 = smov 12   ;;  %s144_s18 = smov 8   ;;  %v115_v14 = vld [vmem:[%s207_s0 + $0x1] sm:$0x1]  }
   0x8   :  { %s145_s21 = smov 4   ;;  %v2_v15 = vld [vmem:[%s207_s0] sm:$0x1]   ;;  %vm27_vm4 = vcmask 425344   ;;  %vm33_vm5 = vcmask 392544   ;;  %vm39_vm6 = vcmask 359744  }
   0x9   :  { %4 = vst.msk [vmem:[#allocation0] sm:$0x1] %vm3_vm0, %v2_v15   ;;  %vm45_vm7 = vcmask 326944   ;;  %vm51_vm8 = vcmask 294144   ;;  %vm57_vm9 = vcmask 261344   ;;  %vm63_vm10 = vcmask 228544  }
   0xa   :  { %13 = vrot.lane.b32.xlu0 %v102_v3, %s134_s19  ;;  %25 = vrot.lane.b32.xlu1 %v104_v4, %s135_s20  ;;  %vm69_vm11 = vcmask 195744   ;;  %vm75_vm12 = vcmask 162944   ;;  %vm81_vm13 = vcmask 130144   ;;  %vm87_vm14 = vcmask 97344  }
   0xb   :  { %37 = vrot.lane.b32.xlu2 %v106_v5, %s136_s23  ;;  %vm93_vm15 = vcmask 64544  }
  0x12   :  { %43 = vrot.lane.b32.xlu0 %v107_v6, %s137_s28  ;;  %49 = vrot.lane.b32.xlu1 %v108_v7, %s138_s29 }
  0x13   :  { %55 = vrot.lane.b32.xlu2 %v109_v8, %s139_s3 }
  0x1a   :  { %61 = vrot.lane.b32.xlu0 %v110_v9, %s140_s8  ;;  %67 = vrot.lane.b32.xlu1 %v111_v10, %s141_s9 }
  0x1b   :  { %73 = vrot.lane.b32.xlu2 %v112_v11, %s142_s12 }
  0x22   :  { %79 = vrot.lane.b32.xlu0 %v113_v12, %s143_s17  ;;  %85 = vrot.lane.b32.xlu1 %v114_v13, %s144_s18 }
  0x23   :  { %91 = vrot.lane.b32.xlu2 %v115_v14, %s145_s21 }
  0x5d   :  { %v32_v16 = vpop.permute.xlu2 %31  }
  0x65   :  { %v38_v17 = vpop.permute.xlu2 %37  }
  0x6d   :  { %v56_v18 = vpop.permute.xlu2 %55  }
  0x74   :  { %v8_v19 = vpop.permute.xlu0 %7   ;;  %v20_v20 = vpop.permute.xlu1 %19  }
  0x75   :  { %10 = vst.msk [vmem:[#allocation0] sm:$0x1] %vm9_vm1, %v8_v19   ;;  %v74_v21 = vpop.permute.xlu2 %73  }
  0x7c   :  { %v14_v22 = vpop.permute.xlu0 %13   ;;  %v26_v23 = vpop.permute.xlu1 %25  }
  0x7d   :  { %16 = vst.msk [vmem:[#allocation0] sm:$0x1] %vm15_vm2, %v14_v22   ;;  %v92_v24 = vpop.permute.xlu2 %91  }
  0x7e   :  { %22 = vst.msk [vmem:[#allocation0] sm:$0x1] %vm21_vm3, %v20_v20  }
  0x7f   :  { %28 = vst.msk [vmem:[#allocation0] sm:$0x1] %vm27_vm4, %v26_v23  }
  0x80   :  { %34 = vst.msk [vmem:[#allocation0] sm:$0x1] %vm33_vm5, %v32_v16  }
  0x81   :  { %40 = vst.msk [vmem:[#allocation0] sm:$0x1] %vm39_vm6, %v38_v17  }
  0x84   :  { %v44_v25 = vpop.permute.xlu0 %43   ;;  %v50_v26 = vpop.permute.xlu1 %49  }
  0x85   :  { %46 = vst.msk [vmem:[#allocation0] sm:$0x1] %vm45_vm7, %v44_v25  }
  0x86   :  { %52 = vst.msk [vmem:[#allocation0] sm:$0x1] %vm51_vm8, %v50_v26  }
  0x87   :  { %58 = vst.msk [vmem:[#allocation0] sm:$0x1] %vm57_vm9, %v56_v18  }
  0x8c   :  { %v62_v27 = vpop.permute.xlu0 %61   ;;  %v68_v28 = vpop.permute.xlu1 %67  }
  0x8d   :  { %64 = vst.msk [vmem:[#allocation0] sm:$0x1] %vm63_vm10, %v62_v27  }
  0x8e   :  { %70 = vst.msk [vmem:[#allocation0] sm:$0x1] %vm69_vm11, %v68_v28  }
  0x8f   :  { %76 = vst.msk [vmem:[#allocation0] sm:$0x1] %vm75_vm12, %v74_v21  }
  0x94   :  { %v80_v29 = vpop.permute.xlu0 %79   ;;  %v86_v30 = vpop.permute.xlu1 %85  }
  0x95   :  { %82 = vst.msk [vmem:[#allocation0] sm:$0x1] %vm81_vm13, %v80_v29  }
  0x96   :  { %88 = vst.msk [vmem:[#allocation0] sm:$0x1] %vm87_vm14, %v86_v30  }
  0x97   :  { %94 = vst.msk [vmem:[#allocation0] sm:$0x1] %vm93_vm15, %v92_v24  }
  0x9e   :  { %v97_v31 = vld [vmem:[#allocation0] sm:$0x1] }
  0x9f   :  { %100 = vst [vmem:[%s208_s1] sm:$0x1] %v97_v31 }

// kernel: cb_forward.3
= control target key start
LH: loop header
LB: loop body
LE: loop exit
PB: predicated region body
PF: predicated region fallthrough
CT: control target
= control target key end

     0   :  { %vm34_vm0 = vcmask 523264   ;;  %s95_s0 = inlined_call_operand.vmem [shape: f32[32,64], index: 0, kind: input, shape index: {}]   ;;  %s96_s1 = inlined_call_operand.vmem [shape: f32[1,64], index: 1, kind: input, shape index: {}]   ;;  %s97_s2 = inlined_call_operand.vmem [shape: f32[1,64], index: 2, kind: input, shape index: {}]   ;;  %s98_s3 = inlined_call_operand.vmem [shape: f32[32,64], index: 3, kind: output, shape index: {}]  }
   0x1   :  { %v14_v0 = vld [vmem:[%s95_s0] sm:$0xff]  ;;  %v15_v3 = vld [vmem:[%s95_s0 + $0x8] sm:$0xff]  ;;  %v16_v6 = vld [vmem:[%s95_s0 + $0x10] sm:$0xff] }
   0x2   :  { %v43_v1 = vld [vmem:[%s96_s1] ss:$0 sm:$0xff]  ;;  %v17_v7 = vld [vmem:[%s95_s0 + $0x18] sm:$0xff] }
   0x3   :  { %v44_v2 = vld [vmem:[%s97_s2] ss:$0 sm:$0xff]  ;;  %v22_v4 = vmul.f32 %v43_v1, %v14_v0  ;;  %v23_v5 = vmul.f32 %v43_v1, %v15_v3  ;;  %v24_v8 = vmul.f32 %v43_v1, %v16_v6  ;;  %v25_v9 = vmul.f32 %v43_v1, %v17_v7 }
   0x5   :  { %v30_v10 = vadd.f32 %v44_v2, %v22_v4  ;;  %v31_v11 = vadd.f32 %v44_v2, %v23_v5  ;;  %v32_v12 = vadd.f32 %v44_v2, %v24_v8  ;;  %v33_v13 = vadd.f32 %v44_v2, %v25_v9 }
   0x7   :  { %35 = vst.msk [vmem:[%s98_s3] sm:$0xff] %vm34_vm0, %v30_v10 }
   0x8   :  { %36 = vst.msk [vmem:[%s98_s3 + $0x8] sm:$0xff] %vm34_vm0, %v31_v11 }
   0x9   :  { %37 = vst.msk [vmem:[%s98_s3 + $0x10] sm:$0xff] %vm34_vm0, %v32_v12 }
   0xa   :  { %38 = vst.msk [vmem:[%s98_s3 + $0x18] sm:$0xff] %vm34_vm0, %v33_v13 }

// kernel: cb_forward.2
= control target key start
LH: loop header
LB: loop body
LE: loop exit
PB: predicated region body
PF: predicated region fallthrough
CT: control target
= control target key end

     0   :  { %s3138_s15 = smov 0   ;;  %s4758_s0 = inlined_call_operand.vmem [shape: f32[2,18,18,4], index: 0, kind: input, shape index: {}]   ;;  %s4759_s1 = inlined_call_operand.vmem [shape: f32[1152,4], index: 1, kind: input, shape index: {}]   ;;  %s4760_s2 = inlined_call_operand.vmem [shape: f32[2,256,4], index: 2, kind: output, shape index: {0}]   ;;  %s4761_s3 = inlined_call_operand.vmem [shape: f32[2,1,4], index: 3, kind: output, shape index: {1}]   ;;  %s4762_s4 = inlined_call_operand.vmem [shape: f32[2,1,4], index: 4, kind: output, shape index: {2}]  }
   0x1 LB: > { %s2843_s16 = sadd.s32 4294967295, %s3110_s15   ;;  %p2847_p0 = scmp.ge.s32.totalorder %s3110_s15, 1  ;;  %s3110_s15 = sphi %s3138_s15, %s15_s15  }
   0x2   : > { %p167_p1 = scmp.lt.s32.totalorder %s3110_s15, 3 }
   0x4   : > { %p168_p2 = pnand %p2847_p0, %p167_p1 }
   0x5   : > { %p199_p3 = scmp.lt.s32.totalorder (!%p168_p2), %s2843_s16, 1 }
   0x6   : > { %171 = sbr.rel (%p168_p2) target bundleno = 1033 (0x409), region = 28 }
   0xb   : > { %v1385_v0 = vld [vmem:[%s4759_s1 + $0x78] sm:$0xff]  ;;  %v1384_v1 = vld [vmem:[%s4759_s1 + $0x70] sm:$0xff]  ;;  %v3112_v2 = vmov 0.0   ;;  %v1383_v3 = vld [vmem:[%s4759_s1 + $0x68] sm:$0xff]  ;;  %s4764_s16 = smov (!%p199_p3, %s2843_s16), 1  ;;  %vm535_vm0 = vcmask 31744  }
   0xc   : > { %3046 = vmatpush.msra.mxu1 %v1385_v0  ;;  %3047 = vmatpush.msra.mxu2 %v1385_v0  ;;  %287 = vst [vmem:[#allocation2 + $0x240] sm:$0xff] %v3112_v2  ;;  %v1382_v4 = vld [vmem:[%s4759_s1 + $0x60] sm:$0xff]  ;;  %s3094_s25 = smul.u32 432, %s4764_s16  ;;  %v1381_v5 = vld [vmem:[%s4759_s1 + $0x58] sm:$0xff]  ;;  %v1380_v7 = vld [vmem:[%s4759_s1 + $0x50] sm:$0xff]  ;;  %s3045_s7 = sshll.u32 %s4764_s16, 8 }
   0xd   : > { %3048 = vmatpush.msra.mxu3 %v1385_v0  ;;  %1514 = vmatpush.msra.mxu0 %v1385_v0  ;;  %215 = vst [vmem:[#allocation2] sm:$0xff] %v3112_v2  ;;  %v1379_v8 = vld [vmem:[%s4759_s1 + $0x48] sm:$0xff]  ;;  %v1378_v9 = vld [vmem:[%s4759_s1 + $0x40] sm:$0xff]  ;;  %v1377_v10 = vld [vmem:[%s4759_s1 + $0x38] sm:$0xff]  ;;  %s4515_s10 = scalar_lea.vmem %s4760_s2, %s3045_s7  ;;  %s211_s12 = scalar_lea.vmem %s4761_s3, %s4764_s16  ;;  %vm2735_vm1 = vcmask 24576  }
   0xe   : > { %3049 = vmatpush.msra.mxu1 %v1384_v1  ;;  %3050 = vmatpush.msra.mxu2 %v1384_v1  ;;  %216 = vst [vmem:[#allocation2 + $0x8] sm:$0xff] %v3112_v2  ;;  %s3172_s30 = scalar_lea.vmem %s4758_s0, %s3094_s25  ;;  %v1376_v11 = vld [vmem:[%s4759_s1 + $0x30] sm:$0xff]  ;;  %v1375_v12 = vld [vmem:[%s4759_s1 + $0x28] sm:$0xff]  ;;  %v1374_v13 = vld [vmem:[%s4759_s1 + $0x20] sm:$0xff]  ;;  %s214_s17 = scalar_lea.vmem %s4762_s4, %s4764_s16 }
   0xf   : > { %3051 = vmatpush.msra.mxu3 %v1384_v1  ;;  %1515 = vmatpush.msra.mxu0 %v1384_v1  ;;  %217 = vst [vmem:[#allocation2 + $0x10] sm:$0xff] %v3112_v2  ;;  %v511_v6 = vld [vmem:[%s3172_s30 + $0x60] sm:$0xff]  ;;  %v1373_v14 = vld [vmem:[%s4759_s1 + $0x18] sm:$0xff]  ;;  %v1372_v15 = vld [vmem:[%s4759_s1 + $0x10] sm:$0xff] }
  0x10   : > { %3052 = vmatpush.msra.mxu1 %v1383_v3  ;;  %3053 = vmatpush.msra.mxu2 %v1383_v3  ;;  %218 = vst [vmem:[#allocation2 + $0x18] sm:$0xff] %v3112_v2  ;;  %v1371_v16 = vld [vmem:[%s4759_s1 + $0x8] sm:$0xff]  ;;  %v1370_v17 = vld [vmem:[%s4759_s1] sm:$0xff]  ;;  %v1417_v19 = vld [vmem:[%s4759_s1 + $0x178] sm:$0xff] }
  0x11   : > { %3054 = vmatpush.msra.mxu3 %v1383_v3  ;;  %1516 = vmatpush.msra.mxu0 %v1383_v3  ;;  %219 = vst [vmem:[#allocation2 + $0x20] sm:$0xff] %v3112_v2  ;;  %v1433_v20 = vld [vmem:[%s4759_s1 + $0x1f8] sm:$0xff]  ;;  %v1416_v22 = vld [vmem:[%s4759_s1 + $0x170] sm:$0xff]  ;;  %v1415_v25 = vld [vmem:[%s4759_s1 + $0x168] sm:$0xff] }
  0x12   : > { %3055 = vmatpush.msra.mxu1 %v1382_v4  ;;  %3056 = vmatpush.msra.mxu2 %v1382_v4  ;;  %220 = vst [vmem:[#allocation2 + $0x28] sm:$0xff] %v3112_v2  ;;  %v1401_v21 = vld [vmem:[%s4759_s1 + $0xf8] sm:$0xff]  ;;  %v1432_v23 = vld [vmem:[%s4759_s1 + $0x1f0] sm:$0xff]  ;;  %v1431_v26 = vld [vmem:[%s4759_s1 + $0x1e8] sm:$0xff] }
  0x13   : > { %3057 = vmatpush.msra.mxu3 %v1382_v4  ;;  %1517 = vmatpush.msra.mxu0 %v1382_v4  ;;  %544 = vst.msk [vmem:[#allocation2 + $0x240] sm:$0xff] %vm535_vm0, %v511_v6  ;;  %v1400_v24 = vld [vmem:[%s4759_s1 + $0xf0] sm:$0xff]  ;;  %v1449_v27 = vld [vmem:[%s4759_s1 + $0x278] sm:$0xff]  ;;  %v1399_v28 = vld [vmem:[%s4759_s1 + $0xe8] sm:$0xff] }
  0x14   : > { %3058 = vmatpush.msra.mxu1 %v1381_v5  ;;  %3059 = vmatpush.msra.mxu2 %v1381_v5  ;;  %221 = vst [vmem:[#allocation2 + $0x30] sm:$0xff] %v3112_v2  ;;  %v1414_v29 = vld [vmem:[%s4759_s1 + $0x160] sm:$0xff]  ;;  %v1448_v31 = vld [vmem:[%s4759_s1 + $0x270] sm:$0xff]  ;;  %v1413_v33 = vld [vmem:[%s4759_s1 + $0x158] sm:$0xff] }
  0x15   : > { %3060 = vmatpush.msra.mxu3 %v1381_v5  ;;  %1518 = vmatpush.msra.mxu0 %v1381_v5  ;;  %222 = vst [vmem:[#allocation2 + $0x38] sm:$0xff] %v3112_v2  ;;  %v1430_v30 = vld [vmem:[%s4759_s1 + $0x1e0] sm:$0xff]  ;;  %v1429_v34 = vld [vmem:[%s4759_s1 + $0x1d8] sm:$0xff]  ;;  %v1447_v35 = vld [vmem:[%s4759_s1 + $0x268] sm:$0xff] }
  0x16   : > { %3061 = vmatpush.msra.mxu1 %v1380_v7  ;;  %3062 = vmatpush.msra.mxu2 %v1380_v7  ;;  %223 = vst [vmem:[#allocation2 + $0x40] sm:$0xff] %v3112_v2  ;;  %v1398_v32 = vld [vmem:[%s4759_s1 + $0xe0] sm:$0xff]  ;;  %v1397_v36 = vld [vmem:[%s4759_s1 + $0xd8] sm:$0xff]  ;;  %v1412_v37 = vld [vmem:[%s4759_s1 + $0x150] sm:$0xff] }
  0x17   : > { %3063 = vmatpush.msra.mxu3 %v1380_v7  ;;  %1519 = vmatpush.msra.mxu0 %v1380_v7  ;;  %224 = vst [vmem:[#allocation2 + $0x48] sm:$0xff] %v3112_v2  ;;  %v1428_v38 = vld [vmem:[%s4759_s1 + $0x1d0] sm:$0xff]  ;;  %v1446_v39 = vld [vmem:[%s4759_s1 + $0x260] sm:$0xff]  ;;  %v3558_v42 = vld [vmem:[%s3172_s30 + $0x68] sm:$0xff] }
  0x18   : > { %3064 = vmatpush.msra.mxu1 %v1379_v8  ;;  %3065 = vmatpush.msra.mxu2 %v1379_v8  ;;  %225 = vst [vmem:[#allocation2 + $0x50] sm:$0xff] %v3112_v2  ;;  %v519_v40 = vld [vmem:[%s3172_s30 + $0xc0] sm:$0xff]  ;;  %v520_v43 = vld [vmem:[%s3172_s30 + $0xc8] sm:$0xff]  ;;  %v1396_v46 = vld [vmem:[%s4759_s1 + $0xd0] sm:$0xff] }
  0x19   : > { %3066 = vmatpush.msra.mxu3 %v1379_v8  ;;  %1520 = vmatpush.msra.mxu0 %v1379_v8  ;;  %226 = vst [vmem:[#allocation2 + $0x58] sm:$0xff] %v3112_v2  ;;  %v527_v41 = vld [vmem:[%s3172_s30 + $0x120] sm:$0xff]  ;;  %v528_v45 = vld [vmem:[%s3172_s30 + $0x128] sm:$0xff]  ;;  %v1445_v49 = vld [vmem:[%s4759_s1 + $0x258] sm:$0xff] }
  0x1a   : > { %3067 = vmatpush.msra.mxu1 %v1378_v9  ;;  %3068 = vmatpush.msra.mxu2 %v1378_v9  ;;  %227 = vst [vmem:[#allocation2 + $0x60] sm:$0xff] %v3112_v2  ;;  %v1154_v18 = vld [vmem:[#allocation2 + $0x240] sm:$0xff]  ;;  %v1411_v47 = vld [vmem:[%s4759_s1 + $0x148] sm:$0xff]  ;;  %v1444_v53 = vld [vmem:[%s4759_s1 + $0x250] sm:$0xff] }
  0x1b   : > { %3069 = vmatpush.msra.mxu3 %v1378_v9  ;;  %1521 = vmatpush.msra.mxu0 %v1378_v9  ;;  %228 = vst [vmem:[#allocation2 + $0x68] sm:$0xff] %v3112_v2  ;;  %v503_v44 = vld [vmem:[%s3172_s30] sm:$0xff]  ;;  %v1427_v48 = vld [vmem:[%s4759_s1 + $0x1c8] sm:$0xff]  ;;  %v3593_v54 = vld [vmem:[%s3172_s30 + $0x78] sm:$0xff] }
  0x1c   : > { %3070 = vmatpush.msra.mxu1 %v1377_v10  ;;  %3071 = vmatpush.msra.mxu2 %v1377_v10  ;;  %229 = vst [vmem:[#allocation2 + $0x70] sm:$0xff] %v3112_v2  ;;  %v1395_v50 = vld [vmem:[%s4759_s1 + $0xc8] sm:$0xff]  ;;  %v1410_v51 = vld [vmem:[%s4759_s1 + $0x140] sm:$0xff]  ;;  %v521_v55 = vld [vmem:[%s3172_s30 + $0xd8] sm:$0xff] }
  0x1d   : > { %3072 = vmatpush.msra.mxu3 %v1377_v10  ;;  %1522 = vmatpush.msra.mxu0 %v1377_v10  ;;  %230 = vst [vmem:[#allocation2 + $0x78] sm:$0xff] %v3112_v2  ;;  %v1426_v52 = vld [vmem:[%s4759_s1 + $0x1c0] sm:$0xff]  ;;  %v504_v56 = vld [vmem:[%s3172_s30 + $0x8] sm:$0xff]  ;;  %v529_v57 = vld [vmem:[%s3172_s30 + $0x138] sm:$0xff] }
  0x1e   : > { %3073 = vmatpush.msra.mxu1 %v1376_v11  ;;  %3074 = vmatpush.msra.mxu2 %v1376_v11  ;;  %231 = vst [vmem:[#allocation2 + $0x80] sm:$0xff] %v3112_v2  ;;  %v3603_v58 = vld [vmem:[%s3172_s30 + $0x80] sm:$0xff]  ;;  %v3608_v61 = vld [vmem:[%s3172_s30 + $0x18] sm:$0xff]  ;;  %v1443_v4 = vld [vmem:[%s4759_s1 + $0x248] sm:$0xff] }
  0x1f   : > { %3075 = vmatpush.msra.mxu3 %v1376_v11  ;;  %1523 = vmatpush.msra.mxu0 %v1376_v11  ;;  %232 = vst [vmem:[#allocation2 + $0x88] sm:$0xff] %v3112_v2  ;;  %v522_v60 = vld [vmem:[%s3172_s30 + $0xe0] sm:$0xff]  ;;  %v1409_v1 = vld [vmem:[%s4759_s1 + $0x138] sm:$0xff]  ;;  %v3628_v5 = vld [vmem:[%s3172_s30 + $0x90] sm:$0xff] }
  0x20   : > { %3076 = vmatpush.msra.mxu1 %v1375_v12  ;;  %3077 = vmatpush.msra.mxu2 %v1375_v12  ;;  %233 = vst [vmem:[#allocation2 + $0x90] sm:$0xff] %v3112_v2  ;;  %v530_v63 = vld [vmem:[%s3172_s30 + $0x140] sm:$0xff]  ;;  %v1425_v3 = vld [vmem:[%s4759_s1 + $0x1b8] sm:$0xff]  ;;  %v1408_v7 = vld [vmem:[%s4759_s1 + $0x130] sm:$0xff] }
  0x21   : > { %3078 = vmatpush.msra.mxu3 %v1375_v12  ;;  %1524 = vmatpush.msra.mxu0 %v1375_v12  ;;  %234 = vst [vmem:[#allocation2 + $0x98] sm:$0xff] %v3112_v2  ;;  %v1394_v0 = vld [vmem:[%s4759_s1 + $0xc0] sm:$0xff]  ;;  %v1393_v6 = vld [vmem:[%s4759_s1 + $0xb8] sm:$0xff]  ;;  %v1424_v9 = vld [vmem:[%s4759_s1 + $0x1b0] sm:$0xff] }
  0x22   : > { %3079 = vmatpush.msra.mxu1 %v1374_v13  ;;  %3080 = vmatpush.msra.mxu2 %v1374_v13  ;;  %235 = vst [vmem:[#allocation2 + $0xa0] sm:$0xff] %v3112_v2  ;;  %v1442_v10 = vld [vmem:[%s4759_s1 + $0x240] sm:$0xff]  ;;  %v523_v11 = vld [vmem:[%s3172_s30 + $0xf0] sm:$0xff] }
  0x23   : > { %3081 = vmatpush.msra.mxu3 %v1374_v13  ;;  %236 = vst [vmem:[#allocation2 + $0xa8] sm:$0xff] %v3112_v2  ;;  %1525 = vmatpush.msra.mxu0 %v1374_v13  ;;  %v3648_v13 = vld [vmem:[%s3172_s30 + $0x20] sm:$0xff] }
  0x24   : > { %3082 = vmatpush.msra.mxu1 %v1373_v14  ;;  %3083 = vmatpush.msra.mxu2 %v1373_v14  ;;  %237 = vst [vmem:[#allocation2 + $0xb0] sm:$0xff] %v3112_v2 }
  0x25   : > { %3084 = vmatpush.msra.mxu3 %v1373_v14  ;;  %238 = vst [vmem:[#allocation2 + $0xb8] sm:$0xff] %v3112_v2  ;;  %1526 = vmatpush.msra.mxu0 %v1373_v14 }
  0x26   : > { %3085 = vmatpush.msra.mxu1 %v1372_v15  ;;  %3086 = vmatpush.msra.mxu2 %v1372_v15  ;;  %239 = vst [vmem:[#allocation2 + $0xc0] sm:$0xff] %v3112_v2 }
  0x27   : > { %3087 = vmatpush.msra.mxu3 %v1372_v15  ;;  %240 = vst [vmem:[#allocation2 + $0xc8] sm:$0xff] %v3112_v2  ;;  %1527 = vmatpush.msra.mxu0 %v1372_v15  ;;  %v531_v15 = vld [vmem:[%s3172_s30 + $0x150] sm:$0xff] }
  0x28   : > { %3088 = vmatpush.msra.mxu1 %v1371_v16  ;;  %3089 = vmatpush.msra.mxu2 %v1371_v16  ;;  %241 = vst [vmem:[#allocation2 + $0xd0] sm:$0xff] %v3112_v2 }
  0x29   : > { %3090 = vmatpush.msra.mxu3 %v1371_v16  ;;  %242 = vst [vmem:[#allocation2 + $0xd8] sm:$0xff] %v3112_v2  ;;  %1528 = vmatpush.msra.mxu0 %v1371_v16 }
  0x2a   : > { %3091 = vmatpush.msra.mxu1 %v1370_v17  ;;  %3092 = vmatpush.msra.mxu2 %v1370_v17  ;;  %243 = vst [vmem:[#allocation2 + $0xe0] sm:$0xff] %v3112_v2 }
  0x2b   : > { %1554 = vmatmul.f32.vlgmr.msra.gmra.mxu1 %v1154_v18  ;;  %244 = vst [vmem:[#allocation2 + $0xe8] sm:$0xff] %v3112_v2  ;;  %3093 = vmatpush.msra.mxu3 %v1370_v17  ;;  %v524_v18 = vld [vmem:[%s3172_s30 + $0xf8] sm:$0xff] }
  0x2c   : > { %245 = vst [vmem:[#allocation2 + $0xf0] sm:$0xff] %v3112_v2  ;;  %1529 = vmatpush.msra.mxu0 %v1370_v17  ;;  %1740 = vmatpush.msrb.mxu2 %v1417_v19  ;;  %v3655_v17 = vld [vmem:[%s3172_s30 + $0x98] sm:$0xff]  ;;  %v1392_v19 = vld [vmem:[%s4759_s1 + $0xb0] sm:$0xff] }
  0x2d   : > { %246 = vst [vmem:[#allocation2 + $0xf8] sm:$0xff] %v3112_v2  ;;  %1853 = vmatpush.msrb.mxu3 %v1433_v20  ;;  %1627 = vmatpush.msrb.mxu1 %v1401_v21  ;;  %v1407_v20 = vld [vmem:[%s4759_s1 + $0x128] sm:$0xff]  ;;  %v3667_v21 = vld [vmem:[%s3172_s30 + $0x30] sm:$0xff] }
  0x2e   : > { %247 = vst [vmem:[#allocation2 + $0x100] sm:$0xff] %v3112_v2  ;;  %1741 = vmatpush.msrb.mxu2 %v1416_v22  ;;  %1966 = vmatpush.msrb.mxu0 %v1449_v27  ;;  %v1406_v27 = vld [vmem:[%s4759_s1 + $0x120] sm:$0xff] }
  0x2f   : > { %248 = vst [vmem:[#allocation2 + $0x108] sm:$0xff] %v3112_v2  ;;  %1854 = vmatpush.msrb.mxu3 %v1432_v23  ;;  %1628 = vmatpush.msrb.mxu1 %v1400_v24  ;;  %v1423_v23 = vld [vmem:[%s4759_s1 + $0x1a8] sm:$0xff]  ;;  %v1441_v24 = vld [vmem:[%s4759_s1 + $0x238] sm:$0xff] }
  0x30   : > { %249 = vst [vmem:[#allocation2 + $0x110] sm:$0xff] %v3112_v2  ;;  %1742 = vmatpush.msrb.mxu2 %v1415_v25  ;;  %1967 = vmatpush.msrb.mxu0 %v1448_v31  ;;  %v532_v25 = vld [vmem:[%s3172_s30 + $0x158] sm:$0xff]  ;;  %v525_v31 = vld [vmem:[%s3172_s30 + $0x108] sm:$0xff] }
  0x31   : > { %250 = vst [vmem:[#allocation2 + $0x118] sm:$0xff] %v3112_v2  ;;  %1855 = vmatpush.msrb.mxu3 %v1431_v26  ;;  %1629 = vmatpush.msrb.mxu1 %v1399_v28  ;;  %v1391_v26 = vld [vmem:[%s4759_s1 + $0xa8] sm:$0xff]  ;;  %v1422_v28 = vld [vmem:[%s4759_s1 + $0x1a0] sm:$0xff] }
  0x32   : > { %251 = vst [vmem:[#allocation2 + $0x120] sm:$0xff] %v3112_v2  ;;  %1743 = vmatpush.msrb.mxu2 %v1414_v29  ;;  %1968 = vmatpush.msrb.mxu0 %v1447_v35  ;;  %v1440_v29 = vld [vmem:[%s4759_s1 + $0x230] sm:$0xff]  ;;  %v533_v35 = vld [vmem:[%s3172_s30 + $0x168] sm:$0xff] }
  0x33   : > { %252 = vst [vmem:[#allocation2 + $0x128] sm:$0xff] %v3112_v2  ;;  %1856 = vmatpush.msrb.mxu3 %v1430_v30  ;;  %1630 = vmatpush.msrb.mxu1 %v1398_v32  ;;  %v3693_v30 = vld [vmem:[%s3172_s30 + $0xa8] sm:$0xff] }
  0x34   : > { %253 = vst [vmem:[#allocation2 + $0x130] sm:$0xff] %v3112_v2  ;;  %1744 = vmatpush.msrb.mxu2 %v1413_v33  ;;  %1969 = vmatpush.msrb.mxu0 %v1446_v39  ;;  %v3700_v33 = vld [vmem:[%s3172_s30 + $0x38] sm:$0xff] }
  0x35   : > { %254 = vst [vmem:[#allocation2 + $0x138] sm:$0xff] %v3112_v2  ;;  %1857 = vmatpush.msrb.mxu3 %v1429_v34  ;;  %1631 = vmatpush.msrb.mxu1 %v1397_v36  ;;  %v1405_v39 = vld [vmem:[%s4759_s1 + $0x118] sm:$0xff] }
  0x36   : > { %255 = vst [vmem:[#allocation2 + $0x140] sm:$0xff] %v3112_v2  ;;  %1745 = vmatpush.msrb.mxu2 %v1412_v37  ;;  %1970 = vmatpush.msrb.mxu0 %v1445_v49  ;;  %v3707_v37 = vld [vmem:[%s3172_s30 + $0xb0] sm:$0xff]  ;;  %v509_v49 = vld [vmem:[%s3172_s30 + $0x48] sm:$0xff] }
  0x37   : > { %256 = vst [vmem:[#allocation2 + $0x148] sm:$0xff] %v3112_v2  ;;  %1858 = vmatpush.msrb.mxu3 %v1428_v38  ;;  %1632 = vmatpush.msrb.mxu1 %v1396_v46  ;;  %v1390_v38 = vld [vmem:[%s4759_s1 + $0xa0] sm:$0xff]  ;;  %v1404_v46 = vld [vmem:[%s4759_s1 + $0x110] sm:$0xff] }
  0x38   : > { %257 = vst [vmem:[#allocation2 + $0x150] sm:$0xff] %v3112_v2  ;;  %1746 = vmatpush.msrb.mxu2 %v1411_v47  ;;  %1971 = vmatpush.msrb.mxu0 %v1444_v53  ;;  %v1420_v47 = vld [vmem:[%s4759_s1 + $0x190] sm:$0xff] }
  0x39   : > { %258 = vst [vmem:[#allocation2 + $0x158] sm:$0xff] %v3112_v2  ;;  %1859 = vmatpush.msrb.mxu3 %v1427_v48  ;;  %1633 = vmatpush.msrb.mxu1 %v1395_v50  ;;  %v1438_v48 = vld [vmem:[%s4759_s1 + $0x220] sm:$0xff]  ;;  %v534_v50 = vld [vmem:[%s3172_s30 + $0x170] sm:$0xff] }
  0x3a   : > { %259 = vst [vmem:[#allocation2 + $0x160] sm:$0xff] %v3112_v2  ;;  %1747 = vmatpush.msrb.mxu2 %v1410_v51  ;;  %1972 = vmatpush.msrb.mxu0 %v1443_v4  ;;  %v510_v4 = vld [vmem:[%s3172_s30 + $0x50] sm:$0xff] }
  0x3b   : > { %260 = vst [vmem:[#allocation2 + $0x168] sm:$0xff] %v3112_v2  ;;  %1860 = vmatpush.msrb.mxu3 %v1426_v52  ;;  %1634 = vmatpush.msrb.mxu1 %v1394_v0  ;;  %v1402_v0 = vld [vmem:[%s4759_s1 + $0x100] sm:$0xff] }
  0x3c   : > { %261 = vst [vmem:[#allocation2 + $0x170] sm:$0xff] %v3112_v2  ;;  %1748 = vmatpush.msrb.mxu2 %v1409_v1  ;;  %1973 = vmatpush.msrb.mxu0 %v1442_v10  ;;  %v1418_v1 = vld [vmem:[%s4759_s1 + $0x180] sm:$0xff]  ;;  %v633_v10 = vld [vmem:[%s3172_s30 + $0xa] sm:$0xff] }
  0x3d   : > { %262 = vst [vmem:[#allocation2 + $0x178] sm:$0xff] %v3112_v2  ;;  %1861 = vmatpush.msrb.mxu3 %v1425_v3  ;;  %1635 = vmatpush.msrb.mxu1 %v1393_v6  ;;  %v1386_v3 = vld [vmem:[%s4759_s1 + $0x80] sm:$0xff] }
  0x3e   : > { %263 = vst [vmem:[#allocation2 + $0x180] sm:$0xff] %v3112_v2  ;;  %1749 = vmatpush.msrb.mxu2 %v1408_v7  ;;  %1974 = vmatpush.msrb.mxu0 %v1441_v24  ;;  %v635_v24 = vld [vmem:[%s3172_s30 + $0x22] sm:$0xff] }
  0x3f   : > { %264 = vst [vmem:[#allocation2 + $0x188] sm:$0xff] %v3112_v2  ;;  %1862 = vmatpush.msrb.mxu3 %v1424_v9  ;;  %1636 = vmatpush.msrb.mxu1 %v1392_v19  ;;  %v569_v9 = vld [vmem:[%s3172_s30 + $0x9] sm:$0xff] }
  0x40   : > { %265 = vst [vmem:[#allocation2 + $0x190] sm:$0xff] %v3112_v2  ;;  %1750 = vmatpush.msrb.mxu2 %v1407_v20  ;;  %1975 = vmatpush.msrb.mxu0 %v1440_v29  ;;  %v2885_v29 = vld [vmem:[%s3172_s30 + $0x31] sm:$0xff] }
  0x41   : > { %266 = vst [vmem:[#allocation2 + $0x198] sm:$0xff] %v3112_v2  ;;  %1863 = vmatpush.msrb.mxu3 %v1423_v23  ;;  %1637 = vmatpush.msrb.mxu1 %v1391_v26 }
  0x42   : > { %267 = vst [vmem:[#allocation2 + $0x1a0] sm:$0xff] %v3112_v2  ;;  %1751 = vmatpush.msrb.mxu2 %v1406_v27  ;;  %v1496_v27 = vld [vmem:[%s4759_s1 + $0x3f0] sm:$0xff] }
  0x43   : > { %268 = vst [vmem:[#allocation2 + $0x1a8] sm:$0xff] %v3112_v2  ;;  %1864 = vmatpush.msrb.mxu3 %v1422_v28  ;;  %1638 = vmatpush.msrb.mxu1 %v1390_v38  ;;  %v1464_v28 = vld [vmem:[%s4759_s1 + $0x2f0] sm:$0xff] }
  0x44   : > { %269 = vst [vmem:[#allocation2 + $0x1b0] sm:$0xff] %v3112_v2  ;;  %1752 = vmatpush.msrb.mxu2 %v1405_v39 }
  0x45   : > { %270 = vst [vmem:[#allocation2 + $0x1b8] sm:$0xff] %v3112_v2 }
  0x46   : > { %271 = vst [vmem:[#allocation2 + $0x1c0] sm:$0xff] %v3112_v2  ;;  %1753 = vmatpush.msrb.mxu2 %v1404_v46  ;;  %v2887_v46 = vld [vmem:[%s3172_s30 + $0x49] sm:$0xff] }
  0x47   : > { %272 = vst [vmem:[#allocation2 + $0x1c8] sm:$0xff] %v3112_v2 }
  0x48   : > { %273 = vst [vmem:[#allocation2 + $0x1d0] sm:$0xff] %v3112_v2 }
  0x49   : > { %274 = vst [vmem:[#allocation2 + $0x1d8] sm:$0xff] %v3112_v2 }
  0x4a   : > { %275 = vst [vmem:[#allocation2 + $0x1e0] sm:$0xff] %v3112_v2 }
  0x4b   : > { %276 = vst [vmem:[#allocation2 + $0x1e8] sm:$0xff] %v3112_v2 }
  0x4c   : > { %277 = vst [vmem:[#allocation2 + $0x1f0] sm:$0xff] %v3112_v2 }
  0x4d   : > { %278 = vst [vmem:[#allocation2 + $0x1f8] sm:$0xff] %v3112_v2 }
  0x4e   : > { %279 = vst [vmem:[#allocation2 + $0x200] sm:$0xff] %v3112_v2 }
  0x4f   : > { %280 = vst [vmem:[#allocation2 + $0x208] sm:$0xff] %v3112_v2 }
  0x50   : > { %281 = vst [vmem:[#allocation2 + $0x210] sm:$0xff] %v3112_v2 }
  0x51   : > { %282 = vst [vmem:[#allocation2 + $0x218] sm:$0xff] %v3112_v2 }
  0x52   : > { %283 = vst [vmem:[#allocation2 + $0x220] sm:$0xff] %v3112_v2 }
  0x53   : > { %284 = vst [vmem:[#allocation2 + $0x228] sm:$0xff] %v3112_v2 }
  0x54   : > { %285 = vst [vmem:[#allocation2 + $0x230] sm:$0xff] %v3112_v2 }
  0x55   : > { %286 = vst [vmem:[#allocation2 + $0x238] sm:$0xff] %v3112_v2 }
  0x56   : > { %288 = vst [vmem:[#allocation2 + $0x248] sm:$0xff] %v3112_v2 }
  0x57   : > { %289 = vst [vmem:[#allocation2 + $0x250] sm:$0xff] %v3112_v2 }
  0x58   : > { %290 = vst [vmem:[#allocation2 + $0x258] sm:$0xff] %v3112_v2 }
  0x59   : > { %291 = vst [vmem:[#allocation2 + $0x260] sm:$0xff] %v3112_v2 }
  0x5a   : > { %292 = vst [vmem:[#allocation2 + $0x268] sm:$0xff] %v3112_v2 }
  0x5b   : > { %293 = vst [vmem:[#allocation2 + $0x270] sm:$0xff] %v3112_v2 }
  0x5c   : > { %294 = vst [vmem:[#allocation2 + $0x278] sm:$0xff] %v3112_v2 }
  0x5d   : > { %295 = vst [vmem:[#allocation2 + $0x280] sm:$0xff] %v3112_v2 }
  0x5e   : > { %296 = vst [vmem:[#allocation2 + $0x288] sm:$0xff] %v3112_v2 }
  0x5f   : > { %297 = vst [vmem:[#allocation2 + $0x290] sm:$0xff] %v3112_v2 }
  0x60   : > { %298 = vst [vmem:[#allocation2 + $0x298] sm:$0xff] %v3112_v2 }
  0x61   : > { %299 = vst [vmem:[#allocation2 + $0x2a0] sm:$0xff] %v3112_v2 }
  0x62   : > { %300 = vst [vmem:[#allocation2 + $0x2a8] sm:$0xff] %v3112_v2 }
  0x63   : > { %301 = vst [vmem:[#allocation2 + $0x2b0] sm:$0xff] %v3112_v2 }
  0x64   : > { %302 = vst [vmem:[#allocation2 + $0x2b8] sm:$0xff] %v3112_v2 }
  0x65   : > { %303 = vst [vmem:[#allocation2 + $0x2c0] sm:$0xff] %v3112_v2 }
  0x66   : > { %304 = vst [vmem:[#allocation2 + $0x2c8] sm:$0xff] %v3112_v2 }
  0x67   : > { %305 = vst [vmem:[#allocation2 + $0x2d0] sm:$0xff] %v3112_v2 }
  0x68   : > { %306 = vst [vmem:[#allocation2 + $0x2d8] sm:$0xff] %v3112_v2 }
  0x69   : > { %307 = vst [vmem:[#allocation2 + $0x2e0] sm:$0xff] %v3112_v2 }
  0x6a   : > { %308 = vst [vmem:[#allocation2 + $0x2e8] sm:$0xff] %v3112_v2 }
  0x6b   : > { %309 = vst [vmem:[#allocation2 + $0x2f0] sm:$0xff] %v3112_v2 }
  0x6c   : > { %310 = vst [vmem:[#allocation2 + $0x2f8] sm:$0xff] %v3112_v2 }
  0x6d   : > { %311 = vst [vmem:[#allocation2 + $0x300] sm:$0xff] %v3112_v2 }
  0x6e   : > { %312 = vst [vmem:[#allocation2 + $0x308] sm:$0xff] %v3112_v2 }
  0x6f   : > { %313 = vst [vmem:[#allocation2 + $0x310] sm:$0xff] %v3112_v2 }
  0x70   : > { %314 = vst [vmem:[#allocation2 + $0x318] sm:$0xff] %v3112_v2 }
  0x71   : > { %315 = vst [vmem:[#allocation2 + $0x320] sm:$0xff] %v3112_v2 }
  0x72   : > { %316 = vst [vmem:[#allocation2 + $0x328] sm:$0xff] %v3112_v2 }
  0x73   : > { %317 = vst [vmem:[#allocation2 + $0x330] sm:$0xff] %v3112_v2 }
  0x74   : > { %318 = vst [vmem:[#allocation2 + $0x338] sm:$0xff] %v3112_v2 }
  0x75   : > { %319 = vst [vmem:[#allocation2 + $0x340] sm:$0xff] %v3112_v2 }
  0x76   : > { %320 = vst [vmem:[#allocation2 + $0x348] sm:$0xff] %v3112_v2 }
  0x77   : > { %321 = vst [vmem:[#allocation2 + $0x350] sm:$0xff] %v3112_v2 }
  0x78   : > { %322 = vst [vmem:[#allocation2 + $0x358] sm:$0xff] %v3112_v2 }
  0x79   : > { %323 = vst [vmem:[#allocation2 + $0x360] sm:$0xff] %v3112_v2 }
  0x7a   : > { %324 = vst [vmem:[#allocation2 + $0x368] sm:$0xff] %v3112_v2 }
  0x7b   : > { %325 = vst [vmem:[#allocation2 + $0x370] sm:$0xff] %v3112_v2 }
  0x7c   : > { %326 = vst [vmem:[#allocation2 + $0x378] sm:$0xff] %v3112_v2 }
  0x7d   : > { %327 = vst [vmem:[#allocation2 + $0x380] sm:$0xff] %v3112_v2 }
  0x7e   : > { %328 = vst [vmem:[#allocation2 + $0x388] sm:$0xff] %v3112_v2 }
  0x7f   : > { %329 = vst [vmem:[#allocation2 + $0x390] sm:$0xff] %v3112_v2 }
  0x80   : > { %330 = vst [vmem:[#allocation2 + $0x398] sm:$0xff] %v3112_v2 }
  0x81   : > { %331 = vst [vmem:[#allocation2 + $0x3a0] sm:$0xff] %v3112_v2 }
  0x82   : > { %332 = vst [vmem:[#allocation2 + $0x3a8] sm:$0xff] %v3112_v2 }
  0x83   : > { %333 = vst [vmem:[#allocation2 + $0x3b0] sm:$0xff] %v3112_v2 }
  0x84   : > { %334 = vst [vmem:[#allocation2 + $0x3b8] sm:$0xff] %v3112_v2 }
  0x85   : > { %335 = vst [vmem:[#allocation2 + $0x3c0] sm:$0xff] %v3112_v2 }
  0x86   : > { %336 = vst [vmem:[#allocation2 + $0x3c8] sm:$0xff] %v3112_v2 }
  0x87   : > { %337 = vst [vmem:[#allocation2 + $0x3d0] sm:$0xff] %v3112_v2 }
  0x88   : > { %338 = vst [vmem:[#allocation2 + $0x3d8] sm:$0xff] %v3112_v2 }
  0x89   : > { %339 = vst [vmem:[#allocation2 + $0x3e0] sm:$0xff] %v3112_v2 }
  0x8a   : > { %340 = vst [vmem:[#allocation2 + $0x3e8] sm:$0xff] %v3112_v2 }
  0x8b   : > { %341 = vst [vmem:[#allocation2 + $0x3f0] sm:$0xff] %v3112_v2 }
  0x8c   : > { %342 = vst [vmem:[#allocation2 + $0x3f8] sm:$0xff] %v3112_v2 }
  0x8d   : > { %343 = vst [vmem:[#allocation2 + $0x400] sm:$0xff] %v3112_v2 }
  0x8e   : > { %344 = vst [vmem:[#allocation2 + $0x408] sm:$0xff] %v3112_v2 }
  0x8f   : > { %345 = vst [vmem:[#allocation2 + $0x410] sm:$0xff] %v3112_v2 }
  0x90   : > { %346 = vst [vmem:[#allocation2 + $0x418] sm:$0xff] %v3112_v2 }
  0x91   : > { %347 = vst [vmem:[#allocation2 + $0x420] sm:$0xff] %v3112_v2 }
  0x92   : > { %348 = vst [vmem:[#allocation2 + $0x428] sm:$0xff] %v3112_v2 }
  0x93   : > { %349 = vst [vmem:[#allocation2 + $0x430] sm:$0xff] %v3112_v2 }
  0x94   : > { %350 = vst [vmem:[#allocation2 + $0x438] sm:$0xff] %v3112_v2 }
  0x95   : > { %351 = vst [vmem:[#allocation2 + $0x440] sm:$0xff] %v3112_v2 }
  0x96   : > { %352 = vst [vmem:[#allocation2 + $0x448] sm:$0xff] %v3112_v2 }
  0x97   : > { %353 = vst [vmem:[#allocation2 + $0x450] sm:$0xff] %v3112_v2 }
  0x98   : > { %354 = vst [vmem:[#allocation2 + $0x458] sm:$0xff] %v3112_v2 }
  0x99   : > { %355 = vst [vmem:[#allocation2 + $0x460] sm:$0xff] %v3112_v2 }
  0x9a   : > { %356 = vst [vmem:[#allocation2 + $0x468] sm:$0xff] %v3112_v2 }
  0x9b   : > { %357 = vst [vmem:[#allocation2 + $0x470] sm:$0xff] %v3112_v2 }
  0x9c   : > { %358 = vst [vmem:[#allocation2 + $0x478] sm:$0xff] %v3112_v2 }
  0x9d   : > { %359 = vst [vmem:[#allocation2 + $0x480] sm:$0xff] %v3112_v2 }
  0x9e   : > { %360 = vst [vmem:[#allocation2 + $0x488] sm:$0xff] %v3112_v2 }
  0x9f   : > { %361 = vst [vmem:[#allocation2 + $0x490] sm:$0xff] %v3112_v2 }
  0xa0   : > { %362 = vst [vmem:[#allocation2 + $0x498] sm:$0xff] %v3112_v2 }
  0xa1   : > { %363 = vst [vmem:[#allocation2 + $0x4a0] sm:$0xff] %v3112_v2 }
  0xa2   : > { %364 = vst [vmem:[#allocation2 + $0x4a8] sm:$0xff] %v3112_v2 }
  0xa3   : > { %365 = vst [vmem:[#allocation2 + $0x4b0] sm:$0xff] %v3112_v2 }
  0xa4   : > { %366 = vst [vmem:[#allocation2 + $0x4b8] sm:$0xff] %v3112_v2 }
  0xa5   : > { %367 = vst [vmem:[#allocation2 + $0x4c0] sm:$0xff] %v3112_v2 }
  0xa6   : > { %368 = vst [vmem:[#allocation2 + $0x4c8] sm:$0xff] %v3112_v2 }
  0xa7   : > { %369 = vst [vmem:[#allocation2 + $0x4d0] sm:$0xff] %v3112_v2 }
  0xa8   : > { %370 = vst [vmem:[#allocation2 + $0x4d8] sm:$0xff] %v3112_v2 }
  0xa9   : > { %371 = vst [vmem:[#allocation2 + $0x4e0] sm:$0xff] %v3112_v2 }
  0xaa   : > { %372 = vst [vmem:[#allocation2 + $0x4e8] sm:$0xff] %v3112_v2 }
  0xab   : > { %373 = vst [vmem:[#allocation2 + $0x4f0] sm:$0xff] %v3112_v2 }
  0xac   : > { %374 = vst [vmem:[#allocation2 + $0x4f8] sm:$0xff] %v3112_v2 }
  0xad   : > { %375 = vst [vmem:[#allocation2 + $0x500] sm:$0xff] %v3112_v2 }
  0xae   : > { %376 = vst [vmem:[#allocation2 + $0x508] sm:$0xff] %v3112_v2 }
  0xaf   : > { %377 = vst [vmem:[#allocation2 + $0x510] sm:$0xff] %v3112_v2 }
  0xb0   : > { %378 = vst [vmem:[#allocation2 + $0x518] sm:$0xff] %v3112_v2 }
  0xb1   : > { %379 = vst [vmem:[#allocation2 + $0x520] sm:$0xff] %v3112_v2 }
  0xb2   : > { %380 = vst [vmem:[#allocation2 + $0x528] sm:$0xff] %v3112_v2 }
  0xb3   : > { %381 = vst [vmem:[#allocation2 + $0x530] sm:$0xff] %v3112_v2 }
  0xb4   : > { %382 = vst [vmem:[#allocation2 + $0x538] sm:$0xff] %v3112_v2 }
  0xb5   : > { %383 = vst [vmem:[#allocation2 + $0x540] sm:$0xff] %v3112_v2 }
  0xb6   : > { %384 = vst [vmem:[#allocation2 + $0x548] sm:$0xff] %v3112_v2 }
  0xb7   : > { %385 = vst [vmem:[#allocation2 + $0x550] sm:$0xff] %v3112_v2 }
  0xb8   : > { %386 = vst [vmem:[#allocation2 + $0x558] sm:$0xff] %v3112_v2 }
  0xb9   : > { %387 = vst [vmem:[#allocation2 + $0x560] sm:$0xff] %v3112_v2 }
  0xba   : > { %388 = vst [vmem:[#allocation2 + $0x568] sm:$0xff] %v3112_v2 }
  0xbb   : > { %389 = vst [vmem:[#allocation2 + $0x570] sm:$0xff] %v3112_v2 }
  0xbc   : > { %390 = vst [vmem:[#allocation2 + $0x578] sm:$0xff] %v3112_v2 }
  0xbd   : > { %391 = vst [vmem:[#allocation2 + $0x580] sm:$0xff] %v3112_v2 }
  0xbe   : > { %392 = vst [vmem:[#allocation2 + $0x588] sm:$0xff] %v3112_v2 }
  0xbf   : > { %393 = vst [vmem:[#allocation2 + $0x590] sm:$0xff] %v3112_v2 }
  0xc0   : > { %394 = vst [vmem:[#allocation2 + $0x598] sm:$0xff] %v3112_v2 }
  0xc1   : > { %395 = vst [vmem:[#allocation2 + $0x5a0] sm:$0xff] %v3112_v2 }
  0xc2   : > { %396 = vst [vmem:[#allocation2 + $0x5a8] sm:$0xff] %v3112_v2 }
  0xc3   : > { %397 = vst [vmem:[#allocation2 + $0x5b0] sm:$0xff] %v3112_v2 }
  0xc4   : > { %398 = vst [vmem:[#allocation2 + $0x5b8] sm:$0xff] %v3112_v2 }
  0xc5   : > { %399 = vst [vmem:[#allocation2 + $0x5c0] sm:$0xff] %v3112_v2 }
  0xc6   : > { %400 = vst [vmem:[#allocation2 + $0x5c8] sm:$0xff] %v3112_v2 }
  0xc7   : > { %401 = vst [vmem:[#allocation2 + $0x5d0] sm:$0xff] %v3112_v2 }
  0xc8   : > { %402 = vst [vmem:[#allocation2 + $0x5d8] sm:$0xff] %v3112_v2 }
  0xc9   : > { %403 = vst [vmem:[#allocation2 + $0x5e0] sm:$0xff] %v3112_v2 }
  0xca   : > { %404 = vst [vmem:[#allocation2 + $0x5e8] sm:$0xff] %v3112_v2 }
  0xcb   : > { %405 = vst [vmem:[#allocation2 + $0x5f0] sm:$0xff] %v3112_v2 }
  0xcc   : > { %406 = vst [vmem:[#allocation2 + $0x5f8] sm:$0xff] %v3112_v2 }
  0xcd   : > { %407 = vst [vmem:[#allocation2 + $0x600] sm:$0xff] %v3112_v2 }
  0xce   : > { %408 = vst [vmem:[#allocation2 + $0x608] sm:$0xff] %v3112_v2 }
  0xcf   : > { %409 = vst [vmem:[#allocation2 + $0x610] sm:$0xff] %v3112_v2 }
  0xd0   : > { %410 = vst [vmem:[#allocation2 + $0x618] sm:$0xff] %v3112_v2 }
  0xd1   : > { %411 = vst [vmem:[#allocation2 + $0x620] sm:$0xff] %v3112_v2 }
  0xd2   : > { %412 = vst [vmem:[#allocation2 + $0x628] sm:$0xff] %v3112_v2 }
  0xd3   : > { %413 = vst [vmem:[#allocation2 + $0x630] sm:$0xff] %v3112_v2 }
  0xd4   : > { %414 = vst [vmem:[#allocation2 + $0x638] sm:$0xff] %v3112_v2 }
  0xd5   : > { %415 = vst [vmem:[#allocation2 + $0x640] sm:$0xff] %v3112_v2 }
  0xd6   : > { %416 = vst [vmem:[#allocation2 + $0x648] sm:$0xff] %v3112_v2 }
  0xd7   : > { %417 = vst [vmem:[#allocation2 + $0x650] sm:$0xff] %v3112_v2 }
  0xd8   : > { %418 = vst [vmem:[#allocation2 + $0x658] sm:$0xff] %v3112_v2 }
  0xd9   : > { %419 = vst [vmem:[#allocation2 + $0x660] sm:$0xff] %v3112_v2 }
  0xda   : > { %420 = vst [vmem:[#allocation2 + $0x668] sm:$0xff] %v3112_v2 }
  0xdb   : > { %421 = vst [vmem:[#allocation2 + $0x670] sm:$0xff] %v3112_v2 }
  0xdc   : > { %422 = vst [vmem:[#allocation2 + $0x678] sm:$0xff] %v3112_v2 }
  0xdd   : > { %423 = vst [vmem:[#allocation2 + $0x680] sm:$0xff] %v3112_v2 }
  0xde   : > { %424 = vst [vmem:[#allocation2 + $0x688] sm:$0xff] %v3112_v2 }
  0xdf   : > { %425 = vst [vmem:[#allocation2 + $0x690] sm:$0xff] %v3112_v2 }
  0xe0   : > { %426 = vst [vmem:[#allocation2 + $0x698] sm:$0xff] %v3112_v2 }
  0xe1   : > { %427 = vst [vmem:[#allocation2 + $0x6a0] sm:$0xff] %v3112_v2 }
  0xe2   : > { %428 = vst [vmem:[#allocation2 + $0x6a8] sm:$0xff] %v3112_v2 }
  0xe3   : > { %429 = vst [vmem:[#allocation2 + $0x6b0] sm:$0xff] %v3112_v2 }
  0xe4   : > { %430 = vst [vmem:[#allocation2 + $0x6b8] sm:$0xff] %v3112_v2 }
  0xe5   : > { %431 = vst [vmem:[#allocation2 + $0x6c0] sm:$0xff] %v3112_v2 }
  0xe6   : > { %432 = vst [vmem:[#allocation2 + $0x6c8] sm:$0xff] %v3112_v2 }
  0xe7   : > { %433 = vst [vmem:[#allocation2 + $0x6d0] sm:$0xff] %v3112_v2 }
  0xe8   : > { %434 = vst [vmem:[#allocation2 + $0x6d8] sm:$0xff] %v3112_v2 }
  0xe9   : > { %435 = vst [vmem:[#allocation2 + $0x6e0] sm:$0xff] %v3112_v2 }
  0xea   : > { %436 = vst [vmem:[#allocation2 + $0x6e8] sm:$0xff] %v3112_v2 }
  0xeb   : > { %437 = vst [vmem:[#allocation2 + $0x6f0] sm:$0xff] %v3112_v2 }
  0xec   : > { %438 = vst [vmem:[#allocation2 + $0x6f8] sm:$0xff] %v3112_v2 }
  0xed   : > { %439 = vst [vmem:[#allocation2 + $0x700] sm:$0xff] %v3112_v2 }
  0xee   : > { %440 = vst [vmem:[#allocation2 + $0x708] sm:$0xff] %v3112_v2 }
  0xef   : > { %441 = vst [vmem:[#allocation2 + $0x710] sm:$0xff] %v3112_v2 }
  0xf0   : > { %442 = vst [vmem:[#allocation2 + $0x718] sm:$0xff] %v3112_v2 }
  0xf1   : > { %443 = vst [vmem:[#allocation2 + $0x720] sm:$0xff] %v3112_v2 }
  0xf2   : > { %444 = vst [vmem:[#allocation2 + $0x728] sm:$0xff] %v3112_v2 }
  0xf3   : > { %445 = vst [vmem:[#allocation2 + $0x730] sm:$0xff] %v3112_v2 }
  0xf4   : > { %446 = vst [vmem:[#allocation2 + $0x738] sm:$0xff] %v3112_v2 }
  0xf5   : > { %447 = vst [vmem:[#allocation2 + $0x740] sm:$0xff] %v3112_v2 }
  0xf6   : > { %448 = vst [vmem:[#allocation2 + $0x748] sm:$0xff] %v3112_v2 }
  0xf7   : > { %449 = vst [vmem:[#allocation2 + $0x750] sm:$0xff] %v3112_v2 }
  0xf8   : > { %450 = vst [vmem:[#allocation2 + $0x758] sm:$0xff] %v3112_v2 }
  0xf9   : > { %451 = vst [vmem:[#allocation2 + $0x760] sm:$0xff] %v3112_v2 }
  0xfa   : > { %452 = vst [vmem:[#allocation2 + $0x768] sm:$0xff] %v3112_v2 }
  0xfb   : > { %453 = vst [vmem:[#allocation2 + $0x770] sm:$0xff] %v3112_v2 }
  0xfc   : > { %454 = vst [vmem:[#allocation2 + $0x778] sm:$0xff] %v3112_v2 }
  0xfd   : > { %455 = vst [vmem:[#allocation2 + $0x780] sm:$0xff] %v3112_v2 }
  0xfe   : > { %456 = vst [vmem:[#allocation2 + $0x788] sm:$0xff] %v3112_v2 }
  0xff   : > { %457 = vst [vmem:[#allocation2 + $0x790] sm:$0xff] %v3112_v2 }
 0x100   : > { %458 = vst [vmem:[#allocation2 + $0x798] sm:$0xff] %v3112_v2 }
 0x101   : > { %459 = vst [vmem:[#allocation2 + $0x7a0] sm:$0xff] %v3112_v2 }
 0x102   : > { %460 = vst [vmem:[#allocation2 + $0x7a8] sm:$0xff] %v3112_v2 }
 0x103   : > { %461 = vst [vmem:[#allocation2 + $0x7b0] sm:$0xff] %v3112_v2 }
 0x104   : > { %462 = vst [vmem:[#allocation2 + $0x7b8] sm:$0xff] %v3112_v2 }
 0x105   : > { %463 = vst [vmem:[#allocation2 + $0x7c0] sm:$0xff] %v3112_v2 }
 0x106   : > { %464 = vst [vmem:[#allocation2 + $0x7c8] sm:$0xff] %v3112_v2 }
 0x107   : > { %465 = vst [vmem:[#allocation2 + $0x7d0] sm:$0xff] %v3112_v2 }
 0x108   : > { %466 = vst [vmem:[#allocation2 + $0x7d8] sm:$0xff] %v3112_v2 }
 0x109   : > { %467 = vst [vmem:[#allocation2 + $0x7e0] sm:$0xff] %v3112_v2 }
 0x10a   : > { %468 = vst [vmem:[#allocation2 + $0x7e8] sm:$0xff] %v3112_v2 }
 0x10b   : > { %469 = vst [vmem:[#allocation2 + $0x7f0] sm:$0xff] %v3112_v2 }
 0x10c   : > { %470 = vst [vmem:[#allocation2 + $0x7f8] sm:$0xff] %v3112_v2 }
 0x10d   : > { %471 = vst [vmem:[#allocation2 + $0x800] sm:$0xff] %v3112_v2 }
 0x10e   : > { %472 = vst [vmem:[#allocation2 + $0x808] sm:$0xff] %v3112_v2 }
 0x10f   : > { %473 = vst [vmem:[#allocation2 + $0x810] sm:$0xff] %v3112_v2 }
 0x110   : > { %474 = vst [vmem:[#allocation2 + $0x818] sm:$0xff] %v3112_v2 }
 0x111   : > { %475 = vst [vmem:[#allocation2 + $0x820] sm:$0xff] %v3112_v2 }
 0x112   : > { %476 = vst [vmem:[#allocation2 + $0x828] sm:$0xff] %v3112_v2 }
 0x113   : > { %477 = vst [vmem:[#allocation2 + $0x830] sm:$0xff] %v3112_v2 }
 0x114   : > { %478 = vst [vmem:[#allocation2 + $0x838] sm:$0xff] %v3112_v2 }
 0x115   : > { %479 = vst [vmem:[#allocation2 + $0x840] sm:$0xff] %v3112_v2 }
 0x116   : > { %480 = vst [vmem:[#allocation2 + $0x848] sm:$0xff] %v3112_v2 }
 0x117   : > { %481 = vst [vmem:[#allocation2 + $0x850] sm:$0xff] %v3112_v2 }
 0x118   : > { %482 = vst [vmem:[#allocation2 + $0x858] sm:$0xff] %v3112_v2 }
 0x119   : > { %483 = vst [vmem:[#allocation2 + $0x860] sm:$0xff] %v3112_v2 }
 0x11a   : > { %484 = vst [vmem:[#allocation2 + $0x868] sm:$0xff] %v3112_v2 }
 0x11b   : > { %485 = vst [vmem:[#allocation2 + $0x870] sm:$0xff] %v3112_v2 }
 0x11c   : > { %486 = vst [vmem:[#allocation2 + $0x878] sm:$0xff] %v3112_v2 }
 0x11d   : > { %487 = vst [vmem:[#allocation2 + $0x880] sm:$0xff] %v3112_v2 }
 0x11e   : > { %488 = vst [vmem:[#allocation2 + $0x888] sm:$0xff] %v3112_v2 }
 0x11f   : > { %489 = vst [vmem:[#allocation2 + $0x890] sm:$0xff] %v3112_v2 }
 0x120   : > { %490 = vst [vmem:[#allocation2 + $0x898] sm:$0xff] %v3112_v2 }
 0x121   : > { %491 = vst [vmem:[#allocation2 + $0x8a0] sm:$0xff] %v3112_v2 }
 0x122   : > { %492 = vst [vmem:[#allocation2 + $0x8a8] sm:$0xff] %v3112_v2 }
 0x123   : > { %493 = vst [vmem:[#allocation2 + $0x8b0] sm:$0xff] %v3112_v2 }
 0x124   : > { %494 = vst [vmem:[#allocation2 + $0x8b8] sm:$0xff] %v3112_v2 }
 0x125   : > { %495 = vst [vmem:[#allocation2 + $0x8c0] sm:$0xff] %v3112_v2 }
 0x126   : > { %496 = vst [vmem:[#allocation2 + $0x8c8] sm:$0xff] %v3112_v2 }
 0x127   : > { %497 = vst [vmem:[#allocation2 + $0x8d0] sm:$0xff] %v3112_v2 }
 0x128   : > { %498 = vst [vmem:[#allocation2 + $0x8d8] sm:$0xff] %v3112_v2 }
 0x129   : > { %499 = vst [vmem:[#allocation2 + $0x8e0] sm:$0xff] %v3112_v2 }
 0x12a   : > { %500 = vst [vmem:[#allocation2 + $0x8e8] sm:$0xff] %v3112_v2 }
 0x12b   : > { %501 = vst [vmem:[#allocation2 + $0x8f0] sm:$0xff] %v3112_v2 }
 0x12c   : > { %502 = vst [vmem:[#allocation2 + $0x8f8] sm:$0xff] %v3112_v2 }
 0x12d   : > { %552 = vst.msk [vmem:[#allocation2 + $0x480] sm:$0xff] %vm535_vm0, %v519_v40  ;;  %v526_v40 = vld [vmem:[%s3172_s30 + $0x110] sm:$0xff] }
 0x12e   : > { %560 = vst.msk [vmem:[#allocation2 + $0x6c0] sm:$0xff] %vm535_vm0, %v527_v41 }
 0x12f   : > { %545 = vst.msk [vmem:[#allocation2 + $0x288] sm:$0xff] %vm535_vm0, %v3558_v42 }
 0x130   : > { %553 = vst.msk [vmem:[#allocation2 + $0x4c8] sm:$0xff] %vm535_vm0, %v520_v43  ;;  %v1421_v43 = vld [vmem:[%s4759_s1 + $0x198] sm:$0xff] }
 0x131   : > { %536 = vst.msk [vmem:[#allocation2] sm:$0xff] %vm535_vm0, %v503_v44  ;;  %v1439_v44 = vld [vmem:[%s4759_s1 + $0x228] sm:$0xff]  ;;  %1865 = vmatpush.msrb.mxu3 %v1421_v43 }
 0x132   : > { %561 = vst.msk [vmem:[#allocation2 + $0x708] sm:$0xff] %vm535_vm0, %v528_v45  ;;  %v1389_v45 = vld [vmem:[%s4759_s1 + $0x98] sm:$0xff]  ;;  %1976 = vmatpush.msrb.mxu0 %v1439_v44  ;;  %v1495_v44 = vld [vmem:[%s4759_s1 + $0x3e8] sm:$0xff] }
 0x133   : > { %546 = vst.msk [vmem:[#allocation2 + $0x2d0] sm:$0xff] %vm535_vm0, %v3593_v54  ;;  %1639 = vmatpush.msrb.mxu1 %v1389_v45  ;;  %1866 = vmatpush.msrb.mxu3 %v1420_v47  ;;  %v1463_v45 = vld [vmem:[%s4759_s1 + $0x2e8] sm:$0xff] }
 0x134   : > { %v1226_v59 = vld [vmem:[#allocation2 + $0x480] sm:$0xff]  ;;  %554 = vst.msk [vmem:[#allocation2 + $0x510] sm:$0xff] %vm535_vm0, %v521_v55  ;;  %1977 = vmatpush.msrb.mxu0 %v1438_v48 }
 0x135   : > { %1578 = vmatmul.f32.vlgmr.msra.gmra.mxu2 %v1226_v59  ;;  %v1298_v62 = vld [vmem:[#allocation2 + $0x6c0] sm:$0xff]  ;;  %537 = vst.msk [vmem:[#allocation2 + $0x48] sm:$0xff] %vm535_vm0, %v504_v56  ;;  %v1403_v59 = vld [vmem:[%s4759_s1 + $0x108] sm:$0xff] }
 0x136   : > { %1602 = vmatmul.f32.vlgmr.msra.gmra.mxu3 %v1298_v62  ;;  %v1163_v2 = vld [vmem:[#allocation2 + $0x288] sm:$0xff]  ;;  %562 = vst.msk [vmem:[#allocation2 + $0x750] sm:$0xff] %vm535_vm0, %v529_v57  ;;  %v1388_v57 = vld [vmem:[%s4759_s1 + $0x90] sm:$0xff]  ;;  %v1437_v62 = vld [vmem:[%s4759_s1 + $0x218] sm:$0xff]  ;;  %1754 = vmatpush.msrb.mxu2 %v1403_v59 }
 0x137   : > { %1557 = vmatmul.f32.gmra.mxu1 %v1163_v2  ;;  %547 = vst.msk [vmem:[#allocation2 + $0x318] sm:$0xff] %vm535_vm0, %v3603_v58  ;;  %v1235_v12 = vld [vmem:[#allocation2 + $0x4c8] sm:$0xff]  ;;  %1978 = vmatpush.msrb.mxu0 %v1437_v62  ;;  %v1436_v2 = vld [vmem:[%s4759_s1 + $0x210] sm:$0xff] }
 0x138   : > { %v1082_v8 = vld [vmem:[#allocation2] sm:$0xff]  ;;  %555 = vst.msk [vmem:[#allocation2 + $0x558] sm:$0xff] %vm535_vm0, %v522_v60  ;;  %1640 = vmatpush.msrb.mxu1 %v1388_v57  ;;  %1755 = vmatpush.msrb.mxu2 %v1402_v0 }
 0x139   : > { %1530 = vmatmul.f32.vlgmr.msra.gmra.mxu0 %v1082_v8  ;;  %538 = vst.msk [vmem:[#allocation2 + $0x90] sm:$0xff] %vm535_vm0, %v3608_v61  ;;  %v1307_v14 = vld [vmem:[#allocation2 + $0x708] sm:$0xff]  ;;  %v1462_v0 = vld [vmem:[%s4759_s1 + $0x2e0] sm:$0xff] }
 0x13a   : > { %563 = vst.msk [vmem:[#allocation2 + $0x798] sm:$0xff] %vm535_vm0, %v530_v63  ;;  %v1172_v16 = vld [vmem:[#allocation2 + $0x2d0] sm:$0xff]  ;;  %v568_v55 = vld [vmem:[%s3172_s30 + $0x1] sm:$0xff]  ;;  %1979 = vmatpush.msrb.mxu0 %v1436_v2 }
 0x13b   : > { %548 = vst.msk [vmem:[#allocation2 + $0x360] sm:$0xff] %vm535_vm0, %v3628_v5  ;;  %v1244_v32 = vld [vmem:[#allocation2 + $0x510] sm:$0xff]  ;;  %v632_v56 = vld [vmem:[%s3172_s30 + $0x2] sm:$0xff] }
 0x13c   : > { %556 = vst.msk [vmem:[#allocation2 + $0x5a0] sm:$0xff] %vm535_vm0, %v523_v11  ;;  %v1091_v22 = vld [vmem:[#allocation2 + $0x48] sm:$0xff] }
 0x13d   : > { %1581 = vmatmul.f32.gmra.mxu2 %v1235_v12  ;;  %539 = vst.msk [vmem:[#allocation2 + $0xd8] sm:$0xff] %vm535_vm0, %v3648_v13  ;;  %v1316_v34 = vld [vmem:[#allocation2 + $0x750] sm:$0xff]  ;;  %v1387_v63 = vld [vmem:[%s4759_s1 + $0x88] sm:$0xff]  ;;  %v1481_v12 = vld [vmem:[%s4759_s1 + $0x378] sm:$0xff] }
 0x13e   : > { %1605 = vmatmul.f32.gmra.mxu3 %v1307_v14  ;;  %564 = vst.msk [vmem:[#allocation2 + $0x7e0] sm:$0xff] %vm535_vm0, %v531_v15  ;;  %v1181_v36 = vld [vmem:[#allocation2 + $0x318] sm:$0xff]  ;;  %1641 = vmatpush.msrb.mxu1 %v1387_v63  ;;  %v1434_v15 = vld [vmem:[%s4759_s1 + $0x200] sm:$0xff] }
 0x13f   : > { %1560 = vmatmul.f32.gmra.mxu1 %v1172_v16  ;;  %549 = vst.msk [vmem:[#allocation2 + $0x3a8] sm:$0xff] %vm535_vm0, %v3655_v17  ;;  %v1253_v51 = vld [vmem:[#allocation2 + $0x558] sm:$0xff]  ;;  %2192 = vmatpush.msra.mxu2 %v1481_v12  ;;  %v1494_v63 = vld [vmem:[%s4759_s1 + $0x3e0] sm:$0xff] }
 0x140   : > { %557 = vst.msk [vmem:[#allocation2 + $0x5e8] sm:$0xff] %vm535_vm0, %v524_v18  ;;  %v1100_v41 = vld [vmem:[#allocation2 + $0x90] sm:$0xff]  ;;  %1642 = vmatpush.msrb.mxu1 %v1386_v3  ;;  %v1497_v14 = vld [vmem:[%s4759_s1 + $0x3f8] sm:$0xff] }
 0x141   : > { %1533 = vmatmul.f32.gmra.mxu0 %v1091_v22  ;;  %540 = vst.msk [vmem:[#allocation2 + $0x120] sm:$0xff] %vm535_vm0, %v3667_v21  ;;  %v1325_v52 = vld [vmem:[#allocation2 + $0x798] sm:$0xff] }
 0x142   : > { %565 = vst.msk [vmem:[#allocation2 + $0x828] sm:$0xff] %vm535_vm0, %v532_v25  ;;  %v1190_v53 = vld [vmem:[#allocation2 + $0x360] sm:$0xff]  ;;  %v1513_v22 = vld [vmem:[%s4759_s1 + $0x478] sm:$0xff]  ;;  %v1480_v25 = vld [vmem:[%s4759_s1 + $0x370] sm:$0xff] }
 0x143   : > { %550 = vst.msk [vmem:[#allocation2 + $0x3f0] sm:$0xff] %vm535_vm0, %v3693_v30  ;;  %v1262_v6 = vld [vmem:[#allocation2 + $0x5a0] sm:$0xff]  ;;  %2193 = vmatpush.msra.mxu2 %v1480_v25 }
 0x144   : > { %558 = vst.msk [vmem:[#allocation2 + $0x630] sm:$0xff] %vm535_vm0, %v525_v31  ;;  %v1109_v60 = vld [vmem:[#allocation2 + $0xd8] sm:$0xff]  ;;  %v643_v25 = vld [vmem:[%s3172_s30 + $0x82] sm:$0xff] }
 0x145   : > { %1584 = vmatmul.f32.gmra.mxu2 %v1244_v32  ;;  %541 = vst.msk [vmem:[#allocation2 + $0x168] sm:$0xff] %vm535_vm0, %v3700_v33  ;;  %v1334_v7 = vld [vmem:[#allocation2 + $0x7e0] sm:$0xff] }
 0x146   : > { %1608 = vmatmul.f32.gmra.mxu3 %v1316_v34  ;;  %566 = vst.msk [vmem:[#allocation2 + $0x870] sm:$0xff] %vm535_vm0, %v533_v35  ;;  %v1199_v8 = vld [vmem:[#allocation2 + $0x3a8] sm:$0xff]  ;;  %v2883_v16 = vld [vmem:[%s3172_s30 + $0x19] sm:$0xff]  ;;  %v1512_v35 = vld [vmem:[%s4759_s1 + $0x470] sm:$0xff] }
 0x147   : > { %1563 = vmatmul.f32.gmra.mxu1 %v1181_v36  ;;  %551 = vst.msk [vmem:[#allocation2 + $0x438] sm:$0xff] %vm535_vm0, %v3707_v37  ;;  %v1271_v18 = vld [vmem:[#allocation2 + $0x5e8] sm:$0xff]  ;;  %v2886_v36 = vld [vmem:[%s3172_s30 + $0x39] sm:$0xff] }
 0x148   : > { %559 = vst.msk [vmem:[#allocation2 + $0x678] sm:$0xff] %vm535_vm0, %v526_v40  ;;  %v1118_v11 = vld [vmem:[#allocation2 + $0x120] sm:$0xff] }
 0x149   : > { %1536 = vmatmul.f32.gmra.mxu0 %v1100_v41  ;;  %729 = vst.msk [vmem:[#allocation2 + $0x18] sm:$0xff] %vm535_vm0, %v3608_v61  ;;  %v1419_v61 = vld [vmem:[%s4759_s1 + $0x188] sm:$0xff]  ;;  %v637_v40 = vld [vmem:[%s3172_s30 + $0x3a] sm:$0xff] }
 0x14a   : > { %542 = vst.msk [vmem:[#allocation2 + $0x1b0] sm:$0xff] %vm535_vm0, %v509_v49  ;;  %1867 = vmatpush.msrb.mxu3 %v1419_v61  ;;  %v1343_v19 = vld [vmem:[#allocation2 + $0x828] sm:$0xff]  ;;  %v1208_v20 = vld [vmem:[#allocation2 + $0x3f0] sm:$0xff]  ;;  %v1478_v61 = vld [vmem:[%s4759_s1 + $0x360] sm:$0xff] }
 0x14b   : > { %567 = vst.msk [vmem:[#allocation2 + $0x8b8] sm:$0xff] %vm535_vm0, %v534_v50  ;;  %v1479_v41 = vld [vmem:[%s4759_s1 + $0x368] sm:$0xff] }
 0x14c   : > { %730 = vst.msk [vmem:[#allocation2 + $0x60] sm:$0xff] %vm535_vm0, %v3648_v13  ;;  %1868 = vmatpush.msrb.mxu3 %v1418_v1  ;;  %v1435_v13 = vld [vmem:[%s4759_s1 + $0x208] sm:$0xff]  ;;  %2194 = vmatpush.msra.mxu2 %v1479_v41 }
 0x14d   : > { %1587 = vmatmul.f32.gmra.mxu2 %v1253_v51  ;;  %600 = vst.msk [vmem:[#allocation2 + $0x8] sm:$0xff] %vm535_vm0, %v568_v55  ;;  %1980 = vmatpush.msrb.mxu0 %v1435_v13  ;;  %v638_v50 = vld [vmem:[%s3172_s30 + $0x4a] sm:$0xff]  ;;  %v2889_v1 = vld [vmem:[%s3172_s30 + $0x61] sm:$0xff] }
 0x14e   : > { %1611 = vmatmul.f32.gmra.mxu3 %v1325_v52  ;;  %664 = vst.msk [vmem:[#allocation2 + $0x10] sm:$0xff] %vm535_vm0, %v632_v56  ;;  %v1217_v23 = vld [vmem:[#allocation2 + $0x438] sm:$0xff]  ;;  %v1511_v52 = vld [vmem:[%s4759_s1 + $0x468] sm:$0xff]  ;;  %2195 = vmatpush.msra.mxu2 %v1478_v61 }
 0x14f   : > { %1566 = vmatmul.f32.gmra.mxu1 %v1190_v53  ;;  %731 = vst.msk [vmem:[#allocation2 + $0xa8] sm:$0xff] %vm535_vm0, %v3667_v21  ;;  %2305 = vmatpush.msra.mxu3 %v1497_v14  ;;  %v634_v21 = vld [vmem:[%s3172_s30 + $0x1a] sm:$0xff]  ;;  %v2888_v55 = vld [vmem:[%s3172_s30 + $0x51] sm:$0xff] }
 0x150   : > { %732 = vst.msk [vmem:[#allocation2 + $0xf0] sm:$0xff] %vm535_vm0, %v3700_v33  ;;  %1981 = vmatpush.msrb.mxu0 %v1434_v15  ;;  %v636_v33 = vld [vmem:[%s3172_s30 + $0x32] sm:$0xff]  ;;  %v2857_v53 = vld [vmem:[%s3172_s30 + $0x60] sm:$0xff]  ;;  %v641_v13 = vld [vmem:[%s3172_s30 + $0x6a] sm:$0xff] }
 0x151   : > { %1539 = vmatmul.f32.gmra.mxu0 %v1109_v60  ;;  %733 = vst.msk [vmem:[#allocation2 + $0x138] sm:$0xff] %vm535_vm0, %v509_v49  ;;  %v1136_v26 = vld [vmem:[#allocation2 + $0x1b0] sm:$0xff]  ;;  %2306 = vmatpush.msra.mxu3 %v1496_v27  ;;  %v1085_v38 = vld [vmem:[#allocation2 + $0x18] sm:$0xff] }
 0x152   : > { %543 = vst.msk [vmem:[#allocation2 + $0x1f8] sm:$0xff] %vm535_vm0, %v510_v4  ;;  %2418 = vmatpush.msra.mxu0 %v1513_v22  ;;  %v1361_v31 = vld [vmem:[#allocation2 + $0x8b8] sm:$0xff] }
 0x153   : > { %734 = vst.msk [vmem:[#allocation2 + $0x180] sm:$0xff] %vm535_vm0, %v510_v4  ;;  %2307 = vmatpush.msra.mxu3 %v1495_v44  ;;  %v1094_v48 = vld [vmem:[#allocation2 + $0x60] sm:$0xff]  ;;  %v639_v60 = vld [vmem:[%s3172_s30 + $0x52] sm:$0xff] }
 0x154   : > { %736 = vst.msk [vmem:[#allocation2 + $0x210] sm:$0xff] %vm535_vm0, %v3558_v42  ;;  %v1465_v42 = vld [vmem:[%s4759_s1 + $0x2f8] sm:$0xff]  ;;  %v1083_v32 = vld [vmem:[#allocation2 + $0x8] sm:$0xff]  ;;  %2419 = vmatpush.msra.mxu0 %v1512_v35 }
 0x155   : > { %1590 = vmatmul.f32.gmra.mxu2 %v1262_v6  ;;  %601 = vst.msk [vmem:[#allocation2 + $0x50] sm:$0xff] %vm535_vm0, %v569_v9  ;;  %2079 = vmatpush.msra.mxu1 %v1465_v42  ;;  %v640_v6 = vld [vmem:[%s3172_s30 + $0x62] sm:$0xff]  ;;  %v1477_v14 = vld [vmem:[%s4759_s1 + $0x358] sm:$0xff] }
 0x156   : > { %1614 = vmatmul.f32.gmra.mxu3 %v1334_v7  ;;  %665 = vst.msk [vmem:[#allocation2 + $0x58] sm:$0xff] %vm535_vm0, %v633_v10  ;;  %2420 = vmatpush.msra.mxu0 %v1511_v52  ;;  %v1103_v57 = vld [vmem:[#allocation2 + $0xa8] sm:$0xff]  ;;  %v1493_v15 = vld [vmem:[%s4759_s1 + $0x3d8] sm:$0xff] }
 0x157   : > { %1569 = vmatmul.f32.gmra.mxu1 %v1199_v8  ;;  %737 = vst.msk [vmem:[#allocation2 + $0x258] sm:$0xff] %vm535_vm0, %v3593_v54  ;;  %v1127_v54 = vld [vmem:[#allocation2 + $0x168] sm:$0xff]  ;;  %2308 = vmatpush.msra.mxu3 %v1494_v63  ;;  %v1112_v3 = vld [vmem:[#allocation2 + $0xf0] sm:$0xff]  ;;  %v1510_v8 = vld [vmem:[%s4759_s1 + $0x460] sm:$0xff] }
 0x158   : > { %793 = vst.msk [vmem:[#allocation2 + $0x20] sm:$0xff] %vm535_vm0, %v2883_v16  ;;  %2080 = vmatpush.msra.mxu1 %v1464_v28  ;;  %v2890_v9 = vld [vmem:[%s3172_s30 + $0x69] sm:$0xff]  ;;  %2421 = vmatpush.msra.mxu0 %v1510_v8  ;;  %v644_v35 = vld [vmem:[%s3172_s30 + $0x92] sm:$0xff]  ;;  %v645_v44 = vld [vmem:[%s3172_s30 + $0x9a] sm:$0xff] }
 0x159   : > { %1542 = vmatmul.f32.gmra.mxu0 %v1118_v11  ;;  %602 = vst.msk [vmem:[#allocation2 + $0x98] sm:$0xff] %vm535_vm0, %v2883_v16  ;;  %v1145_v34 = vld [vmem:[#allocation2 + $0x1f8] sm:$0xff]  ;;  %2196 = vmatpush.msra.mxu2 %v1477_v14  ;;  %v1492_v28 = vld [vmem:[%s4759_s1 + $0x3d0] sm:$0xff]  ;;  %v2865_v63 = vld [vmem:[%s3172_s30 + $0xc0] sm:$0xff] }
 0x15a   : > { %738 = vst.msk [vmem:[#allocation2 + $0x2a0] sm:$0xff] %vm535_vm0, %v3603_v58  ;;  %v2884_v58 = vld [vmem:[%s3172_s30 + $0x21] sm:$0xff]  ;;  %2081 = vmatpush.msra.mxu1 %v1463_v45  ;;  %v1121_v11 = vld [vmem:[#allocation2 + $0x138] sm:$0xff]  ;;  %2309 = vmatpush.msra.mxu3 %v1493_v15 }
 0x15b   : > { %739 = vst.msk [vmem:[#allocation2 + $0x2e8] sm:$0xff] %vm535_vm0, %v3628_v5  ;;  %v1280_v5 = vld [vmem:[#allocation2 + $0x630] sm:$0xff]  ;;  %v2891_v16 = vld [vmem:[%s3172_s30 + $0x79] sm:$0xff]  ;;  %v1475_v45 = vld [vmem:[%s4759_s1 + $0x348] sm:$0xff] }
 0x15c   : > { %740 = vst.msk [vmem:[#allocation2 + $0x330] sm:$0xff] %vm535_vm0, %v3655_v17  ;;  %v1352_v17 = vld [vmem:[#allocation2 + $0x870] sm:$0xff]  ;;  %2082 = vmatpush.msra.mxu1 %v1462_v0  ;;  %2310 = vmatpush.msra.mxu3 %v1492_v28  ;;  %v2897_v14 = vld [vmem:[%s3172_s30 + $0xc1] sm:$0xff] }
 0x15d   : > { %1593 = vmatmul.f32.gmra.mxu2 %v1271_v18  ;;  %666 = vst.msk [vmem:[#allocation2 + $0xa0] sm:$0xff] %vm535_vm0, %v634_v21  ;;  %v1092_v39 = vld [vmem:[#allocation2 + $0x50] sm:$0xff]  ;;  %v1093_v47 = vld [vmem:[#allocation2 + $0x58] sm:$0xff]  ;;  %v1458_v15 = vld [vmem:[%s4759_s1 + $0x2c0] sm:$0xff] }
 0x15e   : > { %1617 = vmatmul.f32.gmra.mxu3 %v1343_v19  ;;  %741 = vst.msk [vmem:[#allocation2 + $0x378] sm:$0xff] %vm535_vm0, %v3693_v30  ;;  %v1289_v30 = vld [vmem:[#allocation2 + $0x678] sm:$0xff] }
 0x15f   : > { %1572 = vmatmul.f32.gmra.mxu1 %v1208_v20  ;;  %794 = vst.msk [vmem:[#allocation2 + $0x68] sm:$0xff] %vm535_vm0, %v2884_v58  ;;  %v1086_v43 = vld [vmem:[#allocation2 + $0x20] sm:$0xff]  ;;  %v1461_v18 = vld [vmem:[%s4759_s1 + $0x2d8] sm:$0xff] }
 0x160   : > { %603 = vst.msk [vmem:[#allocation2 + $0xe0] sm:$0xff] %vm535_vm0, %v2884_v58  ;;  %v1101_v49 = vld [vmem:[#allocation2 + $0x98] sm:$0xff]  ;;  %2083 = vmatpush.msra.mxu1 %v1461_v18  ;;  %v1130_v20 = vld [vmem:[#allocation2 + $0x180] sm:$0xff] }
 0x161   : > { %1545 = vmatmul.f32.gmra.mxu0 %v1127_v54  ;;  %742 = vst.msk [vmem:[#allocation2 + $0x3c0] sm:$0xff] %vm535_vm0, %v3707_v37  ;;  %v1084_v37 = vld [vmem:[#allocation2 + $0x10] sm:$0xff]  ;;  %v642_v54 = vld [vmem:[%s3172_s30 + $0x7a] sm:$0xff] }
 0x162   : > { %667 = vst.msk [vmem:[#allocation2 + $0xe8] sm:$0xff] %vm535_vm0, %v635_v24  ;;  %v1509_v58 = vld [vmem:[%s4759_s1 + $0x458] sm:$0xff] }
 0x163   : > { %795 = vst.msk [vmem:[#allocation2 + $0xb0] sm:$0xff] %vm535_vm0, %v2885_v29  ;;  %2422 = vmatpush.msra.mxu0 %v1509_v58  ;;  %v2896_v0 = vld [vmem:[%s3172_s30 + $0xb1] sm:$0xff] }
 0x164   : > { %604 = vst.msk [vmem:[#allocation2 + $0x128] sm:$0xff] %vm535_vm0, %v2885_v29  ;;  %v1102_v56 = vld [vmem:[#allocation2 + $0xa0] sm:$0xff]  ;;  %v2893_v29 = vld [vmem:[%s3172_s30 + $0x91] sm:$0xff] }
 0x165   : > { %1596 = vmatmul.f32.gmra.mxu2 %v1280_v5  ;;  %668 = vst.msk [vmem:[#allocation2 + $0x130] sm:$0xff] %vm535_vm0, %v636_v33  ;;  %v2892_v5 = vld [vmem:[%s3172_s30 + $0x81] sm:$0xff]  ;;  %v1148_v33 = vld [vmem:[#allocation2 + $0x210] sm:$0xff] }
 0x166   : > { %1620 = vmatmul.f32.gmra.mxu3 %v1352_v17  ;;  %796 = vst.msk [vmem:[#allocation2 + $0xf8] sm:$0xff] %vm535_vm0, %v2886_v36  ;;  %v1095_v51 = vld [vmem:[#allocation2 + $0x68] sm:$0xff]  ;;  %v647_v8 = vld [vmem:[%s3172_s30 + $0xb2] sm:$0xff] }
 0x167   : > { %1575 = vmatmul.f32.gmra.mxu1 %v1217_v23  ;;  %605 = vst.msk [vmem:[#allocation2 + $0x170] sm:$0xff] %vm535_vm0, %v2886_v36  ;;  %v1110_v59 = vld [vmem:[#allocation2 + $0xe0] sm:$0xff] }
 0x168   : > { %669 = vst.msk [vmem:[#allocation2 + $0x178] sm:$0xff] %vm535_vm0, %v637_v40  ;;  %v1157_v40 = vld [vmem:[#allocation2 + $0x258] sm:$0xff] }
 0x169   : > { %1548 = vmatmul.f32.gmra.mxu0 %v1136_v26  ;;  %797 = vst.msk [vmem:[#allocation2 + $0x140] sm:$0xff] %vm535_vm0, %v2887_v46  ;;  %v1111_v2 = vld [vmem:[#allocation2 + $0xe8] sm:$0xff]  ;;  %v1476_v26 = vld [vmem:[%s4759_s1 + $0x350] sm:$0xff] }
 0x16a   : > { %606 = vst.msk [vmem:[#allocation2 + $0x1b8] sm:$0xff] %vm535_vm0, %v2887_v46  ;;  %v1104_v62 = vld [vmem:[#allocation2 + $0xb0] sm:$0xff]  ;;  %2197 = vmatpush.msra.mxu2 %v1476_v26 }
 0x16b   : > { %670 = vst.msk [vmem:[#allocation2 + $0x1c0] sm:$0xff] %vm535_vm0, %v638_v50  ;;  %v1119_v4 = vld [vmem:[#allocation2 + $0x128] sm:$0xff] }
 0x16c   : > { %735 = vst.msk [vmem:[#allocation2 + $0x1c8] sm:$0xff] %vm535_vm0, %v2857_v53  ;;  %v1120_v10 = vld [vmem:[#allocation2 + $0x130] sm:$0xff]  ;;  %2198 = vmatpush.msra.mxu2 %v1475_v45 }
 0x16d   : > { %1599 = vmatmul.f32.gmra.mxu2 %v1289_v30  ;;  %798 = vst.msk [vmem:[#allocation2 + $0x188] sm:$0xff] %vm535_vm0, %v2888_v55  ;;  %v1113_v7 = vld [vmem:[#allocation2 + $0xf8] sm:$0xff]  ;;  %v1460_v30 = vld [vmem:[%s4759_s1 + $0x2d0] sm:$0xff] }
 0x16e   : > { %1623 = vmatmul.f32.gmra.mxu3 %v1361_v31  ;;  %607 = vst.msk [vmem:[#allocation2 + $0x200] sm:$0xff] %vm535_vm0, %v2888_v55  ;;  %v1128_v12 = vld [vmem:[#allocation2 + $0x170] sm:$0xff]  ;;  %2084 = vmatpush.msra.mxu1 %v1460_v30  ;;  %v1166_v55 = vld [vmem:[#allocation2 + $0x2a0] sm:$0xff] }
 0x16f   : > { %1643 = vmatmul.f32.vlgmr.msrb.gmra.mxu1 %v1083_v32  ;;  %671 = vst.msk [vmem:[#allocation2 + $0x208] sm:$0xff] %vm535_vm0, %v639_v60  ;;  %v1129_v19 = vld [vmem:[#allocation2 + $0x178] sm:$0xff]  ;;  %v3935_v32 = vpop.f32.mrf.mxu1  ;;  %v649_v30 = vld [vmem:[%s3172_s30 + $0xca] sm:$0xff] }
 0x170   : > { %799 = vst.msk [vmem:[#allocation2 + $0x1d0] sm:$0xff] %vm535_vm0, %v2889_v1  ;;  %v1122_v42 = vld [vmem:[#allocation2 + $0x140] sm:$0xff] }
 0x171   : > { %1551 = vmatmul.f32.gmra.mxu0 %v1145_v34  ;;  %608 = vst.msk [vmem:[#allocation2 + $0x248] sm:$0xff] %vm535_vm0, %v2889_v1  ;;  %v1137_v21 = vld [vmem:[#allocation2 + $0x1b8] sm:$0xff] }
 0x172   : > { %672 = vst.msk [vmem:[#allocation2 + $0x250] sm:$0xff] %vm535_vm0, %v640_v6  ;;  %v1138_v17 = vld [vmem:[#allocation2 + $0x1c0] sm:$0xff] }
 0x173   : > { %800 = vst.msk [vmem:[#allocation2 + $0x218] sm:$0xff] %vm535_vm0, %v2890_v9  ;;  %v1139_v23 = vld [vmem:[#allocation2 + $0x1c8] sm:$0xff] }
 0x174   : > { %609 = vst.msk [vmem:[#allocation2 + $0x290] sm:$0xff] %vm535_vm0, %v2890_v9  ;;  %v1131_v22 = vld [vmem:[#allocation2 + $0x188] sm:$0xff]  ;;  %v1474_v9 = vld [vmem:[%s4759_s1 + $0x340] sm:$0xff] }
 0x175   : > { %1756 = vmatmul.f32.vlgmr.msrb.gmra.mxu2 %v1084_v37  ;;  %673 = vst.msk [vmem:[#allocation2 + $0x298] sm:$0xff] %vm535_vm0, %v641_v13  ;;  %v1146_v24 = vld [vmem:[#allocation2 + $0x200] sm:$0xff]  ;;  %v1508_v37 = vld [vmem:[%s4759_s1 + $0x450] sm:$0xff]  ;;  %v2866_v13 = vld [vmem:[%s3172_s30 + $0xc8] sm:$0xff] }
 0x176   : > { %1869 = vmatmul.f32.vlgmr.msrb.gmra.mxu3 %v1085_v38  ;;  %801 = vst.msk [vmem:[#allocation2 + $0x260] sm:$0xff] %vm535_vm0, %v2891_v16  ;;  %v1147_v31 = vld [vmem:[#allocation2 + $0x208] sm:$0xff]  ;;  %v2894_v38 = vld [vmem:[%s3172_s30 + $0x99] sm:$0xff]  ;;  %2423 = vmatpush.msra.mxu0 %v1508_v37 }
 0x177   : > { %1646 = vmatmul.f32.gmra.mxu1 %v1092_v39  ;;  %610 = vst.msk [vmem:[#allocation2 + $0x2d8] sm:$0xff] %vm535_vm0, %v2891_v16  ;;  %v1140_v27 = vld [vmem:[#allocation2 + $0x1d0] sm:$0xff]  ;;  %2199 = vmatpush.msra.mxu2 %v1474_v9  ;;  %v2899_v37 = vld [vmem:[%s3172_s30 + $0xd9] sm:$0xff] }
 0x178   : > { %674 = vst.msk [vmem:[#allocation2 + $0x2e0] sm:$0xff] %vm535_vm0, %v642_v54  ;;  %v1155_v34 = vld [vmem:[#allocation2 + $0x248] sm:$0xff] }
 0x179   : > { %1982 = vmatmul.f32.vlgmr.msrb.gmra.mxu0 %v1086_v43  ;;  %802 = vst.msk [vmem:[#allocation2 + $0x2a8] sm:$0xff] %vm535_vm0, %v2892_v5  ;;  %v1156_v39 = vld [vmem:[#allocation2 + $0x250] sm:$0xff]  ;;  %v648_v54 = vld [vmem:[%s3172_s30 + $0xc2] sm:$0xff] }
 0x17a   : > { %611 = vst.msk [vmem:[#allocation2 + $0x320] sm:$0xff] %vm535_vm0, %v2892_v5  ;;  %v1149_v36 = vld [vmem:[#allocation2 + $0x218] sm:$0xff]  ;;  %v1506_v5 = vld [vmem:[%s4759_s1 + $0x440] sm:$0xff] }
 0x17b   : > { %675 = vst.msk [vmem:[#allocation2 + $0x328] sm:$0xff] %vm535_vm0, %v643_v25  ;;  %v1164_v43 = vld [vmem:[#allocation2 + $0x290] sm:$0xff] }
 0x17c   : > { %803 = vst.msk [vmem:[#allocation2 + $0x2f0] sm:$0xff] %vm535_vm0, %v2893_v29  ;;  %v1165_v53 = vld [vmem:[#allocation2 + $0x298] sm:$0xff] }
 0x17d   : > { %1759 = vmatmul.f32.gmra.mxu2 %v1093_v47  ;;  %612 = vst.msk [vmem:[#allocation2 + $0x368] sm:$0xff] %vm535_vm0, %v2893_v29  ;;  %v1158_v47 = vld [vmem:[#allocation2 + $0x260] sm:$0xff] }
 0x17e   : > { %1872 = vmatmul.f32.gmra.mxu3 %v1094_v48  ;;  %676 = vst.msk [vmem:[#allocation2 + $0x370] sm:$0xff] %vm535_vm0, %v644_v35  ;;  %v1491_v48 = vld [vmem:[%s4759_s1 + $0x3c8] sm:$0xff]  ;;  %v1489_v35 = vld [vmem:[%s4759_s1 + $0x3b8] sm:$0xff] }
 0x17f   : > { %1649 = vmatmul.f32.gmra.mxu1 %v1101_v49  ;;  %804 = vst.msk [vmem:[#allocation2 + $0x338] sm:$0xff] %vm535_vm0, %v2894_v38  ;;  %v2895_v49 = vld [vmem:[%s3172_s30 + $0xa9] sm:$0xff]  ;;  %2311 = vmatpush.msra.mxu3 %v1491_v48  ;;  %v650_v48 = vld [vmem:[%s3172_s30 + $0xda] sm:$0xff] }
 0x180   : > { %613 = vst.msk [vmem:[#allocation2 + $0x3b0] sm:$0xff] %vm535_vm0, %v2894_v38  ;;  %v1167_v61 = vld [vmem:[#allocation2 + $0x2a8] sm:$0xff] }
 0x181   : > { %1985 = vmatmul.f32.gmra.mxu0 %v1095_v51  ;;  %677 = vst.msk [vmem:[#allocation2 + $0x3b8] sm:$0xff] %vm535_vm0, %v645_v44  ;;  %v1459_v51 = vld [vmem:[%s4759_s1 + $0x2c8] sm:$0xff]  ;;  %v1202_v44 = vld [vmem:[#allocation2 + $0x3c0] sm:$0xff] }
 0x182   : > { %805 = vst.msk [vmem:[#allocation2 + $0x380] sm:$0xff] %vm535_vm0, %v2895_v49  ;;  %2085 = vmatpush.msra.mxu1 %v1459_v51  ;;  %v1183_v18 = vld [vmem:[#allocation2 + $0x328] sm:$0xff] }
 0x183   : > { %614 = vst.msk [vmem:[#allocation2 + $0x3f8] sm:$0xff] %vm535_vm0, %v2895_v49 }
 0x184   : > { %743 = vst.msk [vmem:[#allocation2 + $0x408] sm:$0xff] %vm535_vm0, %v2865_v63  ;;  %2086 = vmatpush.msra.mxu1 %v1458_v15 }
 0x185   : > { %1762 = vmatmul.f32.gmra.mxu2 %v1102_v56  ;;  %806 = vst.msk [vmem:[#allocation2 + $0x3c8] sm:$0xff] %vm535_vm0, %v2896_v0  ;;  %v1192_v26 = vld [vmem:[#allocation2 + $0x370] sm:$0xff] }
 0x186   : > { %1875 = vmatmul.f32.gmra.mxu3 %v1103_v57  ;;  %v1173_v57 = vld [vmem:[#allocation2 + $0x2d8] sm:$0xff]  ;;  %615 = vst.msk [vmem:[#allocation2 + $0x440] sm:$0xff] %vm535_vm0, %v2896_v0 }
 0x187   : > { %1652 = vmatmul.f32.gmra.mxu1 %v1110_v59  ;;  %v646_v59 = vld [vmem:[%s3172_s30 + $0xaa] sm:$0xff]  ;;  %679 = vst.msk [vmem:[#allocation2 + $0x448] sm:$0xff] %vm535_vm0, %v647_v8  ;;  %v1185_v58 = vld [vmem:[#allocation2 + $0x338] sm:$0xff] }
 0x188   : > { %678 = vst.msk [vmem:[#allocation2 + $0x400] sm:$0xff] %vm535_vm0, %v646_v59  ;;  %v1200_v29 = vld [vmem:[#allocation2 + $0x3b0] sm:$0xff] }
 0x189   : > { %1988 = vmatmul.f32.gmra.mxu0 %v1104_v62  ;;  %v1507_v62 = vld [vmem:[%s4759_s1 + $0x448] sm:$0xff]  ;;  %744 = vst.msk [vmem:[#allocation2 + $0x450] sm:$0xff] %vm535_vm0, %v2866_v13  ;;  %v2901_v13 = vld [vmem:[%s3172_s30 + $0xf1] sm:$0xff] }
 0x18a   : > { %2424 = vmatpush.msra.mxu0 %v1507_v62  ;;  %807 = vst.msk [vmem:[#allocation2 + $0x410] sm:$0xff] %vm535_vm0, %v2897_v14 }
 0x18b   : > { %616 = vst.msk [vmem:[#allocation2 + $0x488] sm:$0xff] %vm535_vm0, %v2897_v14  ;;  %v1211_v63 = vld [vmem:[#allocation2 + $0x408] sm:$0xff] }
 0x18c   : > { %680 = vst.msk [vmem:[#allocation2 + $0x490] sm:$0xff] %vm535_vm0, %v648_v54  ;;  %2425 = vmatpush.msra.mxu0 %v1506_v5  ;;  %v1203_v51 = vld [vmem:[#allocation2 + $0x3c8] sm:$0xff]  ;;  %v652_v5 = vld [vmem:[%s3172_s30 + $0xf2] sm:$0xff] }
 0x18d   : > { %1765 = vmatmul.f32.gmra.mxu2 %v1111_v2  ;;  %681 = vst.msk [vmem:[#allocation2 + $0x4d8] sm:$0xff] %vm535_vm0, %v649_v30 }
 0x18e   : > { %1878 = vmatmul.f32.gmra.mxu3 %v1112_v3  ;;  %v1174_v3 = vld [vmem:[#allocation2 + $0x2e0] sm:$0xff]  ;;  %809 = vst.msk [vmem:[#allocation2 + $0x4a0] sm:$0xff] %vm535_vm0, %v2899_v37 }
 0x18f   : > { %1655 = vmatmul.f32.gmra.mxu1 %v1119_v4  ;;  %v1175_v4 = vld [vmem:[#allocation2 + $0x2e8] sm:$0xff]  ;;  %618 = vst.msk [vmem:[#allocation2 + $0x518] sm:$0xff] %vm535_vm0, %v2899_v37  ;;  %v1210_v62 = vld [vmem:[#allocation2 + $0x400] sm:$0xff] }
 0x190   : > { %682 = vst.msk [vmem:[#allocation2 + $0x520] sm:$0xff] %vm535_vm0, %v650_v48  ;;  %v1487_v48 = vld [vmem:[%s4759_s1 + $0x3a8] sm:$0xff] }
 0x191   : > { %1991 = vmatmul.f32.gmra.mxu0 %v1113_v7  ;;  %v1182_v7 = vld [vmem:[#allocation2 + $0x320] sm:$0xff]  ;;  %v1212_v9 = vld [vmem:[#allocation2 + $0x410] sm:$0xff]  ;;  %811 = vst.msk [vmem:[#allocation2 + $0x530] sm:$0xff] %vm535_vm0, %v2901_v13 }
 0x192   : > { %620 = vst.msk [vmem:[#allocation2 + $0x5a8] sm:$0xff] %vm535_vm0, %v2901_v13 }
 0x193   : > { %684 = vst.msk [vmem:[#allocation2 + $0x5b0] sm:$0xff] %vm535_vm0, %v652_v5  ;;  %v2904_v5 = vld [vmem:[%s3172_s30 + $0x111] sm:$0xff] }
 0x194   : > { %814 = vst.msk [vmem:[#allocation2 + $0x608] sm:$0xff] %vm535_vm0, %v2904_v5 }
 0x195   : > { %1768 = vmatmul.f32.gmra.mxu2 %v1120_v10  ;;  %623 = vst.msk [vmem:[#allocation2 + $0x680] sm:$0xff] %vm535_vm0, %v2904_v5  ;;  %v2906_v5 = vld [vmem:[%s3172_s30 + $0x129] sm:$0xff] }
 0x196   : > { %1881 = vmatmul.f32.gmra.mxu3 %v1121_v11  ;;  %v1176_v11 = vld [vmem:[#allocation2 + $0x2f0] sm:$0xff]  ;;  %816 = vst.msk [vmem:[#allocation2 + $0x698] sm:$0xff] %vm535_vm0, %v2906_v5 }
 0x197   : > { %1658 = vmatmul.f32.gmra.mxu1 %v1128_v12  ;;  %v1490_v12 = vld [vmem:[%s4759_s1 + $0x3c0] sm:$0xff]  ;;  %625 = vst.msk [vmem:[#allocation2 + $0x710] sm:$0xff] %vm535_vm0, %v2906_v5 }
 0x198   : > { %2312 = vmatpush.msra.mxu3 %v1490_v12  ;;  %v2870_v12 = vld [vmem:[%s3172_s30 + $0xf8] sm:$0xff]  ;;  %v2908_v5 = vld [vmem:[%s3172_s30 + $0x141] sm:$0xff] }
 0x199   : > { %1994 = vmatmul.f32.gmra.mxu0 %v1122_v42  ;;  %748 = vst.msk [vmem:[#allocation2 + $0x570] sm:$0xff] %vm535_vm0, %v2870_v12  ;;  %v654_v12 = vld [vmem:[%s3172_s30 + $0x10a] sm:$0xff] }
 0x19a   : > { %2313 = vmatpush.msra.mxu3 %v1489_v35  ;;  %686 = vst.msk [vmem:[#allocation2 + $0x640] sm:$0xff] %vm535_vm0, %v654_v12 }
 0x19b   : > { %818 = vst.msk [vmem:[#allocation2 + $0x728] sm:$0xff] %vm535_vm0, %v2908_v5 }
 0x19c   : > { %627 = vst.msk [vmem:[#allocation2 + $0x7a0] sm:$0xff] %vm535_vm0, %v2908_v5  ;;  %v2910_v5 = vld [vmem:[%s3172_s30 + $0x159] sm:$0xff] }
 0x19d   : > { %1771 = vmatmul.f32.gmra.mxu2 %v1129_v19  ;;  %v1184_v19 = vld [vmem:[#allocation2 + $0x330] sm:$0xff]  ;;  %820 = vst.msk [vmem:[#allocation2 + $0x7b8] sm:$0xff] %vm535_vm0, %v2910_v5 }
 0x19e   : > { %1884 = vmatmul.f32.gmra.mxu3 %v1130_v20  ;;  %629 = vst.msk [vmem:[#allocation2 + $0x830] sm:$0xff] %vm535_vm0, %v2910_v5  ;;  %v2912_v5 = vld [vmem:[%s3172_s30 + $0x171] sm:$0xff] }
 0x19f   : > { %1661 = vmatmul.f32.gmra.mxu1 %v1137_v21  ;;  %v1191_v21 = vld [vmem:[#allocation2 + $0x368] sm:$0xff]  ;;  %822 = vst.msk [vmem:[#allocation2 + $0x848] sm:$0xff] %vm535_vm0, %v2912_v5 }
 0x1a0   : > { %631 = vst.msk [vmem:[#allocation2 + $0x8c0] sm:$0xff] %vm535_vm0, %v2912_v5 }
 0x1a1   : > { %1997 = vmatmul.f32.gmra.mxu0 %v1131_v22 }
 0x1a5   : > { %1774 = vmatmul.f32.gmra.mxu2 %v1138_v17  ;;  %v2867_v17 = vld [vmem:[%s3172_s30 + $0xd8] sm:$0xff] }
 0x1a6   : > { %1887 = vmatmul.f32.gmra.mxu3 %v1139_v23  ;;  %745 = vst.msk [vmem:[#allocation2 + $0x498] sm:$0xff] %vm535_vm0, %v2867_v17  ;;  %v2898_v23 = vld [vmem:[%s3172_s30 + $0xc9] sm:$0xff] }
 0x1a7   : > { %1664 = vmatmul.f32.gmra.mxu1 %v1146_v24  ;;  %808 = vst.msk [vmem:[#allocation2 + $0x458] sm:$0xff] %vm535_vm0, %v2898_v23 }
 0x1a8   : > { %617 = vst.msk [vmem:[#allocation2 + $0x4d0] sm:$0xff] %vm535_vm0, %v2898_v23 }
 0x1a9   : > { %2000 = vmatmul.f32.gmra.mxu0 %v1140_v27  ;;  %v1193_v27 = vld [vmem:[#allocation2 + $0x378] sm:$0xff] }
 0x1ad   : > { %1777 = vmatmul.f32.gmra.mxu2 %v1147_v31  ;;  %v1473_v31 = vld [vmem:[%s4759_s1 + $0x338] sm:$0xff] }
 0x1ae   : > { %1890 = vmatmul.f32.gmra.mxu3 %v1148_v33  ;;  %2200 = vmatpush.msra.mxu2 %v1473_v31  ;;  %v1221_v23 = vld [vmem:[#allocation2 + $0x458] sm:$0xff] }
 0x1af   : > { %1667 = vmatmul.f32.gmra.mxu1 %v1155_v34  ;;  %v1194_v34 = vld [vmem:[#allocation2 + $0x380] sm:$0xff]  ;;  %v1229_v35 = vld [vmem:[#allocation2 + $0x498] sm:$0xff]  ;;  %v1236_v37 = vld [vmem:[#allocation2 + $0x4d0] sm:$0xff] }
 0x1b1   : > { %2003 = vmatmul.f32.gmra.mxu0 %v1149_v36  ;;  %v2868_v36 = vld [vmem:[%s3172_s30 + $0xe0] sm:$0xff] }
 0x1b2   : > { %746 = vst.msk [vmem:[#allocation2 + $0x4e0] sm:$0xff] %vm535_vm0, %v2868_v36 }
 0x1b4   : > { %v3945_v41 = vpop.f32.mrf.mxu1 }
 0x1b5   : > { %1780 = vmatmul.f32.gmra.mxu2 %v1156_v39 }
 0x1b6   : > { %1893 = vmatmul.f32.gmra.mxu3 %v1157_v40  ;;  %v3952_v46 = vpop.f32.mrf.mxu0  ;;  %v1457_v40 = vld [vmem:[%s4759_s1 + $0x2b8] sm:$0xff] }
 0x1b7   : > { %1670 = vmatmul.f32.gmra.mxu1 %v1164_v43  ;;  %v1201_v43 = vld [vmem:[#allocation2 + $0x3b8] sm:$0xff] }
 0x1b8   : > { %v3959_v50 = vpop.f32.mrf.mxu2  ;;  %2087 = vmatpush.msra.mxu1 %v1457_v40  ;;  %v653_v40 = vld [vmem:[%s3172_s30 + $0xfa] sm:$0xff] }
 0x1b9   : > { %v3965_v52 = vpop.f32.mrf.mxu3  ;;  %2006 = vmatmul.f32.gmra.mxu0 %v1158_v47  ;;  %v1209_v47 = vld [vmem:[#allocation2 + $0x3f8] sm:$0xff]  ;;  %685 = vst.msk [vmem:[#allocation2 + $0x5f8] sm:$0xff] %vm535_vm0, %v653_v40 }
 0x1bc   : > { %v3967_v56 = vpop.f32.mrf.mxu1 }
 0x1bd   : > { %1783 = vmatmul.f32.gmra.mxu2 %v1165_v53  ;;  %v1505_v53 = vld [vmem:[%s4759_s1 + $0x438] sm:$0xff] }
 0x1be   : > { %1896 = vmatmul.f32.gmra.mxu3 %v1166_v55  ;;  %v3971_v60 = vpop.f32.mrf.mxu0  ;;  %v2869_v55 = vld [vmem:[%s3172_s30 + $0xf0] sm:$0xff]  ;;  %2426 = vmatpush.msra.mxu0 %v1505_v53 }
 0x1bf   : > { %1673 = vmatmul.f32.gmra.mxu1 %v1173_v57  ;;  %747 = vst.msk [vmem:[#allocation2 + $0x528] sm:$0xff] %vm535_vm0, %v2869_v55  ;;  %v2900_v57 = vld [vmem:[%s3172_s30 + $0xe1] sm:$0xff]  ;;  %v2903_v55 = vld [vmem:[%s3172_s30 + $0x109] sm:$0xff] }
 0x1c0   : > { %v3979_v1 = vpop.f32.mrf.mxu2  ;;  %810 = vst.msk [vmem:[#allocation2 + $0x4e8] sm:$0xff] %vm535_vm0, %v2900_v57 }
 0x1c1   : > { %v3982_v2 = vpop.f32.mrf.mxu3  ;;  %2009 = vmatmul.f32.gmra.mxu0 %v1167_v61  ;;  %619 = vst.msk [vmem:[#allocation2 + $0x560] sm:$0xff] %vm535_vm0, %v2900_v57 }
 0x1c2   : > { %813 = vst.msk [vmem:[#allocation2 + $0x5c0] sm:$0xff] %vm535_vm0, %v2903_v55 }
 0x1c3   : > { %622 = vst.msk [vmem:[#allocation2 + $0x638] sm:$0xff] %vm535_vm0, %v2903_v55  ;;  %v2905_v55 = vld [vmem:[%s3172_s30 + $0x121] sm:$0xff] }
 0x1c4   : > { %v3985_v6 = vpop.f32.mrf.mxu1  ;;  %815 = vst.msk [vmem:[#allocation2 + $0x650] sm:$0xff] %vm535_vm0, %v2905_v55 }
 0x1c5   : > { %1786 = vmatmul.f32.gmra.mxu2 %v1174_v3  ;;  %v1218_v3 = vld [vmem:[#allocation2 + $0x440] sm:$0xff]  ;;  %624 = vst.msk [vmem:[#allocation2 + $0x6c8] sm:$0xff] %vm535_vm0, %v2905_v55 }
 0x1c6   : > { %1899 = vmatmul.f32.gmra.mxu3 %v1175_v4  ;;  %v3992_v10 = vpop.f32.mrf.mxu0  ;;  %v651_v4 = vld [vmem:[%s3172_s30 + $0xe2] sm:$0xff]  ;;  %v2907_v55 = vld [vmem:[%s3172_s30 + $0x139] sm:$0xff] }
 0x1c7   : > { %1676 = vmatmul.f32.gmra.mxu1 %v1182_v7  ;;  %v1472_v7 = vld [vmem:[%s4759_s1 + $0x330] sm:$0xff]  ;;  %683 = vst.msk [vmem:[#allocation2 + $0x568] sm:$0xff] %vm535_vm0, %v651_v4 }
 0x1c8   : > { %v4000_v42 = vpop.f32.mrf.mxu2  ;;  %2201 = vmatpush.msra.mxu2 %v1472_v7  ;;  %v1238_v7 = vld [vmem:[#allocation2 + $0x4e0] sm:$0xff]  ;;  %817 = vst.msk [vmem:[#allocation2 + $0x6e0] sm:$0xff] %vm535_vm0, %v2907_v55 }
 0x1c9   : > { %v4006_v16 = vpop.f32.mrf.mxu3  ;;  %2012 = vmatmul.f32.gmra.mxu0 %v1176_v11  ;;  %v1488_v11 = vld [vmem:[%s4759_s1 + $0x3b0] sm:$0xff]  ;;  %626 = vst.msk [vmem:[#allocation2 + $0x758] sm:$0xff] %vm535_vm0, %v2907_v55 }
 0x1ca   : > { %2314 = vmatpush.msra.mxu3 %v1488_v11  ;;  %v1245_v11 = vld [vmem:[#allocation2 + $0x518] sm:$0xff] }
 0x1cb   : > { %v2909_v55 = vld [vmem:[%s3172_s30 + $0x151] sm:$0xff] }
 0x1cc   : > { %v4009_v20 = vpop.f32.mrf.mxu1  ;;  %2315 = vmatpush.msra.mxu3 %v1487_v48  ;;  %v1486_v48 = vld [vmem:[%s4759_s1 + $0x3a0] sm:$0xff]  ;;  %819 = vst.msk [vmem:[#allocation2 + $0x770] sm:$0xff] %vm535_vm0, %v2909_v55 }
 0x1cd   : > { %1789 = vmatmul.f32.gmra.mxu2 %v1183_v18  ;;  %v1456_v18 = vld [vmem:[%s4759_s1 + $0x2b0] sm:$0xff]  ;;  %628 = vst.msk [vmem:[#allocation2 + $0x7e8] sm:$0xff] %vm535_vm0, %v2909_v55 }
 0x1ce   : > { %1902 = vmatmul.f32.gmra.mxu3 %v1184_v19  ;;  %v4013_v22 = vpop.f32.mrf.mxu0  ;;  %v1219_v19 = vld [vmem:[#allocation2 + $0x448] sm:$0xff]  ;;  %2088 = vmatpush.msra.mxu1 %v1456_v18 }
 0x1cf   : > { %1679 = vmatmul.f32.gmra.mxu1 %v1191_v21  ;;  %v1220_v21 = vld [vmem:[#allocation2 + $0x450] sm:$0xff]  ;;  %2316 = vmatpush.msra.mxu3 %v1486_v48  ;;  %v1485_v48 = vld [vmem:[%s4759_s1 + $0x398] sm:$0xff] }
 0x1d0   : > { %v4021_v24 = vpop.f32.mrf.mxu2  ;;  %v2911_v55 = vld [vmem:[%s3172_s30 + $0x169] sm:$0xff] }
 0x1d1   : > { %v4024_v25 = vpop.f32.mrf.mxu3  ;;  %2015 = vmatmul.f32.gmra.mxu0 %v1185_v58  ;;  %v1227_v58 = vld [vmem:[#allocation2 + $0x488] sm:$0xff]  ;;  %2317 = vmatpush.msra.mxu3 %v1485_v48  ;;  %v1484_v48 = vld [vmem:[%s4759_s1 + $0x390] sm:$0xff]  ;;  %821 = vst.msk [vmem:[#allocation2 + $0x800] sm:$0xff] %vm535_vm0, %v2911_v55 }
 0x1d2   : > { %630 = vst.msk [vmem:[#allocation2 + $0x878] sm:$0xff] %vm535_vm0, %v2911_v55  ;;  %v2913_v55 = vld [vmem:[%s3172_s30 + $0x181] sm:$0xff] }
 0x1d3   : > { %2318 = vmatpush.msra.mxu3 %v1484_v48  ;;  %v1483_v48 = vld [vmem:[%s4759_s1 + $0x388] sm:$0xff]  ;;  %823 = vst.msk [vmem:[#allocation2 + $0x890] sm:$0xff] %vm535_vm0, %v2913_v55 }
 0x1d4   : > { %v4027_v28 = vpop.f32.mrf.mxu1 }
 0x1d5   : > { %1792 = vmatmul.f32.gmra.mxu2 %v1192_v26  ;;  %v1504_v26 = vld [vmem:[%s4759_s1 + $0x430] sm:$0xff]  ;;  %2319 = vmatpush.msra.mxu3 %v1483_v48  ;;  %v1482_v48 = vld [vmem:[%s4759_s1 + $0x380] sm:$0xff] }
 0x1d6   : > { %1905 = vmatmul.f32.gmra.mxu3 %v1193_v27  ;;  %v4034_v33 = vpop.f32.mrf.mxu0  ;;  %v2871_v27 = vld [vmem:[%s3172_s30 + $0x108] sm:$0xff]  ;;  %2427 = vmatpush.msra.mxu0 %v1504_v26 }
 0x1d7   : > { %1682 = vmatmul.f32.gmra.mxu1 %v1200_v29  ;;  %749 = vst.msk [vmem:[#allocation2 + $0x5b8] sm:$0xff] %vm535_vm0, %v2871_v27  ;;  %v2902_v29 = vld [vmem:[%s3172_s30 + $0xf9] sm:$0xff]  ;;  %2320 = vmatpush.msra.mxu3 %v1482_v48 }
 0x1d8   : > { %v4042_v38 = vpop.f32.mrf.mxu2  ;;  %812 = vst.msk [vmem:[#allocation2 + $0x578] sm:$0xff] %vm535_vm0, %v2902_v29  ;;  %v1338_v48 = vld [vmem:[#allocation2 + $0x800] sm:$0xff] }
 0x1d9   : > { %v4045_v39 = vpop.f32.mrf.mxu3  ;;  %2018 = vmatmul.f32.gmra.mxu0 %v1194_v34  ;;  %621 = vst.msk [vmem:[#allocation2 + $0x5f0] sm:$0xff] %vm535_vm0, %v2902_v29  ;;  %v1228_v34 = vld [vmem:[#allocation2 + $0x490] sm:$0xff]  ;;  %v1246_v29 = vld [vmem:[#allocation2 + $0x520] sm:$0xff] }
 0x1dc   : > { %v4051_v45 = vpop.f32.mrf.mxu1 }
 0x1dd   : > { %1795 = vmatmul.f32.gmra.mxu2 %v1201_v43  ;;  %v1471_v43 = vld [vmem:[%s4759_s1 + $0x328] sm:$0xff] }
 0x1de   : > { %1908 = vmatmul.f32.gmra.mxu3 %v1202_v44  ;;  %v4055_v49 = vpop.f32.mrf.mxu0  ;;  %2202 = vmatpush.msra.mxu2 %v1471_v43  ;;  %v1470_v43 = vld [vmem:[%s4759_s1 + $0x320] sm:$0xff] }
 0x1df   : > { %1685 = vmatmul.f32.gmra.mxu1 %v1209_v47  ;;  %v1230_v47 = vld [vmem:[#allocation2 + $0x4a0] sm:$0xff] }
 0x1e0   : > { %v4063_v59 = vpop.f32.mrf.mxu2  ;;  %2203 = vmatpush.msra.mxu2 %v1470_v43  ;;  %v1469_v43 = vld [vmem:[%s4759_s1 + $0x318] sm:$0xff] }
 0x1e1   : > { %v4066_v61 = vpop.f32.mrf.mxu3  ;;  %2021 = vmatmul.f32.gmra.mxu0 %v1203_v51  ;;  %v2872_v51 = vld [vmem:[%s3172_s30 + $0x110] sm:$0xff] }
 0x1e2   : > { %750 = vst.msk [vmem:[#allocation2 + $0x600] sm:$0xff] %vm535_vm0, %v2872_v51  ;;  %v2874_v51 = vld [vmem:[%s3172_s30 + $0x128] sm:$0xff]  ;;  %2204 = vmatpush.msra.mxu2 %v1469_v43  ;;  %v1468_v43 = vld [vmem:[%s4759_s1 + $0x310] sm:$0xff] }
 0x1e3   : > { %752 = vst.msk [vmem:[#allocation2 + $0x690] sm:$0xff] %vm535_vm0, %v2874_v51  ;;  %v2876_v51 = vld [vmem:[%s3172_s30 + $0x140] sm:$0xff] }
 0x1e4   : > { %v4069_v0 = vpop.f32.mrf.mxu1  ;;  %754 = vst.msk [vmem:[#allocation2 + $0x720] sm:$0xff] %vm535_vm0, %v2876_v51  ;;  %2205 = vmatpush.msra.mxu2 %v1468_v43  ;;  %v2878_v51 = vld [vmem:[%s3172_s30 + $0x158] sm:$0xff]  ;;  %v1467_v43 = vld [vmem:[%s4759_s1 + $0x308] sm:$0xff] }
 0x1e5   : > { %1798 = vmatmul.f32.gmra.mxu2 %v1210_v62  ;;  %756 = vst.msk [vmem:[#allocation2 + $0x7b0] sm:$0xff] %vm535_vm0, %v2878_v51  ;;  %v2880_v51 = vld [vmem:[%s3172_s30 + $0x170] sm:$0xff] }
 0x1e6   : > { %1911 = vmatmul.f32.gmra.mxu3 %v1211_v63  ;;  %v4076_v8 = vpop.f32.mrf.mxu0  ;;  %2206 = vmatpush.msra.mxu2 %v1467_v43  ;;  %758 = vst.msk [vmem:[#allocation2 + $0x840] sm:$0xff] %vm535_vm0, %v2880_v51  ;;  %v1466_v43 = vld [vmem:[%s4759_s1 + $0x300] sm:$0xff]  ;;  %v2882_v51 = vld [vmem:[%s3172_s30 + $0x188] sm:$0xff] }
 0x1e7   : > { %1688 = vmatmul.f32.gmra.mxu1 %v1218_v3  ;;  %v1455_v3 = vld [vmem:[%s4759_s1 + $0x2a8] sm:$0xff]  ;;  %760 = vst.msk [vmem:[#allocation2 + $0x8d0] sm:$0xff] %vm535_vm0, %v2882_v51  ;;  %v2980_v51 = vld [vmem:[%s3172_s30 + $0x39] sm:$0xff] }
 0x1e8   : > { %v4084_v14 = vpop.f32.mrf.mxu2  ;;  %2089 = vmatpush.msra.mxu1 %v1455_v3  ;;  %v1454_v3 = vld [vmem:[%s4759_s1 + $0x2a0] sm:$0xff]  ;;  %2207 = vmatpush.msra.mxu2 %v1466_v43  ;;  %v1344_v43 = vld [vmem:[#allocation2 + $0x830] sm:$0xff]  ;;  %987 = vst.msk [vmem:[#allocation2 + $0x80] sm:$0xff] %vm535_vm0, %v2980_v51 }
 0x1e9   : > { %v4087_v15 = vpop.f32.mrf.mxu3  ;;  %2024 = vmatmul.f32.gmra.mxu0 %v1212_v9 }
 0x1ea   : > { %2090 = vmatpush.msra.mxu1 %v1454_v3  ;;  %v1453_v3 = vld [vmem:[%s4759_s1 + $0x298] sm:$0xff] }
 0x1ec   : > { %v1644_v54 = vpop.f32.mrf.mxu1  ;;  %2091 = vmatpush.msra.mxu1 %v1453_v3  ;;  %v1452_v3 = vld [vmem:[%s4759_s1 + $0x290] sm:$0xff] }
 0x1ed   : > { %1801 = vmatmul.f32.gmra.mxu2 %v1219_v19  ;;  %v1645_v53 = vadd.f32 %v1644_v54, %v3952_v46  ;;  %v1237_v46 = vld [vmem:[#allocation2 + $0x4d8] sm:$0xff]  ;;  %v1239_v19 = vld [vmem:[#allocation2 + $0x4e8] sm:$0xff]  ;;  %v2873_v54 = vld [vmem:[%s3172_s30 + $0x120] sm:$0xff] }
 0x1ee   : > { %1914 = vmatmul.f32.gmra.mxu3 %v1220_v21  ;;  %v4095_v17 = vpop.f32.mrf.mxu0  ;;  %v1503_v21 = vld [vmem:[%s4759_s1 + $0x428] sm:$0xff]  ;;  %751 = vst.msk [vmem:[#allocation2 + $0x648] sm:$0xff] %vm535_vm0, %v2873_v54  ;;  %v2875_v54 = vld [vmem:[%s3172_s30 + $0x138] sm:$0xff]  ;;  %2092 = vmatpush.msra.mxu1 %v1452_v3 }
 0x1ef   : > { %1691 = vmatmul.f32.gmra.mxu1 %v1227_v58  ;;  %2428 = vmatpush.msra.mxu0 %v1503_v21  ;;  %v1502_v21 = vld [vmem:[%s4759_s1 + $0x420] sm:$0xff]  ;;  %753 = vst.msk [vmem:[#allocation2 + $0x6d8] sm:$0xff] %vm535_vm0, %v2875_v54  ;;  %v2877_v54 = vld [vmem:[%s3172_s30 + $0x150] sm:$0xff]  ;;  %v1451_v3 = vld [vmem:[%s4759_s1 + $0x288] sm:$0xff] }
 0x1f0   : > { %v4103_v30 = vpop.f32.mrf.mxu2  ;;  %755 = vst.msk [vmem:[#allocation2 + $0x768] sm:$0xff] %vm535_vm0, %v2877_v54  ;;  %v2879_v54 = vld [vmem:[%s3172_s30 + $0x168] sm:$0xff]  ;;  %2093 = vmatpush.msra.mxu1 %v1451_v3  ;;  %v1450_v3 = vld [vmem:[%s4759_s1 + $0x280] sm:$0xff] }
 0x1f1   : > { %v4106_v31 = vpop.f32.mrf.mxu3  ;;  %2027 = vmatmul.f32.gmra.mxu0 %v1221_v23  ;;  %757 = vst.msk [vmem:[#allocation2 + $0x7f8] sm:$0xff] %vm535_vm0, %v2879_v54  ;;  %v2881_v54 = vld [vmem:[%s3172_s30 + $0x180] sm:$0xff] }
 0x1f2   : > { %2429 = vmatpush.msra.mxu0 %v1502_v21  ;;  %v1501_v21 = vld [vmem:[%s4759_s1 + $0x418] sm:$0xff]  ;;  %759 = vst.msk [vmem:[#allocation2 + $0x888] sm:$0xff] %vm535_vm0, %v2881_v54  ;;  %2094 = vmatpush.msra.mxu1 %v1450_v3  ;;  %v1498_v54 = vld [vmem:[%s4759_s1 + $0x400] sm:$0xff] }
 0x1f4   : > { %v1647_v36 = vpop.f32.mrf.mxu1  ;;  %2430 = vmatpush.msra.mxu0 %v1501_v21  ;;  %v1500_v21 = vld [vmem:[%s4759_s1 + $0x410] sm:$0xff] }
 0x1f5   : > { %1804 = vmatmul.f32.gmra.mxu2 %v1228_v34  ;;  %v1648_v58 = vadd.f32 %v1647_v36, %v3971_v60  ;;  %v1254_v60 = vld [vmem:[#allocation2 + $0x560] sm:$0xff]  ;;  %v655_v36 = vld [vmem:[%s3172_s30 + $0x112] sm:$0xff] }
 0x1f6   : > { %1917 = vmatmul.f32.gmra.mxu3 %v1229_v35  ;;  %v1983_v44 = vpop.f32.mrf.mxu0  ;;  %v1247_v35 = vld [vmem:[#allocation2 + $0x528] sm:$0xff]  ;;  %687 = vst.msk [vmem:[#allocation2 + $0x688] sm:$0xff] %vm535_vm0, %v655_v36  ;;  %2431 = vmatpush.msra.mxu0 %v1500_v21 }
 0x1f7   : > { %1694 = vmatmul.f32.gmra.mxu1 %v1236_v37  ;;  %v1499_v21 = vld [vmem:[%s4759_s1 + $0x408] sm:$0xff] }
 0x1f8   : > { %v1757_v57 = vpop.f32.mrf.mxu2  ;;  %2432 = vmatpush.msra.mxu0 %v1499_v21  ;;  %v1329_v21 = vld [vmem:[#allocation2 + $0x7b8] sm:$0xff] }
 0x1f9   : > { %v1758_v62 = vadd.f32 %v1757_v57, %v1645_v53  ;;  %v1870_v63 = vpop.f32.mrf.mxu3  ;;  %2030 = vmatmul.f32.gmra.mxu0 %v1230_v47  ;;  %v1248_v47 = vld [vmem:[#allocation2 + $0x530] sm:$0xff] }
 0x1fa   : > { %2433 = vmatpush.msra.mxu0 %v1498_v54 }
 0x1fb   : > { %v1871_v4 = vadd.f32 %v1870_v63, %v1758_v62 }
 0x1fc   : > { %v1650_v9 = vpop.f32.mrf.mxu1 }
 0x1fd   : > { %v4127_v13 = vadd.f32 %v1983_v44, %v1871_v4  ;;  %1807 = vmatmul.f32.gmra.mxu2 %v1237_v46  ;;  %v1651_v53 = vadd.f32 %v1650_v9, %v3992_v10  ;;  %v1255_v10 = vld [vmem:[#allocation2 + $0x568] sm:$0xff]  ;;  %v1256_v4 = vld [vmem:[#allocation2 + $0x570] sm:$0xff] }
 0x1fe   : > { %1920 = vmatmul.f32.gmra.mxu3 %v1238_v7  ;;  %v1986_v18 = vpop.f32.mrf.mxu0  ;;  %v1263_v9 = vld [vmem:[#allocation2 + $0x5a8] sm:$0xff] }
 0x1ff   : > { %1697 = vmatmul.f32.gmra.mxu1 %v1245_v11  ;;  %v656_v11 = vld [vmem:[%s3172_s30 + $0x122] sm:$0xff] }
 0x200   : > { %v1760_v23 = vpop.f32.mrf.mxu2  ;;  %688 = vst.msk [vmem:[#allocation2 + $0x6d0] sm:$0xff] %vm535_vm0, %v656_v11 }
 0x201   : > { %v1761_v26 = vadd.f32 %v1760_v23, %v1648_v58  ;;  %v1873_v27 = vpop.f32.mrf.mxu3  ;;  %2033 = vmatmul.f32.gmra.mxu0 %v1239_v19  ;;  %v1257_v19 = vld [vmem:[#allocation2 + $0x578] sm:$0xff] }
 0x203   : > { %v1874_v34 = vadd.f32 %v1873_v27, %v1761_v26 }
 0x204   : > { %v1653_v37 = vpop.f32.mrf.mxu1 }
 0x205   : > { %v4140_v40 = vadd.f32 %v1986_v18, %v1874_v34  ;;  %1810 = vmatmul.f32.gmra.mxu2 %v1246_v29  ;;  %v1654_v58 = vadd.f32 %v1653_v37, %v4013_v22  ;;  %v1264_v29 = vld [vmem:[#allocation2 + $0x5b0] sm:$0xff] }
 0x206   : > { %1923 = vmatmul.f32.gmra.mxu3 %v1247_v35  ;;  %v1989_v44 = vpop.f32.mrf.mxu0  ;;  %v1265_v35 = vld [vmem:[#allocation2 + $0x5b8] sm:$0xff]  ;;  %v1272_v22 = vld [vmem:[#allocation2 + $0x5f0] sm:$0xff] }
 0x207   : > { %1700 = vmatmul.f32.gmra.mxu1 %v1254_v60  ;;  %v657_v37 = vld [vmem:[%s3172_s30 + $0x12a] sm:$0xff] }
 0x208   : > { %v1763_v57 = vpop.f32.mrf.mxu2  ;;  %689 = vst.msk [vmem:[#allocation2 + $0x718] sm:$0xff] %vm535_vm0, %v657_v37 }
 0x209   : > { %v1764_v62 = vadd.f32 %v1763_v57, %v1651_v53  ;;  %v1876_v63 = vpop.f32.mrf.mxu3  ;;  %2036 = vmatmul.f32.gmra.mxu0 %v1248_v47  ;;  %v1266_v47 = vld [vmem:[#allocation2 + $0x5c0] sm:$0xff] }
 0x20b   : > { %v1877_v46 = vadd.f32 %v1876_v63, %v1764_v62 }
 0x20c   : > { %v1656_v7 = vpop.f32.mrf.mxu1 }
 0x20d   : > { %v4159_v12 = vadd.f32 %v1989_v44, %v1877_v46  ;;  %1813 = vmatmul.f32.gmra.mxu2 %v1255_v10  ;;  %v1657_v53 = vadd.f32 %v1656_v7, %v4034_v33  ;;  %v1273_v33 = vld [vmem:[#allocation2 + $0x5f8] sm:$0xff]  ;;  %v1274_v46 = vld [vmem:[#allocation2 + $0x600] sm:$0xff] }
 0x20e   : > { %1926 = vmatmul.f32.gmra.mxu3 %v1256_v4  ;;  %v1992_v18 = vpop.f32.mrf.mxu0  ;;  %v1281_v7 = vld [vmem:[#allocation2 + $0x638] sm:$0xff] }
 0x20f   : > { %1703 = vmatmul.f32.gmra.mxu1 %v1263_v9  ;;  %v658_v9 = vld [vmem:[%s3172_s30 + $0x13a] sm:$0xff] }
 0x210   : > { %v1766_v23 = vpop.f32.mrf.mxu2  ;;  %690 = vst.msk [vmem:[#allocation2 + $0x760] sm:$0xff] %vm535_vm0, %v658_v9 }
 0x211   : > { %v1767_v26 = vadd.f32 %v1766_v23, %v1654_v58  ;;  %v1879_v27 = vpop.f32.mrf.mxu3  ;;  %2039 = vmatmul.f32.gmra.mxu0 %v1257_v19  ;;  %v1275_v19 = vld [vmem:[#allocation2 + $0x608] sm:$0xff] }
 0x213   : > { %v1880_v34 = vadd.f32 %v1879_v27, %v1767_v26 }
 0x214   : > { %v1659_v60 = vpop.f32.mrf.mxu1 }
 0x215   : > { %v4172_v36 = vadd.f32 %v1992_v18, %v1880_v34  ;;  %1816 = vmatmul.f32.gmra.mxu2 %v1264_v29  ;;  %v1660_v58 = vadd.f32 %v1659_v60, %v4055_v49  ;;  %v1282_v29 = vld [vmem:[#allocation2 + $0x640] sm:$0xff] }
 0x216   : > { %1929 = vmatmul.f32.gmra.mxu3 %v1265_v35  ;;  %v1995_v44 = vpop.f32.mrf.mxu0  ;;  %v1283_v35 = vld [vmem:[#allocation2 + $0x648] sm:$0xff]  ;;  %v1290_v49 = vld [vmem:[#allocation2 + $0x680] sm:$0xff] }
 0x217   : > { %1706 = vmatmul.f32.gmra.mxu1 %v1272_v22  ;;  %v659_v60 = vld [vmem:[%s3172_s30 + $0x142] sm:$0xff] }
 0x218   : > { %v1769_v57 = vpop.f32.mrf.mxu2  ;;  %691 = vst.msk [vmem:[#allocation2 + $0x7a8] sm:$0xff] %vm535_vm0, %v659_v60 }
 0x219   : > { %v1770_v62 = vadd.f32 %v1769_v57, %v1657_v53  ;;  %v1882_v63 = vpop.f32.mrf.mxu3  ;;  %2042 = vmatmul.f32.gmra.mxu0 %v1266_v47  ;;  %v1284_v47 = vld [vmem:[#allocation2 + $0x650] sm:$0xff] }
 0x21b   : > { %v1883_v10 = vadd.f32 %v1882_v63, %v1770_v62 }
 0x21c   : > { %v1662_v4 = vpop.f32.mrf.mxu1 }
 0x21d   : > { %v4191_v11 = vadd.f32 %v1995_v44, %v1883_v10  ;;  %1819 = vmatmul.f32.gmra.mxu2 %v1273_v33  ;;  %v1663_v53 = vadd.f32 %v1662_v4, %v4076_v8  ;;  %v1291_v8 = vld [vmem:[#allocation2 + $0x688] sm:$0xff]  ;;  %v1292_v10 = vld [vmem:[#allocation2 + $0x690] sm:$0xff] }
 0x21e   : > { %1932 = vmatmul.f32.gmra.mxu3 %v1274_v46  ;;  %v1998_v18 = vpop.f32.mrf.mxu0  ;;  %v1299_v4 = vld [vmem:[#allocation2 + $0x6c8] sm:$0xff] }
 0x21f   : > { %1709 = vmatmul.f32.gmra.mxu1 %v1281_v7  ;;  %v660_v7 = vld [vmem:[%s3172_s30 + $0x152] sm:$0xff] }
 0x220   : > { %v1772_v23 = vpop.f32.mrf.mxu2  ;;  %692 = vst.msk [vmem:[#allocation2 + $0x7f0] sm:$0xff] %vm535_vm0, %v660_v7 }
 0x221   : > { %v1773_v26 = vadd.f32 %v1772_v23, %v1660_v58  ;;  %v1885_v27 = vpop.f32.mrf.mxu3  ;;  %2045 = vmatmul.f32.gmra.mxu0 %v1275_v19  ;;  %v1293_v19 = vld [vmem:[#allocation2 + $0x698] sm:$0xff] }
 0x223   : > { %v1886_v34 = vadd.f32 %v1885_v27, %v1773_v26 }
 0x224   : > { %v1665_v22 = vpop.f32.mrf.mxu1 }
 0x225   : > { %v4204_v37 = vadd.f32 %v1998_v18, %v1886_v34  ;;  %1822 = vmatmul.f32.gmra.mxu2 %v1282_v29  ;;  %v1666_v58 = vadd.f32 %v1665_v22, %v4095_v17  ;;  %v1300_v29 = vld [vmem:[#allocation2 + $0x6d0] sm:$0xff]  ;;  %v661_v22 = vld [vmem:[%s3172_s30 + $0x15a] sm:$0xff] }
 0x226   : > { %1935 = vmatmul.f32.gmra.mxu3 %v1283_v35  ;;  %v2001_v44 = vpop.f32.mrf.mxu0  ;;  %v1301_v35 = vld [vmem:[#allocation2 + $0x6d8] sm:$0xff]  ;;  %v1308_v17 = vld [vmem:[#allocation2 + $0x710] sm:$0xff]  ;;  %693 = vst.msk [vmem:[#allocation2 + $0x838] sm:$0xff] %vm535_vm0, %v661_v22 }
 0x227   : > { %1712 = vmatmul.f32.gmra.mxu1 %v1290_v49 }
 0x228   : > { %v1775_v57 = vpop.f32.mrf.mxu2 }
 0x229   : > { %v1776_v62 = vadd.f32 %v1775_v57, %v1663_v53  ;;  %v1888_v63 = vpop.f32.mrf.mxu3  ;;  %2048 = vmatmul.f32.gmra.mxu0 %v1284_v47  ;;  %v1302_v47 = vld [vmem:[#allocation2 + $0x6e0] sm:$0xff] }
 0x22b   : > { %v1889_v33 = vadd.f32 %v1888_v63, %v1776_v62 }
 0x22c   : > { %v1668_v46 = vpop.f32.mrf.mxu1 }
 0x22d   : > { %v4223_v9 = vadd.f32 %v2001_v44, %v1889_v33  ;;  %1825 = vmatmul.f32.gmra.mxu2 %v1291_v8  ;;  %v1669_v53 = vadd.f32 %v1668_v46, %v3935_v32  ;;  %v1309_v32 = vld [vmem:[#allocation2 + $0x718] sm:$0xff]  ;;  %v1310_v33 = vld [vmem:[#allocation2 + $0x720] sm:$0xff] }
 0x22e   : > { %1938 = vmatmul.f32.gmra.mxu3 %v1292_v10  ;;  %v2004_v18 = vpop.f32.mrf.mxu0  ;;  %v1317_v46 = vld [vmem:[#allocation2 + $0x758] sm:$0xff] }
 0x22f   : > { %1715 = vmatmul.f32.gmra.mxu1 %v1299_v4  ;;  %v662_v4 = vld [vmem:[%s3172_s30 + $0x16a] sm:$0xff]  ;;  %v1345_v3 = vld [vmem:[#allocation2 + $0x838] sm:$0xff] }
 0x230   : > { %v1778_v23 = vpop.f32.mrf.mxu2  ;;  %694 = vst.msk [vmem:[#allocation2 + $0x880] sm:$0xff] %vm535_vm0, %v662_v4 }
 0x231   : > { %v1779_v26 = vadd.f32 %v1778_v23, %v1666_v58  ;;  %v1891_v27 = vpop.f32.mrf.mxu3  ;;  %2051 = vmatmul.f32.gmra.mxu0 %v1293_v19  ;;  %v1311_v19 = vld [vmem:[#allocation2 + $0x728] sm:$0xff] }
 0x233   : > { %v1892_v34 = vadd.f32 %v1891_v27, %v1779_v26 }
 0x234   : > { %v1671_v49 = vpop.f32.mrf.mxu1 }
 0x235   : > { %v4236_v60 = vadd.f32 %v2004_v18, %v1892_v34  ;;  %1828 = vmatmul.f32.gmra.mxu2 %v1300_v29  ;;  %v1672_v58 = vadd.f32 %v1671_v49, %v3945_v41  ;;  %v1318_v29 = vld [vmem:[#allocation2 + $0x760] sm:$0xff]  ;;  %v663_v49 = vld [vmem:[%s3172_s30 + $0x172] sm:$0xff] }
 0x236   : > { %1941 = vmatmul.f32.gmra.mxu3 %v1301_v35  ;;  %v2007_v44 = vpop.f32.mrf.mxu0  ;;  %v1319_v35 = vld [vmem:[#allocation2 + $0x768] sm:$0xff]  ;;  %v1326_v41 = vld [vmem:[#allocation2 + $0x7a0] sm:$0xff]  ;;  %695 = vst.msk [vmem:[#allocation2 + $0x8c8] sm:$0xff] %vm535_vm0, %v663_v49 }
 0x237   : > { %1718 = vmatmul.f32.gmra.mxu1 %v1308_v17 }
 0x238   : > { %v1781_v57 = vpop.f32.mrf.mxu2 }
 0x239   : > { %v1782_v62 = vadd.f32 %v1781_v57, %v1669_v53  ;;  %v1894_v63 = vpop.f32.mrf.mxu3  ;;  %2054 = vmatmul.f32.gmra.mxu0 %v1302_v47  ;;  %v1320_v47 = vld [vmem:[#allocation2 + $0x770] sm:$0xff] }
 0x23b   : > { %v1895_v8 = vadd.f32 %v1894_v63, %v1782_v62 }
 0x23c   : > { %v1674_v10 = vpop.f32.mrf.mxu1 }
 0x23d   : > { %v4255_v7 = vadd.f32 %v2007_v44, %v1895_v8  ;;  %1831 = vmatmul.f32.gmra.mxu2 %v1309_v32  ;;  %v1675_v53 = vadd.f32 %v1674_v10, %v3967_v56  ;;  %v1327_v32 = vld [vmem:[#allocation2 + $0x7a8] sm:$0xff]  ;;  %v1328_v8 = vld [vmem:[#allocation2 + $0x7b0] sm:$0xff] }
 0x23e   : > { %1944 = vmatmul.f32.gmra.mxu3 %v1310_v33  ;;  %v2010_v18 = vpop.f32.mrf.mxu0  ;;  %v1335_v10 = vld [vmem:[#allocation2 + $0x7e8] sm:$0xff] }
 0x23f   : > { %1721 = vmatmul.f32.gmra.mxu1 %v1317_v46  ;;  %v2915_v46 = vld [vmem:[%s3172_s30 + $0x1a] sm:$0xff] }
 0x240   : > { %v1784_v23 = vpop.f32.mrf.mxu2  ;;  %857 = vst.msk [vmem:[#allocation2 + $0x28] sm:$0xff] %vm535_vm0, %v2915_v46  ;;  %v2949_v46 = vld [vmem:[%s3172_s30 + $0x48] sm:$0xff] }
 0x241   : > { %v1785_v26 = vadd.f32 %v1784_v23, %v1672_v58  ;;  %v1897_v27 = vpop.f32.mrf.mxu3  ;;  %2057 = vmatmul.f32.gmra.mxu0 %v1311_v19  ;;  %v2914_v58 = vld [vmem:[%s3172_s30 + $0x189] sm:$0xff]  ;;  %v2979_v23 = vld [vmem:[%s3172_s30 + $0x31] sm:$0xff]  ;;  %924 = vst.msk [vmem:[#allocation2 + $0xc0] sm:$0xff] %vm535_vm0, %v2949_v46 }
 0x242   : > { %824 = vst.msk [vmem:[#allocation2 + $0x8d8] sm:$0xff] %vm535_vm0, %v2914_v58  ;;  %v3014_v46 = vld [vmem:[%s3172_s30 + $0x52] sm:$0xff] }
 0x243   : > { %v1898_v34 = vadd.f32 %v1897_v27, %v1785_v26  ;;  %986 = vst.msk [vmem:[#allocation2 + $0x38] sm:$0xff] %vm535_vm0, %v2979_v23 }
 0x244   : > { %v1677_v17 = vpop.f32.mrf.mxu1  ;;  %1053 = vst.msk [vmem:[#allocation2 + $0x118] sm:$0xff] %vm535_vm0, %v3014_v46 }
 0x245   : > { %v4268_v22 = vadd.f32 %v2010_v18, %v1898_v34  ;;  %1834 = vmatmul.f32.gmra.mxu2 %v1318_v29  ;;  %v2947_v18 = vld [vmem:[%s3172_s30 + $0x30] sm:$0xff]  ;;  %v1678_v5 = vadd.f32 %v1677_v17, %v3985_v6  ;;  %v2916_v6 = vld [vmem:[%s3172_s30 + $0x22] sm:$0xff]  ;;  %v2948_v17 = vld [vmem:[%s3172_s30 + $0x38] sm:$0xff]  ;;  %862 = vst.msk [vmem:[#allocation2 + $0x190] sm:$0xff] %vm535_vm0, %v3014_v46 }
 0x246   : > { %1947 = vmatmul.f32.gmra.mxu3 %v1319_v35  ;;  %v2013_v44 = vpop.f32.mrf.mxu0  ;;  %922 = vst.msk [vmem:[#allocation2 + $0x30] sm:$0xff] %vm535_vm0, %v2947_v18  ;;  %v1336_v34 = vld [vmem:[#allocation2 + $0x7f0] sm:$0xff]  ;;  %v1347_v18 = vld [vmem:[#allocation2 + $0x848] sm:$0xff] }
 0x247   : > { %1724 = vmatmul.f32.gmra.mxu1 %v1326_v41  ;;  %v1337_v41 = vld [vmem:[#allocation2 + $0x7f8] sm:$0xff]  ;;  %858 = vst.msk [vmem:[#allocation2 + $0x70] sm:$0xff] %vm535_vm0, %v2916_v6 }
 0x248   : > { %v1787_v57 = vpop.f32.mrf.mxu2  ;;  %923 = vst.msk [vmem:[#allocation2 + $0x78] sm:$0xff] %vm535_vm0, %v2948_v17  ;;  %v2982_v6 = vld [vmem:[%s3172_s30 + $0x51] sm:$0xff] }
 0x249   : > { %v1788_v62 = vadd.f32 %v1787_v57, %v1675_v53  ;;  %v1900_v63 = vpop.f32.mrf.mxu3  ;;  %2060 = vmatmul.f32.gmra.mxu0 %v1320_v47  ;;  %v3011_v53 = vld [vmem:[%s3172_s30 + $0x32] sm:$0xff]  ;;  %v3013_v17 = vld [vmem:[%s3172_s30 + $0x4a] sm:$0xff]  ;;  %989 = vst.msk [vmem:[#allocation2 + $0x110] sm:$0xff] %vm535_vm0, %v2982_v6 }
 0x24a   : > { %1050 = vst.msk [vmem:[#allocation2 + $0x40] sm:$0xff] %vm535_vm0, %v3011_v53 }
 0x24b   : > { %v1901_v56 = vadd.f32 %v1900_v63, %v1788_v62  ;;  %859 = vst.msk [vmem:[#allocation2 + $0xb8] sm:$0xff] %vm535_vm0, %v3011_v53 }
 0x24c   : > { %v1680_v33 = vpop.f32.mrf.mxu1  ;;  %1052 = vst.msk [vmem:[#allocation2 + $0xd0] sm:$0xff] %vm535_vm0, %v3013_v17 }
 0x24d   : > { %v4286_v4 = vadd.f32 %v2013_v44, %v1901_v56  ;;  %1837 = vmatmul.f32.gmra.mxu2 %v1327_v32  ;;  %v1681_v55 = vadd.f32 %v1680_v33, %v4009_v20  ;;  %v1346_v56 = vld [vmem:[#allocation2 + $0x840] sm:$0xff]  ;;  %861 = vst.msk [vmem:[#allocation2 + $0x148] sm:$0xff] %vm535_vm0, %v3013_v17 }
 0x24e   : > { %1950 = vmatmul.f32.gmra.mxu3 %v1328_v8  ;;  %v2016_v19 = vpop.f32.mrf.mxu0 }
 0x24f   : > { %1727 = vmatmul.f32.gmra.mxu1 %v1335_v10  ;;  %v1353_v10 = vld [vmem:[#allocation2 + $0x878] sm:$0xff] }
 0x250   : > { %v1790_v26 = vpop.f32.mrf.mxu2 }
 0x251   : > { %v1791_v27 = vadd.f32 %v1790_v26, %v1678_v5  ;;  %v1903_v29 = vpop.f32.mrf.mxu3  ;;  %2063 = vmatmul.f32.gmra.mxu0 %v1329_v21  ;;  %v3012_v21 = vld [vmem:[%s3172_s30 + $0x3a] sm:$0xff] }
 0x252   : > { %1051 = vst.msk [vmem:[#allocation2 + $0x88] sm:$0xff] %vm535_vm0, %v3012_v21  ;;  %v1354_v26 = vld [vmem:[#allocation2 + $0x880] sm:$0xff] }
 0x253   : > { %v1904_v35 = vadd.f32 %v1903_v29, %v1791_v27  ;;  %860 = vst.msk [vmem:[#allocation2 + $0x100] sm:$0xff] %vm535_vm0, %v3012_v21  ;;  %v1355_v29 = vld [vmem:[#allocation2 + $0x888] sm:$0xff] }
 0x254   : > { %v1683_v49 = vpop.f32.mrf.mxu1 }
 0x255   : > { %v4301_v44 = vadd.f32 %v2016_v19, %v1904_v35  ;;  %1840 = vmatmul.f32.gmra.mxu2 %v1336_v34  ;;  %v2981_v19 = vld [vmem:[%s3172_s30 + $0x49] sm:$0xff]  ;;  %v1684_v54 = vadd.f32 %v1683_v49, %v4027_v28  ;;  %v1362_v35 = vld [vmem:[#allocation2 + $0x8c0] sm:$0xff] }
 0x256   : > { %1953 = vmatmul.f32.gmra.mxu3 %v1337_v41  ;;  %v2019_v47 = vpop.f32.mrf.mxu0  ;;  %988 = vst.msk [vmem:[#allocation2 + $0xc8] sm:$0xff] %vm535_vm0, %v2981_v19  ;;  %v2950_v41 = vld [vmem:[%s3172_s30 + $0x50] sm:$0xff] }
 0x257   : > { %1730 = vmatmul.f32.gmra.mxu1 %v1344_v43  ;;  %925 = vst.msk [vmem:[#allocation2 + $0x108] sm:$0xff] %vm535_vm0, %v2950_v41  ;;  %v1356_v43 = vld [vmem:[#allocation2 + $0x890] sm:$0xff]  ;;  %v3015_v41 = vld [vmem:[%s3172_s30 + $0x62] sm:$0xff] }
 0x258   : > { %v1793_v57 = vpop.f32.mrf.mxu2  ;;  %1054 = vst.msk [vmem:[#allocation2 + $0x160] sm:$0xff] %vm535_vm0, %v3015_v41 }
 0x259   : > { %v1794_v62 = vadd.f32 %v1793_v57, %v1681_v55  ;;  %v1906_v63 = vpop.f32.mrf.mxu3  ;;  %2066 = vmatmul.f32.gmra.mxu0 %v1338_v48  ;;  %v1363_v55 = vld [vmem:[#allocation2 + $0x8c8] sm:$0xff]  ;;  %863 = vst.msk [vmem:[#allocation2 + $0x1d8] sm:$0xff] %vm535_vm0, %v3015_v41 }
 0x25b   : > { %v1907_v32 = vadd.f32 %v1906_v63, %v1794_v62  ;;  %v1364_v62 = vld [vmem:[#allocation2 + $0x8d0] sm:$0xff] }
 0x25c   : > { %v1686_v8 = vpop.f32.mrf.mxu1 }
 0x25d   : > { %v4312_v20 = vadd.f32 %v2019_v47, %v1907_v32  ;;  %1843 = vmatmul.f32.gmra.mxu2 %v1345_v3  ;;  %v1687_v47 = vadd.f32 %v1686_v8, %v4051_v45  ;;  %v1087_v3 = vld [vmem:[#allocation2 + $0x28] sm:$0xff]  ;;  %v2951_v32 = vld [vmem:[%s3172_s30 + $0x60] sm:$0xff]  ;;  %v1365_v8 = vld [vmem:[#allocation2 + $0x8d8] sm:$0xff] }
 0x25e   : > { %1956 = vmatmul.f32.gmra.mxu3 %v1346_v56  ;;  %v2022_v33 = vpop.f32.mrf.mxu0  ;;  %926 = vst.msk [vmem:[#allocation2 + $0x150] sm:$0xff] %vm535_vm0, %v2951_v32  ;;  %v3016_v32 = vld [vmem:[%s3172_s30 + $0x6a] sm:$0xff] }
 0x25f   : > { %1733 = vmatmul.f32.gmra.mxu1 %v1353_v10  ;;  %v2983_v10 = vld [vmem:[%s3172_s30 + $0x61] sm:$0xff]  ;;  %1055 = vst.msk [vmem:[#allocation2 + $0x1a8] sm:$0xff] %vm535_vm0, %v3016_v32 }
 0x260   : > { %v1796_v58 = vpop.f32.mrf.mxu2  ;;  %990 = vst.msk [vmem:[#allocation2 + $0x158] sm:$0xff] %vm535_vm0, %v2983_v10 }
 0x261   : > { %v1797_v5 = vadd.f32 %v1796_v58, %v1684_v54  ;;  %v1909_v23 = vpop.f32.mrf.mxu3  ;;  %2069 = vmatmul.f32.gmra.mxu0 %v1347_v18  ;;  %v1088_v54 = vld [vmem:[#allocation2 + $0x30] sm:$0xff]  ;;  %864 = vst.msk [vmem:[#allocation2 + $0x220] sm:$0xff] %vm535_vm0, %v3016_v32 }
 0x263   : > { %v1910_v27 = vadd.f32 %v1909_v23, %v1797_v5  ;;  %v1089_v5 = vld [vmem:[#allocation2 + $0x38] sm:$0xff] }
 0x264   : > { %v1689_v34 = vpop.f32.mrf.mxu1 }
 0x265   : > { %v4322_v28 = vadd.f32 %v2022_v33, %v1910_v27  ;;  %1846 = vmatmul.f32.gmra.mxu2 %v1354_v26  ;;  %v1690_v33 = vadd.f32 %v1689_v34, %v4069_v0  ;;  %v1096_v26 = vld [vmem:[#allocation2 + $0x70] sm:$0xff]  ;;  %v2952_v27 = vld [vmem:[%s3172_s30 + $0x68] sm:$0xff]  ;;  %v1090_v34 = vld [vmem:[#allocation2 + $0x40] sm:$0xff] }
 0x266   : > { %1959 = vmatmul.f32.gmra.mxu3 %v1355_v29  ;;  %v2025_v49 = vpop.f32.mrf.mxu0  ;;  %927 = vst.msk [vmem:[#allocation2 + $0x198] sm:$0xff] %vm535_vm0, %v2952_v27  ;;  %v3017_v27 = vld [vmem:[%s3172_s30 + $0x7a] sm:$0xff] }
 0x267   : > { %1736 = vmatmul.f32.gmra.mxu1 %v1362_v35  ;;  %v2984_v35 = vld [vmem:[%s3172_s30 + $0x69] sm:$0xff]  ;;  %1056 = vst.msk [vmem:[#allocation2 + $0x1f0] sm:$0xff] %vm535_vm0, %v3017_v27 }
 0x268   : > { %v1799_v48 = vpop.f32.mrf.mxu2  ;;  %991 = vst.msk [vmem:[#allocation2 + $0x1a0] sm:$0xff] %vm535_vm0, %v2984_v35 }
 0x269   : > { %v1800_v51 = vadd.f32 %v1799_v48, %v1687_v47  ;;  %v1912_v53 = vpop.f32.mrf.mxu3  ;;  %2072 = vmatmul.f32.gmra.mxu0 %v1356_v43  ;;  %v1097_v47 = vld [vmem:[#allocation2 + $0x78] sm:$0xff]  ;;  %865 = vst.msk [vmem:[#allocation2 + $0x268] sm:$0xff] %vm535_vm0, %v3017_v27 }
 0x26b   : > { %v1913_v57 = vadd.f32 %v1912_v53, %v1800_v51  ;;  %v1098_v51 = vld [vmem:[#allocation2 + $0x80] sm:$0xff] }
 0x26c   : > { %v1692_v63 = vpop.f32.mrf.mxu1 }
 0x26d   : > { %v4332_v45 = vadd.f32 %v2025_v49, %v1913_v57  ;;  %1849 = vmatmul.f32.gmra.mxu2 %v1363_v55  ;;  %v1693_v49 = vadd.f32 %v1692_v63, %v3959_v50  ;;  %v1105_v55 = vld [vmem:[#allocation2 + $0xb8] sm:$0xff]  ;;  %v1099_v63 = vld [vmem:[#allocation2 + $0x88] sm:$0xff] }
 0x26e   : > { %1962 = vmatmul.f32.gmra.mxu3 %v1364_v62  ;;  %v2028_v56 = vpop.f32.mrf.mxu0  ;;  %v2953_v57 = vld [vmem:[%s3172_s30 + $0x78] sm:$0xff] }
 0x26f   : > { %2095 = vmatmul.f32.vlgmr.msra.gmra.mxu1 %v1087_v3  ;;  %928 = vst.msk [vmem:[#allocation2 + $0x1e0] sm:$0xff] %vm535_vm0, %v2953_v57  ;;  %v2985_v3 = vld [vmem:[%s3172_s30 + $0x79] sm:$0xff]  ;;  %v3018_v57 = vld [vmem:[%s3172_s30 + $0x82] sm:$0xff] }
 0x270   : > { %v1802_v18 = vpop.f32.mrf.mxu2  ;;  %992 = vst.msk [vmem:[#allocation2 + $0x1e8] sm:$0xff] %vm535_vm0, %v2985_v3 }
 0x271   : > { %v1803_v19 = vadd.f32 %v1802_v18, %v1690_v33  ;;  %v1915_v21 = vpop.f32.mrf.mxu3  ;;  %2075 = vmatmul.f32.gmra.mxu0 %v1365_v8  ;;  %v1106_v33 = vld [vmem:[#allocation2 + $0xc0] sm:$0xff]  ;;  %1057 = vst.msk [vmem:[#allocation2 + $0x238] sm:$0xff] %vm535_vm0, %v3018_v57 }
 0x272   : > { %866 = vst.msk [vmem:[#allocation2 + $0x2b0] sm:$0xff] %vm535_vm0, %v3018_v57 }
 0x273   : > { %v1916_v58 = vadd.f32 %v1915_v21, %v1803_v19  ;;  %v1107_v19 = vld [vmem:[#allocation2 + $0xc8] sm:$0xff] }
 0x274   : > { %v1695_v23 = vpop.f32.mrf.mxu1 }
 0x275   : > { %v4342_v0 = vadd.f32 %v2028_v56, %v1916_v58  ;;  %2208 = vmatmul.f32.vlgmr.msra.gmra.mxu2 %v1088_v54  ;;  %v1696_v56 = vadd.f32 %v1695_v23, %v3979_v1  ;;  %v1114_v54 = vld [vmem:[#allocation2 + $0x100] sm:$0xff]  ;;  %v1108_v23 = vld [vmem:[#allocation2 + $0xd0] sm:$0xff] }
 0x276   : > { %2321 = vmatmul.f32.vlgmr.msra.gmra.mxu3 %v1089_v5  ;;  %v2031_v29 = vpop.f32.mrf.mxu0  ;;  %v2954_v58 = vld [vmem:[%s3172_s30 + $0x80] sm:$0xff] }
 0x277   : > { %2098 = vmatmul.f32.gmra.mxu1 %v1096_v26  ;;  %929 = vst.msk [vmem:[#allocation2 + $0x228] sm:$0xff] %vm535_vm0, %v2954_v58  ;;  %v2986_v26 = vld [vmem:[%s3172_s30 + $0x81] sm:$0xff]  ;;  %v3019_v58 = vld [vmem:[%s3172_s30 + $0x92] sm:$0xff] }
 0x278   : > { %v1805_v43 = vpop.f32.mrf.mxu2  ;;  %993 = vst.msk [vmem:[#allocation2 + $0x230] sm:$0xff] %vm535_vm0, %v2986_v26 }
 0x279   : > { %v1806_v6 = vadd.f32 %v1805_v43, %v1693_v49  ;;  %v1918_v17 = vpop.f32.mrf.mxu3  ;;  %2434 = vmatmul.f32.vlgmr.msra.gmra.mxu0 %v1090_v34  ;;  %v1115_v49 = vld [vmem:[#allocation2 + $0x108] sm:$0xff]  ;;  %1058 = vst.msk [vmem:[#allocation2 + $0x280] sm:$0xff] %vm535_vm0, %v3019_v58 }
 0x27a   : > { %867 = vst.msk [vmem:[#allocation2 + $0x2f8] sm:$0xff] %vm535_vm0, %v3019_v58 }
 0x27b   : > { %v1919_v48 = vadd.f32 %v1918_v17, %v1806_v6  ;;  %v1116_v6 = vld [vmem:[#allocation2 + $0x110] sm:$0xff] }
 0x27c   : > { %v1698_v53 = vpop.f32.mrf.mxu1 }
 0x27d   : > { %v4352_v50 = vadd.f32 %v2031_v29, %v1919_v48  ;;  %2211 = vmatmul.f32.gmra.mxu2 %v1097_v47  ;;  %v1699_v29 = vadd.f32 %v1698_v53, %v4000_v42  ;;  %v1123_v47 = vld [vmem:[#allocation2 + $0x148] sm:$0xff]  ;;  %v2955_v48 = vld [vmem:[%s3172_s30 + $0x90] sm:$0xff]  ;;  %v1117_v53 = vld [vmem:[#allocation2 + $0x118] sm:$0xff] }
 0x27e   : > { %2324 = vmatmul.f32.gmra.mxu3 %v1098_v51  ;;  %v2034_v62 = vpop.f32.mrf.mxu0  ;;  %930 = vst.msk [vmem:[#allocation2 + $0x270] sm:$0xff] %vm535_vm0, %v2955_v48  ;;  %v3020_v48 = vld [vmem:[%s3172_s30 + $0x9a] sm:$0xff] }
 0x27f   : > { %2101 = vmatmul.f32.gmra.mxu1 %v1105_v55  ;;  %v2987_v55 = vld [vmem:[%s3172_s30 + $0x91] sm:$0xff]  ;;  %1059 = vst.msk [vmem:[#allocation2 + $0x2c8] sm:$0xff] %vm535_vm0, %v3020_v48 }
 0x280   : > { %v1808_v8 = vpop.f32.mrf.mxu2  ;;  %994 = vst.msk [vmem:[#allocation2 + $0x278] sm:$0xff] %vm535_vm0, %v2987_v55 }
 0x281   : > { %v1809_v10 = vadd.f32 %v1808_v8, %v1696_v56  ;;  %v1921_v46 = vpop.f32.mrf.mxu3  ;;  %2437 = vmatmul.f32.gmra.mxu0 %v1099_v63  ;;  %v1124_v56 = vld [vmem:[#allocation2 + $0x150] sm:$0xff]  ;;  %868 = vst.msk [vmem:[#allocation2 + $0x340] sm:$0xff] %vm535_vm0, %v3020_v48 }
 0x283   : > { %v1922_v18 = vadd.f32 %v1921_v46, %v1809_v10  ;;  %v1125_v10 = vld [vmem:[#allocation2 + $0x158] sm:$0xff] }
 0x284   : > { %v1701_v21 = vpop.f32.mrf.mxu1 }
 0x285   : > { %v4362_v1 = vadd.f32 %v2034_v62, %v1922_v18  ;;  %2214 = vmatmul.f32.gmra.mxu2 %v1106_v33  ;;  %v1702_v62 = vadd.f32 %v1701_v21, %v4021_v24  ;;  %v1132_v33 = vld [vmem:[#allocation2 + $0x190] sm:$0xff]  ;;  %v2956_v18 = vld [vmem:[%s3172_s30 + $0x98] sm:$0xff]  ;;  %v1126_v21 = vld [vmem:[#allocation2 + $0x160] sm:$0xff] }
 0x286   : > { %2327 = vmatmul.f32.gmra.mxu3 %v1107_v19  ;;  %v2037_v5 = vpop.f32.mrf.mxu0  ;;  %931 = vst.msk [vmem:[#allocation2 + $0x2b8] sm:$0xff] %vm535_vm0, %v2956_v18  ;;  %v3021_v18 = vld [vmem:[%s3172_s30 + $0xaa] sm:$0xff] }
 0x287   : > { %2104 = vmatmul.f32.gmra.mxu1 %v1114_v54  ;;  %v2988_v54 = vld [vmem:[%s3172_s30 + $0x99] sm:$0xff]  ;;  %1060 = vst.msk [vmem:[#allocation2 + $0x310] sm:$0xff] %vm535_vm0, %v3021_v18 }
 0x288   : > { %v1811_v34 = vpop.f32.mrf.mxu2  ;;  %995 = vst.msk [vmem:[#allocation2 + $0x2c0] sm:$0xff] %vm535_vm0, %v2988_v54 }
 0x289   : > { %v1812_v35 = vadd.f32 %v1811_v34, %v1699_v29  ;;  %v1924_v41 = vpop.f32.mrf.mxu3  ;;  %2440 = vmatmul.f32.gmra.mxu0 %v1108_v23  ;;  %v1133_v29 = vld [vmem:[#allocation2 + $0x198] sm:$0xff]  ;;  %869 = vst.msk [vmem:[#allocation2 + $0x388] sm:$0xff] %vm535_vm0, %v3021_v18 }
 0x28b   : > { %v1925_v43 = vadd.f32 %v1924_v41, %v1812_v35  ;;  %v1134_v35 = vld [vmem:[#allocation2 + $0x1a0] sm:$0xff] }
 0x28c   : > { %v1704_v17 = vpop.f32.mrf.mxu1 }
 0x28d   : > { %v4372_v42 = vadd.f32 %v2037_v5, %v1925_v43  ;;  %2217 = vmatmul.f32.gmra.mxu2 %v1115_v49  ;;  %v1705_v5 = vadd.f32 %v1704_v17, %v4042_v38  ;;  %v1141_v49 = vld [vmem:[#allocation2 + $0x1d8] sm:$0xff]  ;;  %v2957_v43 = vld [vmem:[%s3172_s30 + $0xa8] sm:$0xff] }
 0x28e   : > { %2330 = vmatmul.f32.gmra.mxu3 %v1116_v6  ;;  %v2040_v51 = vpop.f32.mrf.mxu0  ;;  %932 = vst.msk [vmem:[#allocation2 + $0x300] sm:$0xff] %vm535_vm0, %v2957_v43  ;;  %v1135_v17 = vld [vmem:[#allocation2 + $0x1a8] sm:$0xff]  ;;  %v3022_v43 = vld [vmem:[%s3172_s30 + $0xb2] sm:$0xff] }
 0x28f   : > { %2107 = vmatmul.f32.gmra.mxu1 %v1123_v47  ;;  %v2989_v47 = vld [vmem:[%s3172_s30 + $0xa9] sm:$0xff]  ;;  %1061 = vst.msk [vmem:[#allocation2 + $0x358] sm:$0xff] %vm535_vm0, %v3022_v43 }
 0x290   : > { %v1814_v63 = vpop.f32.mrf.mxu2  ;;  %996 = vst.msk [vmem:[#allocation2 + $0x308] sm:$0xff] %vm535_vm0, %v2989_v47 }
 0x291   : > { %v1815_v3 = vadd.f32 %v1814_v63, %v1702_v62  ;;  %v1927_v32 = vpop.f32.mrf.mxu3  ;;  %2443 = vmatmul.f32.gmra.mxu0 %v1117_v53  ;;  %v1142_v62 = vld [vmem:[#allocation2 + $0x1e0] sm:$0xff]  ;;  %870 = vst.msk [vmem:[#allocation2 + $0x3d0] sm:$0xff] %vm535_vm0, %v3022_v43 }
 0x293   : > { %v1928_v8 = vadd.f32 %v1927_v32, %v1815_v3  ;;  %v1143_v3 = vld [vmem:[#allocation2 + $0x1e8] sm:$0xff] }
 0x294   : > { %v1707_v46 = vpop.f32.mrf.mxu1 }
 0x295   : > { %v4382_v24 = vadd.f32 %v2040_v51, %v1928_v8  ;;  %2220 = vmatmul.f32.gmra.mxu2 %v1124_v56  ;;  %v1708_v51 = vadd.f32 %v1707_v46, %v4063_v59  ;;  %v1150_v56 = vld [vmem:[#allocation2 + $0x220] sm:$0xff]  ;;  %v2958_v8 = vld [vmem:[%s3172_s30 + $0xb0] sm:$0xff] }
 0x296   : > { %2333 = vmatmul.f32.gmra.mxu3 %v1125_v10  ;;  %v2043_v19 = vpop.f32.mrf.mxu0  ;;  %933 = vst.msk [vmem:[#allocation2 + $0x348] sm:$0xff] %vm535_vm0, %v2958_v8  ;;  %v1144_v46 = vld [vmem:[#allocation2 + $0x1f0] sm:$0xff]  ;;  %v3023_v8 = vld [vmem:[%s3172_s30 + $0xc2] sm:$0xff] }
 0x297   : > { %2110 = vmatmul.f32.gmra.mxu1 %v1132_v33  ;;  %v2990_v33 = vld [vmem:[%s3172_s30 + $0xb1] sm:$0xff]  ;;  %1062 = vst.msk [vmem:[#allocation2 + $0x3a0] sm:$0xff] %vm535_vm0, %v3023_v8 }
 0x298   : > { %v1817_v23 = vpop.f32.mrf.mxu2  ;;  %997 = vst.msk [vmem:[#allocation2 + $0x350] sm:$0xff] %vm535_vm0, %v2990_v33 }
 0x299   : > { %v1818_v26 = vadd.f32 %v1817_v23, %v1705_v5  ;;  %v1930_v27 = vpop.f32.mrf.mxu3  ;;  %2446 = vmatmul.f32.gmra.mxu0 %v1126_v21  ;;  %v1151_v5 = vld [vmem:[#allocation2 + $0x228] sm:$0xff]  ;;  %871 = vst.msk [vmem:[#allocation2 + $0x418] sm:$0xff] %vm535_vm0, %v3023_v8 }
 0x29b   : > { %v1931_v34 = vadd.f32 %v1930_v27, %v1818_v26  ;;  %v1152_v26 = vld [vmem:[#allocation2 + $0x230] sm:$0xff] }
 0x29c   : > { %v1710_v41 = vpop.f32.mrf.mxu1 }
 0x29d   : > { %v4392_v38 = vadd.f32 %v2043_v19, %v1931_v34  ;;  %2223 = vmatmul.f32.gmra.mxu2 %v1133_v29  ;;  %v1711_v19 = vadd.f32 %v1710_v41, %v4084_v14  ;;  %v1159_v29 = vld [vmem:[#allocation2 + $0x268] sm:$0xff]  ;;  %v2959_v34 = vld [vmem:[%s3172_s30 + $0xc0] sm:$0xff]  ;;  %v1153_v41 = vld [vmem:[#allocation2 + $0x238] sm:$0xff] }
 0x29e   : > { %2336 = vmatmul.f32.gmra.mxu3 %v1134_v35  ;;  %v2046_v6 = vpop.f32.mrf.mxu0  ;;  %934 = vst.msk [vmem:[#allocation2 + $0x390] sm:$0xff] %vm535_vm0, %v2959_v34  ;;  %v3024_v34 = vld [vmem:[%s3172_s30 + $0xca] sm:$0xff] }
 0x29f   : > { %2113 = vmatmul.f32.gmra.mxu1 %v1141_v49  ;;  %v2991_v49 = vld [vmem:[%s3172_s30 + $0xc1] sm:$0xff]  ;;  %1063 = vst.msk [vmem:[#allocation2 + $0x3e8] sm:$0xff] %vm535_vm0, %v3024_v34 }
 0x2a0   : > { %v1820_v53 = vpop.f32.mrf.mxu2  ;;  %998 = vst.msk [vmem:[#allocation2 + $0x398] sm:$0xff] %vm535_vm0, %v2991_v49 }
 0x2a1   : > { %v1821_v55 = vadd.f32 %v1820_v53, %v1708_v51  ;;  %v1933_v57 = vpop.f32.mrf.mxu3  ;;  %2449 = vmatmul.f32.gmra.mxu0 %v1135_v17  ;;  %v1160_v51 = vld [vmem:[#allocation2 + $0x270] sm:$0xff]  ;;  %872 = vst.msk [vmem:[#allocation2 + $0x460] sm:$0xff] %vm535_vm0, %v3024_v34 }
 0x2a3   : > { %v1934_v63 = vadd.f32 %v1933_v57, %v1821_v55  ;;  %v1161_v55 = vld [vmem:[#allocation2 + $0x278] sm:$0xff] }
 0x2a4   : > { %v1713_v32 = vpop.f32.mrf.mxu1 }
 0x2a5   : > { %v4402_v59 = vadd.f32 %v2046_v6, %v1934_v63  ;;  %2226 = vmatmul.f32.gmra.mxu2 %v1142_v62  ;;  %v1714_v6 = vadd.f32 %v1713_v32, %v4103_v30  ;;  %v1168_v62 = vld [vmem:[#allocation2 + $0x2b0] sm:$0xff]  ;;  %v2960_v63 = vld [vmem:[%s3172_s30 + $0xc8] sm:$0xff]  ;;  %v1162_v32 = vld [vmem:[#allocation2 + $0x280] sm:$0xff] }
 0x2a6   : > { %2339 = vmatmul.f32.gmra.mxu3 %v1143_v3  ;;  %v2049_v10 = vpop.f32.mrf.mxu0  ;;  %935 = vst.msk [vmem:[#allocation2 + $0x3d8] sm:$0xff] %vm535_vm0, %v2960_v63  ;;  %v3025_v63 = vld [vmem:[%s3172_s30 + $0xda] sm:$0xff] }
 0x2a7   : > { %2116 = vmatmul.f32.gmra.mxu1 %v1150_v56  ;;  %v2992_v56 = vld [vmem:[%s3172_s30 + $0xc9] sm:$0xff]  ;;  %1064 = vst.msk [vmem:[#allocation2 + $0x430] sm:$0xff] %vm535_vm0, %v3025_v63 }
 0x2a8   : > { %v1823_v21 = vpop.f32.mrf.mxu2  ;;  %999 = vst.msk [vmem:[#allocation2 + $0x3e0] sm:$0xff] %vm535_vm0, %v2992_v56 }
 0x2a9   : > { %v1824_v54 = vadd.f32 %v1823_v21, %v1711_v19  ;;  %v1936_v58 = vpop.f32.mrf.mxu3  ;;  %2452 = vmatmul.f32.gmra.mxu0 %v1144_v46  ;;  %v1169_v19 = vld [vmem:[#allocation2 + $0x2b8] sm:$0xff]  ;;  %873 = vst.msk [vmem:[#allocation2 + $0x4a8] sm:$0xff] %vm535_vm0, %v3025_v63 }
 0x2ab   : > { %v1937_v23 = vadd.f32 %v1936_v58, %v1824_v54  ;;  %v1170_v54 = vld [vmem:[#allocation2 + $0x2c0] sm:$0xff] }
 0x2ac   : > { %v1716_v27 = vpop.f32.mrf.mxu1 }
 0x2ad   : > { %v4412_v14 = vadd.f32 %v2049_v10, %v1937_v23  ;;  %2229 = vmatmul.f32.gmra.mxu2 %v1151_v5  ;;  %v1717_v10 = vadd.f32 %v1716_v27, %v3965_v52  ;;  %v1177_v5 = vld [vmem:[#allocation2 + $0x2f8] sm:$0xff]  ;;  %v1171_v27 = vld [vmem:[#allocation2 + $0x2c8] sm:$0xff] }
 0x2ae   : > { %2342 = vmatmul.f32.gmra.mxu3 %v1152_v26  ;;  %v2052_v35 = vpop.f32.mrf.mxu0  ;;  %v2961_v23 = vld [vmem:[%s3172_s30 + $0xd8] sm:$0xff] }
 0x2af   : > { %2119 = vmatmul.f32.gmra.mxu1 %v1159_v29  ;;  %936 = vst.msk [vmem:[#allocation2 + $0x420] sm:$0xff] %vm535_vm0, %v2961_v23  ;;  %v2993_v29 = vld [vmem:[%s3172_s30 + $0xd9] sm:$0xff]  ;;  %v3026_v23 = vld [vmem:[%s3172_s30 + $0xe2] sm:$0xff] }
 0x2b0   : > { %v1826_v17 = vpop.f32.mrf.mxu2  ;;  %1000 = vst.msk [vmem:[#allocation2 + $0x428] sm:$0xff] %vm535_vm0, %v2993_v29 }
 0x2b1   : > { %v1827_v47 = vadd.f32 %v1826_v17, %v1714_v6  ;;  %v1939_v48 = vpop.f32.mrf.mxu3  ;;  %2455 = vmatmul.f32.gmra.mxu0 %v1153_v41  ;;  %v1178_v6 = vld [vmem:[#allocation2 + $0x300] sm:$0xff]  ;;  %1065 = vst.msk [vmem:[#allocation2 + $0x478] sm:$0xff] %vm535_vm0, %v3026_v23 }
 0x2b2   : > { %874 = vst.msk [vmem:[#allocation2 + $0x4f0] sm:$0xff] %vm535_vm0, %v3026_v23 }
 0x2b3   : > { %v1940_v53 = vadd.f32 %v1939_v48, %v1827_v47  ;;  %v1179_v47 = vld [vmem:[#allocation2 + $0x308] sm:$0xff] }
 0x2b4   : > { %v1719_v57 = vpop.f32.mrf.mxu1 }
 0x2b5   : > { %v4422_v30 = vadd.f32 %v2052_v35, %v1940_v53  ;;  %2232 = vmatmul.f32.gmra.mxu2 %v1160_v51  ;;  %v1720_v35 = vadd.f32 %v1719_v57, %v3982_v2  ;;  %v1186_v51 = vld [vmem:[#allocation2 + $0x340] sm:$0xff]  ;;  %v1180_v57 = vld [vmem:[#allocation2 + $0x310] sm:$0xff] }
 0x2b6   : > { %2345 = vmatmul.f32.gmra.mxu3 %v1161_v55  ;;  %v2055_v3 = vpop.f32.mrf.mxu0  ;;  %v2962_v53 = vld [vmem:[%s3172_s30 + $0xe0] sm:$0xff] }
 0x2b7   : > { %2122 = vmatmul.f32.gmra.mxu1 %v1168_v62  ;;  %937 = vst.msk [vmem:[#allocation2 + $0x468] sm:$0xff] %vm535_vm0, %v2962_v53  ;;  %v2994_v62 = vld [vmem:[%s3172_s30 + $0xe1] sm:$0xff]  ;;  %v3027_v53 = vld [vmem:[%s3172_s30 + $0xf2] sm:$0xff] }
 0x2b8   : > { %v1829_v46 = vpop.f32.mrf.mxu2  ;;  %1001 = vst.msk [vmem:[#allocation2 + $0x470] sm:$0xff] %vm535_vm0, %v2994_v62 }
 0x2b9   : > { %v1830_v33 = vadd.f32 %v1829_v46, %v1717_v10  ;;  %v1942_v18 = vpop.f32.mrf.mxu3  ;;  %2458 = vmatmul.f32.gmra.mxu0 %v1162_v32  ;;  %v1187_v10 = vld [vmem:[#allocation2 + $0x348] sm:$0xff]  ;;  %1066 = vst.msk [vmem:[#allocation2 + $0x4c0] sm:$0xff] %vm535_vm0, %v3027_v53 }
 0x2ba   : > { %875 = vst.msk [vmem:[#allocation2 + $0x538] sm:$0xff] %vm535_vm0, %v3027_v53 }
 0x2bb   : > { %v1943_v21 = vadd.f32 %v1942_v18, %v1830_v33  ;;  %v1188_v33 = vld [vmem:[#allocation2 + $0x350] sm:$0xff] }
 0x2bc   : > { %v1722_v58 = vpop.f32.mrf.mxu1 }
 0x2bd   : > { %v4432_v52 = vadd.f32 %v2055_v3, %v1943_v21  ;;  %2235 = vmatmul.f32.gmra.mxu2 %v1169_v19  ;;  %v1723_v3 = vadd.f32 %v1722_v58, %v4006_v16  ;;  %v1195_v19 = vld [vmem:[#allocation2 + $0x388] sm:$0xff]  ;;  %v2963_v21 = vld [vmem:[%s3172_s30 + $0xf0] sm:$0xff]  ;;  %v1189_v58 = vld [vmem:[#allocation2 + $0x358] sm:$0xff] }
 0x2be   : > { %2348 = vmatmul.f32.gmra.mxu3 %v1170_v54  ;;  %v2058_v26 = vpop.f32.mrf.mxu0  ;;  %938 = vst.msk [vmem:[#allocation2 + $0x4b0] sm:$0xff] %vm535_vm0, %v2963_v21  ;;  %v3028_v21 = vld [vmem:[%s3172_s30 + $0xfa] sm:$0xff] }
 0x2bf   : > { %2125 = vmatmul.f32.gmra.mxu1 %v1177_v5  ;;  %v2995_v5 = vld [vmem:[%s3172_s30 + $0xf1] sm:$0xff]  ;;  %1067 = vst.msk [vmem:[#allocation2 + $0x508] sm:$0xff] %vm535_vm0, %v3028_v21 }
 0x2c0   : > { %v1832_v41 = vpop.f32.mrf.mxu2  ;;  %1002 = vst.msk [vmem:[#allocation2 + $0x4b8] sm:$0xff] %vm535_vm0, %v2995_v5 }
 0x2c1   : > { %v1833_v49 = vadd.f32 %v1832_v41, %v1720_v35  ;;  %v1945_v43 = vpop.f32.mrf.mxu3  ;;  %2461 = vmatmul.f32.gmra.mxu0 %v1171_v27  ;;  %v1196_v35 = vld [vmem:[#allocation2 + $0x390] sm:$0xff]  ;;  %876 = vst.msk [vmem:[#allocation2 + $0x580] sm:$0xff] %vm535_vm0, %v3028_v21 }
 0x2c3   : > { %v1946_v17 = vadd.f32 %v1945_v43, %v1833_v49  ;;  %v1197_v49 = vld [vmem:[#allocation2 + $0x398] sm:$0xff] }
 0x2c4   : > { %v1725_v48 = vpop.f32.mrf.mxu1 }
 0x2c5   : > { %v4442_v2 = vadd.f32 %v2058_v26, %v1946_v17  ;;  %2238 = vmatmul.f32.gmra.mxu2 %v1178_v6  ;;  %v1726_v26 = vadd.f32 %v1725_v48, %v4024_v25  ;;  %v1204_v6 = vld [vmem:[#allocation2 + $0x3d0] sm:$0xff]  ;;  %v2964_v17 = vld [vmem:[%s3172_s30 + $0xf8] sm:$0xff]  ;;  %v1198_v48 = vld [vmem:[#allocation2 + $0x3a0] sm:$0xff] }
 0x2c6   : > { %2351 = vmatmul.f32.gmra.mxu3 %v1179_v47  ;;  %v2061_v55 = vpop.f32.mrf.mxu0  ;;  %939 = vst.msk [vmem:[#allocation2 + $0x4f8] sm:$0xff] %vm535_vm0, %v2964_v17  ;;  %v3029_v17 = vld [vmem:[%s3172_s30 + $0x10a] sm:$0xff] }
 0x2c7   : > { %2128 = vmatmul.f32.gmra.mxu1 %v1186_v51  ;;  %v2996_v51 = vld [vmem:[%s3172_s30 + $0xf9] sm:$0xff]  ;;  %1068 = vst.msk [vmem:[#allocation2 + $0x550] sm:$0xff] %vm535_vm0, %v3029_v17 }
 0x2c8   : > { %v1835_v32 = vpop.f32.mrf.mxu2  ;;  %1003 = vst.msk [vmem:[#allocation2 + $0x500] sm:$0xff] %vm535_vm0, %v2996_v51 }
 0x2c9   : > { %v1836_v56 = vadd.f32 %v1835_v32, %v1723_v3  ;;  %v1948_v8 = vpop.f32.mrf.mxu3  ;;  %2464 = vmatmul.f32.gmra.mxu0 %v1180_v57  ;;  %v1205_v3 = vld [vmem:[#allocation2 + $0x3d8] sm:$0xff]  ;;  %877 = vst.msk [vmem:[#allocation2 + $0x5c8] sm:$0xff] %vm535_vm0, %v3029_v17 }
 0x2cb   : > { %v1949_v46 = vadd.f32 %v1948_v8, %v1836_v56  ;;  %v1206_v56 = vld [vmem:[#allocation2 + $0x3e0] sm:$0xff] }
 0x2cc   : > { %v1728_v18 = vpop.f32.mrf.mxu1 }
 0x2cd   : > { %v4452_v16 = vadd.f32 %v2061_v55, %v1949_v46  ;;  %2241 = vmatmul.f32.gmra.mxu2 %v1187_v10  ;;  %v1729_v55 = vadd.f32 %v1728_v18, %v4045_v39  ;;  %v1213_v10 = vld [vmem:[#allocation2 + $0x418] sm:$0xff]  ;;  %v2965_v46 = vld [vmem:[%s3172_s30 + $0x108] sm:$0xff] }
 0x2ce   : > { %2354 = vmatmul.f32.gmra.mxu3 %v1188_v33  ;;  %v2064_v54 = vpop.f32.mrf.mxu0  ;;  %940 = vst.msk [vmem:[#allocation2 + $0x540] sm:$0xff] %vm535_vm0, %v2965_v46  ;;  %v1207_v18 = vld [vmem:[#allocation2 + $0x3e8] sm:$0xff]  ;;  %v3030_v46 = vld [vmem:[%s3172_s30 + $0x112] sm:$0xff] }
 0x2cf   : > { %2131 = vmatmul.f32.gmra.mxu1 %v1195_v19  ;;  %v2997_v19 = vld [vmem:[%s3172_s30 + $0x109] sm:$0xff]  ;;  %1069 = vst.msk [vmem:[#allocation2 + $0x598] sm:$0xff] %vm535_vm0, %v3030_v46 }
 0x2d0   : > { %v1838_v27 = vpop.f32.mrf.mxu2  ;;  %1004 = vst.msk [vmem:[#allocation2 + $0x548] sm:$0xff] %vm535_vm0, %v2997_v19 }
 0x2d1   : > { %v1839_v29 = vadd.f32 %v1838_v27, %v1726_v26  ;;  %v1951_v34 = vpop.f32.mrf.mxu3  ;;  %2467 = vmatmul.f32.gmra.mxu0 %v1189_v58  ;;  %v1214_v26 = vld [vmem:[#allocation2 + $0x420] sm:$0xff]  ;;  %878 = vst.msk [vmem:[#allocation2 + $0x610] sm:$0xff] %vm535_vm0, %v3030_v46 }
 0x2d3   : > { %v1952_v41 = vadd.f32 %v1951_v34, %v1839_v29  ;;  %v1215_v29 = vld [vmem:[#allocation2 + $0x428] sm:$0xff] }
 0x2d4   : > { %v1731_v43 = vpop.f32.mrf.mxu1 }
 0x2d5   : > { %v4462_v25 = vadd.f32 %v2064_v54, %v1952_v41  ;;  %2244 = vmatmul.f32.gmra.mxu2 %v1196_v35  ;;  %v1732_v54 = vadd.f32 %v1731_v43, %v4066_v61  ;;  %v1222_v35 = vld [vmem:[#allocation2 + $0x460] sm:$0xff]  ;;  %v2966_v41 = vld [vmem:[%s3172_s30 + $0x110] sm:$0xff] }
 0x2d6   : > { %2357 = vmatmul.f32.gmra.mxu3 %v1197_v49  ;;  %v2067_v47 = vpop.f32.mrf.mxu0  ;;  %941 = vst.msk [vmem:[#allocation2 + $0x588] sm:$0xff] %vm535_vm0, %v2966_v41  ;;  %v1216_v43 = vld [vmem:[#allocation2 + $0x430] sm:$0xff]  ;;  %v3031_v41 = vld [vmem:[%s3172_s30 + $0x122] sm:$0xff] }
 0x2d7   : > { %2134 = vmatmul.f32.gmra.mxu1 %v1204_v6  ;;  %v2998_v6 = vld [vmem:[%s3172_s30 + $0x111] sm:$0xff]  ;;  %1070 = vst.msk [vmem:[#allocation2 + $0x5e0] sm:$0xff] %vm535_vm0, %v3031_v41 }
 0x2d8   : > { %v1841_v57 = vpop.f32.mrf.mxu2  ;;  %1005 = vst.msk [vmem:[#allocation2 + $0x590] sm:$0xff] %vm535_vm0, %v2998_v6 }
 0x2d9   : > { %v1842_v62 = vadd.f32 %v1841_v57, %v1729_v55  ;;  %v1954_v63 = vpop.f32.mrf.mxu3  ;;  %2470 = vmatmul.f32.gmra.mxu0 %v1198_v48  ;;  %v1223_v55 = vld [vmem:[#allocation2 + $0x468] sm:$0xff]  ;;  %879 = vst.msk [vmem:[#allocation2 + $0x658] sm:$0xff] %vm535_vm0, %v3031_v41 }
 0x2db   : > { %v1955_v32 = vadd.f32 %v1954_v63, %v1842_v62  ;;  %v1224_v62 = vld [vmem:[#allocation2 + $0x470] sm:$0xff] }
 0x2dc   : > { %v1734_v8 = vpop.f32.mrf.mxu1 }
 0x2dd   : > { %v4472_v39 = vadd.f32 %v2067_v47, %v1955_v32  ;;  %2247 = vmatmul.f32.gmra.mxu2 %v1205_v3  ;;  %v1735_v47 = vadd.f32 %v1734_v8, %v4087_v15  ;;  %v1231_v3 = vld [vmem:[#allocation2 + $0x4a8] sm:$0xff]  ;;  %v2967_v32 = vld [vmem:[%s3172_s30 + $0x120] sm:$0xff]  ;;  %v1225_v8 = vld [vmem:[#allocation2 + $0x478] sm:$0xff] }
 0x2de   : > { %2360 = vmatmul.f32.gmra.mxu3 %v1206_v56  ;;  %v2070_v33 = vpop.f32.mrf.mxu0  ;;  %942 = vst.msk [vmem:[#allocation2 + $0x5d0] sm:$0xff] %vm535_vm0, %v2967_v32  ;;  %v3032_v32 = vld [vmem:[%s3172_s30 + $0x12a] sm:$0xff] }
 0x2df   : > { %2137 = vmatmul.f32.gmra.mxu1 %v1213_v10  ;;  %v2999_v10 = vld [vmem:[%s3172_s30 + $0x121] sm:$0xff]  ;;  %1071 = vst.msk [vmem:[#allocation2 + $0x628] sm:$0xff] %vm535_vm0, %v3032_v32 }
 0x2e0   : > { %v1844_v58 = vpop.f32.mrf.mxu2  ;;  %1006 = vst.msk [vmem:[#allocation2 + $0x5d8] sm:$0xff] %vm535_vm0, %v2999_v10 }
 0x2e1   : > { %v1845_v5 = vadd.f32 %v1844_v58, %v1732_v54  ;;  %v1957_v23 = vpop.f32.mrf.mxu3  ;;  %2473 = vmatmul.f32.gmra.mxu0 %v1207_v18  ;;  %v1232_v54 = vld [vmem:[#allocation2 + $0x4b0] sm:$0xff]  ;;  %880 = vst.msk [vmem:[#allocation2 + $0x6a0] sm:$0xff] %vm535_vm0, %v3032_v32 }
 0x2e3   : > { %v1958_v27 = vadd.f32 %v1957_v23, %v1845_v5  ;;  %v1233_v5 = vld [vmem:[#allocation2 + $0x4b8] sm:$0xff] }
 0x2e4   : > { %v1737_v34 = vpop.f32.mrf.mxu1 }
 0x2e5   : > { %v4482_v61 = vadd.f32 %v2070_v33, %v1958_v27  ;;  %2250 = vmatmul.f32.gmra.mxu2 %v1214_v26  ;;  %v1738_v33 = vadd.f32 %v1737_v34, %v4106_v31  ;;  %v1240_v26 = vld [vmem:[#allocation2 + $0x4f0] sm:$0xff]  ;;  %v2968_v27 = vld [vmem:[%s3172_s30 + $0x128] sm:$0xff]  ;;  %v1234_v34 = vld [vmem:[#allocation2 + $0x4c0] sm:$0xff] }
 0x2e6   : > { %2363 = vmatmul.f32.gmra.mxu3 %v1215_v29  ;;  %v2073_v49 = vpop.f32.mrf.mxu0  ;;  %943 = vst.msk [vmem:[#allocation2 + $0x618] sm:$0xff] %vm535_vm0, %v2968_v27  ;;  %v3002_v27 = vld [vmem:[%s3172_s30 + $0x141] sm:$0xff] }
 0x2e7   : > { %2140 = vmatmul.f32.gmra.mxu1 %v1222_v35  ;;  %v3000_v35 = vld [vmem:[%s3172_s30 + $0x129] sm:$0xff]  ;;  %1009 = vst.msk [vmem:[#allocation2 + $0x6b0] sm:$0xff] %vm535_vm0, %v3002_v27 }
 0x2e8   : > { %v1847_v48 = vpop.f32.mrf.mxu2  ;;  %1007 = vst.msk [vmem:[#allocation2 + $0x620] sm:$0xff] %vm535_vm0, %v3000_v35 }
 0x2e9   : > { %v1848_v51 = vadd.f32 %v1847_v48, %v1735_v47  ;;  %v1960_v53 = vpop.f32.mrf.mxu3  ;;  %2476 = vmatmul.f32.gmra.mxu0 %v1216_v43  ;;  %v1241_v47 = vld [vmem:[#allocation2 + $0x4f8] sm:$0xff] }
 0x2eb   : > { %v1961_v57 = vadd.f32 %v1960_v53, %v1848_v51  ;;  %v1242_v51 = vld [vmem:[#allocation2 + $0x500] sm:$0xff]  ;;  %v1249_v53 = vld [vmem:[#allocation2 + $0x538] sm:$0xff] }
 0x2ec   : > { %v2096_v63 = vpop.f32.mrf.mxu1 }
 0x2ed   : > { %v4492_v15 = vadd.f32 %v2073_v49, %v1961_v57  ;;  %2253 = vmatmul.f32.gmra.mxu2 %v1223_v55  ;;  %v2097_v49 = vadd.f32 %v2096_v63, %v4127_v13  ;;  %v2969_v55 = vld [vmem:[%s3172_s30 + $0x138] sm:$0xff]  ;;  %v1243_v63 = vld [vmem:[#allocation2 + $0x508] sm:$0xff] }
 0x2ee   : > { %2366 = vmatmul.f32.gmra.mxu3 %v1224_v62  ;;  %v2076_v56 = vpop.f32.mrf.mxu0  ;;  %944 = vst.msk [vmem:[#allocation2 + $0x660] sm:$0xff] %vm535_vm0, %v2969_v55  ;;  %v1260_v55 = vld [vmem:[#allocation2 + $0x590] sm:$0xff] }
 0x2ef   : > { %2143 = vmatmul.f32.gmra.mxu1 %v1231_v3  ;;  %v3001_v3 = vld [vmem:[%s3172_s30 + $0x139] sm:$0xff] }
 0x2f0   : > { %v1850_v18 = vpop.f32.mrf.mxu2  ;;  %1008 = vst.msk [vmem:[#allocation2 + $0x668] sm:$0xff] %vm535_vm0, %v3001_v3 }
 0x2f1   : > { %v1851_v19 = vadd.f32 %v1850_v18, %v1738_v33  ;;  %v1963_v21 = vpop.f32.mrf.mxu3  ;;  %2479 = vmatmul.f32.gmra.mxu0 %v1225_v8  ;;  %v1250_v33 = vld [vmem:[#allocation2 + $0x540] sm:$0xff] }
 0x2f3   : > { %v1964_v58 = vadd.f32 %v1963_v21, %v1851_v19  ;;  %v1251_v19 = vld [vmem:[#allocation2 + $0x548] sm:$0xff] }
 0x2f4   : > { %v2099_v23 = vpop.f32.mrf.mxu1 }
 0x2f5   : > { %v4502_v31 = vadd.f32 %v2076_v56, %v1964_v58  ;;  %2256 = vmatmul.f32.gmra.mxu2 %v1232_v54  ;;  %v2100_v56 = vadd.f32 %v2099_v23, %v4140_v40  ;;  %v1258_v40 = vld [vmem:[#allocation2 + $0x580] sm:$0xff] }
 0x2f6   : > { %2369 = vmatmul.f32.gmra.mxu3 %v1233_v5  ;;  %v2435_v29 = vpop.f32.mrf.mxu0  ;;  %v2970_v54 = vld [vmem:[%s3172_s30 + $0x140] sm:$0xff] }
 0x2f7   : > { %2146 = vmatmul.f32.gmra.mxu1 %v1240_v26  ;;  %945 = vst.msk [vmem:[#allocation2 + $0x6a8] sm:$0xff] %vm535_vm0, %v2970_v54  ;;  %v1252_v26 = vld [vmem:[#allocation2 + $0x550] sm:$0xff] }
 0x2f8   : > { %v2209_v43 = vpop.f32.mrf.mxu2 }
 0x2f9   : > { %v2210_v6 = vadd.f32 %v2209_v43, %v2097_v49  ;;  %v2322_v17 = vpop.f32.mrf.mxu3  ;;  %2482 = vmatmul.f32.gmra.mxu0 %v1234_v34 }
 0x2fb   : > { %v2323_v48 = vadd.f32 %v2322_v17, %v2210_v6 }
 0x2fc   : > { %v2102_v13 = vpop.f32.mrf.mxu1 }
 0x2fd   : > { %v2436_v57 = vadd.f32 %v2435_v29, %v2323_v48  ;;  %2259 = vmatmul.f32.gmra.mxu2 %v1241_v47  ;;  %v3033_v29 = vld [vmem:[%s3172_s30 + $0x13a] sm:$0xff]  ;;  %v2103_v35 = vadd.f32 %v2102_v13, %v4159_v12  ;;  %v1259_v13 = vld [vmem:[#allocation2 + $0x588] sm:$0xff] }
 0x2fe   : > { %2372 = vmatmul.f32.gmra.mxu3 %v1242_v51  ;;  %v2438_v62 = vpop.f32.mrf.mxu0  ;;  %1072 = vst.msk [vmem:[#allocation2 + $0x670] sm:$0xff] %vm535_vm0, %v3033_v29 }
 0x2ff   : > { %2703 = vst.msk [vmem:[%s4515_s10] sm:$0xff] %vm535_vm0, %v2436_v57  ;;  %2149 = vmatmul.f32.gmra.mxu1 %v1249_v53  ;;  %v2601_v58 = vmul.f32 %v2436_v57, %v2436_v57  ;;  %v2531_v34 = vsel %vm535_vm0, %v2436_v57, 0.0 }
 0x300   : > { %v2212_v8 = vpop.f32.mrf.mxu2  ;;  %881 = vst.msk [vmem:[#allocation2 + $0x6e8] sm:$0xff] %vm535_vm0, %v3033_v29  ;;  %v1276_v29 = vld [vmem:[#allocation2 + $0x610] sm:$0xff] }
 0x301   : > { %v2213_v10 = vadd.f32 %v2212_v8, %v2100_v56  ;;  %v2325_v46 = vpop.f32.mrf.mxu3  ;;  %2485 = vmatmul.f32.gmra.mxu0 %v1243_v63  ;;  %v2633_v17 = vsel %vm535_vm0, %v2601_v58, 0.0  ;;  %v2971_v63 = vld [vmem:[%s3172_s30 + $0x150] sm:$0xff]  ;;  %v1261_v56 = vld [vmem:[#allocation2 + $0x598] sm:$0xff] }
 0x302   : > { %946 = vst.msk [vmem:[#allocation2 + $0x6f0] sm:$0xff] %vm535_vm0, %v2971_v63  ;;  %v3003_v8 = vld [vmem:[%s3172_s30 + $0x151] sm:$0xff]  ;;  %v1278_v63 = vld [vmem:[#allocation2 + $0x620] sm:$0xff] }
 0x303   : > { %v2326_v18 = vadd.f32 %v2325_v46, %v2213_v10  ;;  %v3034_v10 = vld [vmem:[%s3172_s30 + $0x142] sm:$0xff]  ;;  %1010 = vst.msk [vmem:[#allocation2 + $0x6f8] sm:$0xff] %vm535_vm0, %v3003_v8 }
 0x304   : > { %v2105_v21 = vpop.f32.mrf.mxu1  ;;  %1073 = vst.msk [vmem:[#allocation2 + $0x6b8] sm:$0xff] %vm535_vm0, %v3034_v10 }
 0x305   : > { %v2439_v5 = vadd.f32 %v2438_v62, %v2326_v18  ;;  %2262 = vmatmul.f32.gmra.mxu2 %v1250_v33  ;;  %v1267_v62 = vld [vmem:[#allocation2 + $0x5c8] sm:$0xff]  ;;  %v2106_v46 = vadd.f32 %v2105_v21, %v4172_v36  ;;  %v1268_v21 = vld [vmem:[#allocation2 + $0x5d0] sm:$0xff]  ;;  %882 = vst.msk [vmem:[#allocation2 + $0x730] sm:$0xff] %vm535_vm0, %v3034_v10 }
 0x306   : > { %2375 = vmatmul.f32.gmra.mxu3 %v1251_v19  ;;  %v2441_v23 = vpop.f32.mrf.mxu0 }
 0x307   : > { %v2532_v41 = vsel %vm535_vm0, %v2439_v5, 0.0  ;;  %v2602_v49 = vmul.f32 %v2439_v5, %v2439_v5  ;;  %2704 = vst.msk [vmem:[%s4515_s10 + $0x8] sm:$0xff] %vm535_vm0, %v2439_v5  ;;  %2152 = vmatmul.f32.gmra.mxu1 %v1258_v40 }
 0x308   : > { %v2533_v43 = vadd.f32 %v2532_v41, %v2531_v34  ;;  %v2215_v6 = vpop.f32.mrf.mxu2  ;;  %v2972_v34 = vld [vmem:[%s3172_s30 + $0x158] sm:$0xff] }
 0x309   : > { %v2634_v47 = vsel %vm535_vm0, %v2602_v49, 0.0  ;;  %v2216_v48 = vadd.f32 %v2215_v6, %v2103_v35  ;;  %v2328_v51 = vpop.f32.mrf.mxu3  ;;  %2488 = vmatmul.f32.gmra.mxu0 %v1252_v26  ;;  %v1269_v26 = vld [vmem:[#allocation2 + $0x5d8] sm:$0xff]  ;;  %947 = vst.msk [vmem:[#allocation2 + $0x738] sm:$0xff] %vm535_vm0, %v2972_v34  ;;  %v1270_v49 = vld [vmem:[#allocation2 + $0x5e0] sm:$0xff] }
 0x30a   : > { %v2635_v12 = vadd.f32 %v2634_v47, %v2633_v17  ;;  %v3035_v6 = vld [vmem:[%s3172_s30 + $0x152] sm:$0xff] }
 0x30b   : > { %v2329_v53 = vadd.f32 %v2328_v51, %v2216_v48  ;;  %1074 = vst.msk [vmem:[#allocation2 + $0x700] sm:$0xff] %vm535_vm0, %v3035_v6 }
 0x30c   : > { %v2108_v57 = vpop.f32.mrf.mxu1  ;;  %883 = vst.msk [vmem:[#allocation2 + $0x778] sm:$0xff] %vm535_vm0, %v3035_v6  ;;  %v1288_v6 = vld [vmem:[#allocation2 + $0x670] sm:$0xff] }
 0x30d   : > { %v2442_v3 = vadd.f32 %v2441_v23, %v2329_v53  ;;  %2265 = vmatmul.f32.gmra.mxu2 %v1259_v13  ;;  %v2109_v17 = vadd.f32 %v2108_v57, %v4191_v11  ;;  %v1277_v57 = vld [vmem:[#allocation2 + $0x618] sm:$0xff] }
 0x30e   : > { %2378 = vmatmul.f32.gmra.mxu3 %v1260_v55  ;;  %v2444_v32 = vpop.f32.mrf.mxu0 }
 0x30f   : > { %v2534_v33 = vsel %vm535_vm0, %v2442_v3, 0.0  ;;  %v2603_v18 = vmul.f32 %v2442_v3, %v2442_v3  ;;  %2705 = vst.msk [vmem:[%s4515_s10 + $0x10] sm:$0xff] %vm535_vm0, %v2442_v3  ;;  %2155 = vmatmul.f32.gmra.mxu1 %v1267_v62 }
 0x310   : > { %v2535_v19 = vadd.f32 %v2534_v33, %v2533_v43  ;;  %v2218_v40 = vpop.f32.mrf.mxu2  ;;  %v3004_v43 = vld [vmem:[%s3172_s30 + $0x159] sm:$0xff]  ;;  %v3005_v33 = vld [vmem:[%s3172_s30 + $0x169] sm:$0xff] }
 0x311   : > { %v2636_v54 = vsel %vm535_vm0, %v2603_v18, 0.0  ;;  %v2219_v58 = vadd.f32 %v2218_v40, %v2106_v46  ;;  %v2331_v5 = vpop.f32.mrf.mxu3  ;;  %2491 = vmatmul.f32.gmra.mxu0 %v1261_v56  ;;  %1011 = vst.msk [vmem:[#allocation2 + $0x740] sm:$0xff] %vm535_vm0, %v3004_v43  ;;  %v2973_v56 = vld [vmem:[%s3172_s30 + $0x168] sm:$0xff]  ;;  %v3036_v18 = vld [vmem:[%s3172_s30 + $0x15a] sm:$0xff] }
 0x312   : > { %v2637_v36 = vadd.f32 %v2636_v54, %v2635_v12  ;;  %948 = vst.msk [vmem:[#allocation2 + $0x780] sm:$0xff] %vm535_vm0, %v2973_v56  ;;  %v1279_v46 = vld [vmem:[#allocation2 + $0x628] sm:$0xff] }
 0x313   : > { %v2332_v23 = vadd.f32 %v2331_v5, %v2219_v58  ;;  %1012 = vst.msk [vmem:[#allocation2 + $0x788] sm:$0xff] %vm535_vm0, %v3005_v33  ;;  %v1303_v56 = vld [vmem:[#allocation2 + $0x6e8] sm:$0xff]  ;;  %v1297_v33 = vld [vmem:[#allocation2 + $0x6b8] sm:$0xff] }
 0x314   : > { %v2111_v27 = vpop.f32.mrf.mxu1  ;;  %1075 = vst.msk [vmem:[#allocation2 + $0x748] sm:$0xff] %vm535_vm0, %v3036_v18 }
 0x315   : > { %v2445_v35 = vadd.f32 %v2444_v32, %v2332_v23  ;;  %2268 = vmatmul.f32.gmra.mxu2 %v1268_v21  ;;  %v1285_v32 = vld [vmem:[#allocation2 + $0x658] sm:$0xff]  ;;  %884 = vst.msk [vmem:[#allocation2 + $0x7c0] sm:$0xff] %vm535_vm0, %v3036_v18  ;;  %v3007_v18 = vld [vmem:[%s3172_s30 + $0x181] sm:$0xff] }
 0x316   : > { %2381 = vmatmul.f32.gmra.mxu3 %v1269_v26  ;;  %v2447_v41 = vpop.f32.mrf.mxu0  ;;  %v1286_v26 = vld [vmem:[#allocation2 + $0x660] sm:$0xff]  ;;  %1014 = vst.msk [vmem:[#allocation2 + $0x818] sm:$0xff] %vm535_vm0, %v3007_v18  ;;  %v3040_v18 = vld [vmem:[%s3172_s30 + $0x18a] sm:$0xff] }
 0x317   : > { %v2536_v47 = vsel %vm535_vm0, %v2445_v35, 0.0  ;;  %v2604_v48 = vmul.f32 %v2445_v35, %v2445_v35  ;;  %2706 = vst.msk [vmem:[%s4515_s10 + $0x18] sm:$0xff] %vm535_vm0, %v2445_v35  ;;  %2158 = vmatmul.f32.gmra.mxu1 %v1276_v29  ;;  %v1287_v29 = vld [vmem:[#allocation2 + $0x668] sm:$0xff]  ;;  %v1294_v35 = vld [vmem:[#allocation2 + $0x6a0] sm:$0xff] }
 0x318   : > { %v2537_v51 = vadd.f32 %v2536_v47, %v2535_v19  ;;  %v2221_v12 = vpop.f32.mrf.mxu2  ;;  %v2112_v19 = vadd.f32 %v2111_v27, %v4204_v37  ;;  %v3037_v47 = vld [vmem:[%s3172_s30 + $0x16a] sm:$0xff]  ;;  %1079 = vst.msk [vmem:[#allocation2 + $0x868] sm:$0xff] %vm535_vm0, %v3040_v18 }
 0x319   : > { %v2638_v13 = vsel %vm535_vm0, %v2604_v48, 0.0  ;;  %v2222_v53 = vadd.f32 %v2221_v12, %v2109_v17  ;;  %v2334_v55 = vpop.f32.mrf.mxu3  ;;  %2494 = vmatmul.f32.gmra.mxu0 %v1270_v49  ;;  %v3006_v17 = vld [vmem:[%s3172_s30 + $0x171] sm:$0xff]  ;;  %1076 = vst.msk [vmem:[#allocation2 + $0x790] sm:$0xff] %vm535_vm0, %v3037_v47 }
 0x31a   : > { %v2639_v11 = vadd.f32 %v2638_v13, %v2637_v36  ;;  %1013 = vst.msk [vmem:[#allocation2 + $0x7d0] sm:$0xff] %vm535_vm0, %v3006_v17  ;;  %v3008_v17 = vld [vmem:[%s3172_s30 + $0x189] sm:$0xff] }
 0x31b   : > { %v2335_v62 = vadd.f32 %v2334_v55, %v2222_v53  ;;  %885 = vst.msk [vmem:[#allocation2 + $0x808] sm:$0xff] %vm535_vm0, %v3037_v47  ;;  %v3039_v47 = vld [vmem:[%s3172_s30 + $0x182] sm:$0xff] }
 0x31c   : > { %v2114_v3 = vpop.f32.mrf.mxu1  ;;  %1015 = vst.msk [vmem:[#allocation2 + $0x860] sm:$0xff] %vm535_vm0, %v3008_v17 }
 0x31d   : > { %v2448_v8 = vadd.f32 %v2447_v41, %v2335_v62  ;;  %2271 = vmatmul.f32.gmra.mxu2 %v1277_v57  ;;  %v2974_v41 = vld [vmem:[%s3172_s30 + $0x170] sm:$0xff]  ;;  %v2115_v48 = vadd.f32 %v2114_v3, %v4223_v9  ;;  %v1295_v62 = vld [vmem:[#allocation2 + $0x6a8] sm:$0xff]  ;;  %1078 = vst.msk [vmem:[#allocation2 + $0x820] sm:$0xff] %vm535_vm0, %v3039_v47 }
 0x31e   : > { %2384 = vmatmul.f32.gmra.mxu3 %v1278_v63  ;;  %v2450_v10 = vpop.f32.mrf.mxu0  ;;  %949 = vst.msk [vmem:[#allocation2 + $0x7c8] sm:$0xff] %vm535_vm0, %v2974_v41  ;;  %v1296_v3 = vld [vmem:[#allocation2 + $0x6b0] sm:$0xff]  ;;  %v2976_v41 = vld [vmem:[%s3172_s30 + $0x188] sm:$0xff] }
 0x31f   : > { %v2538_v40 = vsel %vm535_vm0, %v2448_v8, 0.0  ;;  %v2605_v54 = vmul.f32 %v2448_v8, %v2448_v8  ;;  %2707 = vst.msk [vmem:[%s4515_s10 + $0x20] sm:$0xff] %vm535_vm0, %v2448_v8  ;;  %2161 = vmatmul.f32.gmra.mxu1 %v1285_v32  ;;  %v2975_v8 = vld [vmem:[%s3172_s30 + $0x180] sm:$0xff] }
 0x320   : > { %v2539_v58 = vadd.f32 %v2538_v40, %v2537_v51  ;;  %v2224_v5 = vpop.f32.mrf.mxu2  ;;  %950 = vst.msk [vmem:[#allocation2 + $0x810] sm:$0xff] %vm535_vm0, %v2975_v8 }
 0x321   : > { %v2640_v36 = vsel %vm535_vm0, %v2605_v54, 0.0  ;;  %v2225_v21 = vadd.f32 %v2224_v5, %v2112_v19  ;;  %v2337_v23 = vpop.f32.mrf.mxu3  ;;  %2497 = vmatmul.f32.gmra.mxu0 %v1279_v46  ;;  %v3038_v19 = vld [vmem:[%s3172_s30 + $0x172] sm:$0xff]  ;;  %951 = vst.msk [vmem:[#allocation2 + $0x858] sm:$0xff] %vm535_vm0, %v2976_v41 }
 0x322   : > { %v2641_v37 = vadd.f32 %v2640_v36, %v2639_v11  ;;  %1077 = vst.msk [vmem:[#allocation2 + $0x7d8] sm:$0xff] %vm535_vm0, %v3038_v19 }
 0x323   : > { %v2338_v27 = vadd.f32 %v2337_v23, %v2225_v21  ;;  %886 = vst.msk [vmem:[#allocation2 + $0x850] sm:$0xff] %vm535_vm0, %v3038_v19 }
 0x324   : > { %v2117_v34 = vpop.f32.mrf.mxu1  ;;  %887 = vst.msk [vmem:[#allocation2 + $0x898] sm:$0xff] %vm535_vm0, %v3039_v47 }
 0x325   : > { %v2451_v49 = vadd.f32 %v2450_v10, %v2338_v27  ;;  %2274 = vmatmul.f32.gmra.mxu2 %v1286_v26  ;;  %v2118_v40 = vadd.f32 %v2117_v34, %v4236_v60  ;;  %v1304_v26 = vld [vmem:[#allocation2 + $0x6f0] sm:$0xff]  ;;  %888 = vst.msk [vmem:[#allocation2 + $0x8e0] sm:$0xff] %vm535_vm0, %v3040_v18 }
 0x326   : > { %2387 = vmatmul.f32.gmra.mxu3 %v1287_v29  ;;  %v2453_v43 = vpop.f32.mrf.mxu0  ;;  %v1305_v29 = vld [vmem:[#allocation2 + $0x6f8] sm:$0xff] }
 0x327   : > { %v2540_v51 = vsel %vm535_vm0, %v2451_v49, 0.0  ;;  %v2606_v12 = vmul.f32 %v2451_v49, %v2451_v49  ;;  %2708 = vst.msk [vmem:[%s4515_s10 + $0x28] sm:$0xff] %vm535_vm0, %v2451_v49  ;;  %2164 = vmatmul.f32.gmra.mxu1 %v1294_v35  ;;  %v1312_v35 = vld [vmem:[#allocation2 + $0x730] sm:$0xff] }
 0x328   : > { %v2541_v13 = vadd.f32 %v2540_v51, %v2539_v58  ;;  %v2227_v53 = vpop.f32.mrf.mxu2 }
 0x329   : > { %v2642_v55 = vsel %vm535_vm0, %v2606_v12, 0.0  ;;  %v2228_v11 = vadd.f32 %v2227_v53, %v2115_v48  ;;  %v2340_v57 = vpop.f32.mrf.mxu3  ;;  %2500 = vmatmul.f32.gmra.mxu0 %v1288_v6  ;;  %v1306_v6 = vld [vmem:[#allocation2 + $0x700] sm:$0xff] }
 0x32a   : > { %v2643_v9 = vadd.f32 %v2642_v55, %v2641_v37 }
 0x32b   : > { %v2341_v63 = vadd.f32 %v2340_v57, %v2228_v11 }
 0x32c   : > { %v2120_v32 = vpop.f32.mrf.mxu1 }
 0x32d   : > { %v2454_v10 = vadd.f32 %v2453_v43, %v2341_v63  ;;  %2277 = vmatmul.f32.gmra.mxu2 %v1295_v62  ;;  %v2121_v48 = vadd.f32 %v2120_v32, %v4255_v7  ;;  %v1314_v63 = vld [vmem:[#allocation2 + $0x740] sm:$0xff]  ;;  %v1321_v32 = vld [vmem:[#allocation2 + $0x778] sm:$0xff] }
 0x32e   : > { %2390 = vmatmul.f32.gmra.mxu3 %v1296_v3  ;;  %v2456_v46 = vpop.f32.mrf.mxu0 }
 0x32f   : > { %v2542_v54 = vsel %vm535_vm0, %v2454_v10, 0.0  ;;  %v2607_v58 = vmul.f32 %v2454_v10, %v2454_v10  ;;  %2709 = vst.msk [vmem:[%s4515_s10 + $0x30] sm:$0xff] %vm535_vm0, %v2454_v10  ;;  %2167 = vmatmul.f32.gmra.mxu1 %v1303_v56  ;;  %v2977_v56 = vld [vmem:[%s3172_s30 + $0x198] sm:$0xff] }
 0x330   : > { %v2543_v5 = vadd.f32 %v2542_v54, %v2541_v13  ;;  %v2230_v36 = vpop.f32.mrf.mxu2  ;;  %952 = vst.msk [vmem:[#allocation2 + $0x8a0] sm:$0xff] %vm535_vm0, %v2977_v56  ;;  %v3042_v56 = vld [vmem:[%s3172_s30 + $0x1a2] sm:$0xff] }
 0x331   : > { %v2644_v21 = vsel %vm535_vm0, %v2607_v58, 0.0  ;;  %v2231_v23 = vadd.f32 %v2230_v36, %v2118_v40  ;;  %v2343_v37 = vpop.f32.mrf.mxu3  ;;  %2503 = vmatmul.f32.gmra.mxu0 %v1297_v33  ;;  %v3009_v33 = vld [vmem:[%s3172_s30 + $0x199] sm:$0xff]  ;;  %1081 = vst.msk [vmem:[#allocation2 + $0x8f8] sm:$0xff] %vm535_vm0, %v3042_v56 }
 0x332   : > { %v2645_v60 = vadd.f32 %v2644_v21, %v2643_v9  ;;  %v1313_v9 = vld [vmem:[#allocation2 + $0x738] sm:$0xff]  ;;  %1016 = vst.msk [vmem:[#allocation2 + $0x8a8] sm:$0xff] %vm535_vm0, %v3009_v33 }
 0x333   : > { %v2344_v27 = vadd.f32 %v2343_v37, %v2231_v23  ;;  %v1322_v37 = vld [vmem:[#allocation2 + $0x780] sm:$0xff] }
 0x334   : > { %v2123_v34 = vpop.f32.mrf.mxu1 }
 0x335   : > { %v2457_v49 = vadd.f32 %v2456_v46, %v2344_v27  ;;  %2280 = vmatmul.f32.gmra.mxu2 %v1304_v26  ;;  %v1315_v46 = vld [vmem:[#allocation2 + $0x748] sm:$0xff]  ;;  %v2124_v19 = vadd.f32 %v2123_v34, %v4268_v22  ;;  %v2978_v34 = vld [vmem:[%s3172_s30 + $0x1a0] sm:$0xff] }
 0x336   : > { %2393 = vmatmul.f32.gmra.mxu3 %v1305_v29  ;;  %v2459_v43 = vpop.f32.mrf.mxu0  ;;  %v1323_v26 = vld [vmem:[#allocation2 + $0x788] sm:$0xff]  ;;  %v1330_v29 = vld [vmem:[#allocation2 + $0x7c0] sm:$0xff]  ;;  %953 = vst.msk [vmem:[#allocation2 + $0x8e8] sm:$0xff] %vm535_vm0, %v2978_v34 }
 0x337   : > { %v2544_v51 = vsel %vm535_vm0, %v2457_v49, 0.0  ;;  %v2608_v12 = vmul.f32 %v2457_v49, %v2457_v49  ;;  %2710 = vst.msk [vmem:[%s4515_s10 + $0x38] sm:$0xff] %vm535_vm0, %v2457_v49  ;;  %2170 = vmatmul.f32.gmra.mxu1 %v1312_v35  ;;  %v1324_v49 = vld [vmem:[#allocation2 + $0x790] sm:$0xff] }
 0x338   : > { %v2545_v13 = vadd.f32 %v2544_v51, %v2543_v5  ;;  %v2233_v53 = vpop.f32.mrf.mxu2 }
 0x339   : > { %v2646_v55 = vsel %vm535_vm0, %v2608_v12, 0.0  ;;  %v2234_v11 = vadd.f32 %v2233_v53, %v2121_v48  ;;  %v2346_v57 = vpop.f32.mrf.mxu3  ;;  %2506 = vmatmul.f32.gmra.mxu0 %v1306_v6  ;;  %v3041_v6 = vld [vmem:[%s3172_s30 + $0x19a] sm:$0xff] }
 0x33a   : > { %v2647_v7 = vadd.f32 %v2646_v55, %v2645_v60  ;;  %1080 = vst.msk [vmem:[#allocation2 + $0x8b0] sm:$0xff] %vm535_vm0, %v3041_v6 }
 0x33b   : > { %v2347_v62 = vadd.f32 %v2346_v57, %v2234_v11  ;;  %v1331_v11 = vld [vmem:[#allocation2 + $0x7c8] sm:$0xff] }
 0x33c   : > { %v2126_v3 = vpop.f32.mrf.mxu1 }
 0x33d   : > { %v2460_v8 = vadd.f32 %v2459_v43, %v2347_v62  ;;  %2283 = vmatmul.f32.gmra.mxu2 %v1313_v9  ;;  %v3010_v43 = vld [vmem:[%s3172_s30 + $0x1a1] sm:$0xff]  ;;  %v2127_v17 = vadd.f32 %v2126_v3, %v4286_v4 }
 0x33e   : > { %2396 = vmatmul.f32.gmra.mxu3 %v1314_v63  ;;  %v2462_v10 = vpop.f32.mrf.mxu0  ;;  %1017 = vst.msk [vmem:[#allocation2 + $0x8f0] sm:$0xff] %vm535_vm0, %v3010_v43  ;;  %v1339_v62 = vld [vmem:[#allocation2 + $0x808] sm:$0xff] }
 0x33f   : > { %v2546_v40 = vsel %vm535_vm0, %v2460_v8, 0.0  ;;  %v2609_v54 = vmul.f32 %v2460_v8, %v2460_v8  ;;  %2711 = vst.msk [vmem:[%s4515_s10 + $0x40] sm:$0xff] %vm535_vm0, %v2460_v8  ;;  %2173 = vmatmul.f32.gmra.mxu1 %v1321_v32  ;;  %v1333_v32 = vld [vmem:[#allocation2 + $0x7d8] sm:$0xff] }
 0x340   : > { %v2547_v58 = vadd.f32 %v2546_v40, %v2545_v13  ;;  %v2236_v5 = vpop.f32.mrf.mxu2 }
 0x341   : > { %v2648_v36 = vsel %vm535_vm0, %v2609_v54, 0.0  ;;  %v2237_v21 = vadd.f32 %v2236_v5, %v2124_v19  ;;  %v2349_v23 = vpop.f32.mrf.mxu3  ;;  %2509 = vmatmul.f32.gmra.mxu0 %v1315_v46  ;;  %v1340_v5 = vld [vmem:[#allocation2 + $0x810] sm:$0xff] }
 0x342   : > { %v2649_v22 = vadd.f32 %v2648_v36, %v2647_v7  ;;  %v1332_v7 = vld [vmem:[#allocation2 + $0x7d0] sm:$0xff] }
 0x343   : > { %v2350_v60 = vadd.f32 %v2349_v23, %v2237_v21  ;;  %v1348_v23 = vld [vmem:[#allocation2 + $0x850] sm:$0xff] }
 0x344   : > { %v2129_v27 = vpop.f32.mrf.mxu1 }
 0x345   : > { %v2463_v35 = vadd.f32 %v2462_v10, %v2350_v60  ;;  %2286 = vmatmul.f32.gmra.mxu2 %v1322_v37  ;;  %v2130_v8 = vadd.f32 %v2129_v27, %v4301_v44  ;;  %v1341_v44 = vld [vmem:[#allocation2 + $0x818] sm:$0xff]  ;;  %v1342_v60 = vld [vmem:[#allocation2 + $0x820] sm:$0xff] }
 0x346   : > { %2399 = vmatmul.f32.gmra.mxu3 %v1323_v26  ;;  %v2465_v41 = vpop.f32.mrf.mxu0 }
 0x347   : > { %v2548_v47 = vsel %vm535_vm0, %v2463_v35, 0.0  ;;  %v2610_v48 = vmul.f32 %v2463_v35, %v2463_v35  ;;  %2712 = vst.msk [vmem:[%s4515_s10 + $0x48] sm:$0xff] %vm535_vm0, %v2463_v35  ;;  %2176 = vmatmul.f32.gmra.mxu1 %v1330_v29 }
 0x348   : > { %v2549_v51 = vadd.f32 %v2548_v47, %v2547_v58  ;;  %v2239_v12 = vpop.f32.mrf.mxu2 }
 0x349   : > { %v2650_v13 = vsel %vm535_vm0, %v2610_v48, 0.0  ;;  %v2240_v53 = vadd.f32 %v2239_v12, %v2127_v17  ;;  %v2352_v55 = vpop.f32.mrf.mxu3  ;;  %2512 = vmatmul.f32.gmra.mxu0 %v1324_v49  ;;  %v1349_v17 = vld [vmem:[#allocation2 + $0x858] sm:$0xff]  ;;  %v1350_v48 = vld [vmem:[#allocation2 + $0x860] sm:$0xff] }
 0x34a   : > { %v2651_v4 = vadd.f32 %v2650_v13, %v2649_v22 }
 0x34b   : > { %v2353_v57 = vadd.f32 %v2352_v55, %v2240_v53  ;;  %v1351_v53 = vld [vmem:[#allocation2 + $0x868] sm:$0xff] }
 0x34c   : > { %v2132_v9 = vpop.f32.mrf.mxu1 }
 0x34d   : > { %v2466_v63 = vadd.f32 %v2465_v41, %v2353_v57  ;;  %2289 = vmatmul.f32.gmra.mxu2 %v1331_v11  ;;  %v2133_v26 = vadd.f32 %v2132_v9, %v4312_v20  ;;  %v1357_v20 = vld [vmem:[#allocation2 + $0x898] sm:$0xff] }
 0x34e   : > { %2402 = vmatmul.f32.gmra.mxu3 %v1332_v7  ;;  %v2468_v3 = vpop.f32.mrf.mxu0 }
 0x34f   : > { %v2550_v10 = vsel %vm535_vm0, %v2466_v63, 0.0  ;;  %v2611_v46 = vmul.f32 %v2466_v63, %v2466_v63  ;;  %2713 = vst.msk [vmem:[%s4515_s10 + $0x50] sm:$0xff] %vm535_vm0, %v2466_v63  ;;  %2179 = vmatmul.f32.gmra.mxu1 %v1339_v62 }
 0x350   : > { %v2551_v33 = vadd.f32 %v2550_v10, %v2549_v51  ;;  %v2242_v18 = vpop.f32.mrf.mxu2 }
 0x351   : > { %v2652_v19 = vsel %vm535_vm0, %v2611_v46, 0.0  ;;  %v2243_v40 = vadd.f32 %v2242_v18, %v2130_v8  ;;  %v2355_v54 = vpop.f32.mrf.mxu3  ;;  %2515 = vmatmul.f32.gmra.mxu0 %v1333_v32  ;;  %v1358_v32 = vld [vmem:[#allocation2 + $0x8a0] sm:$0xff]  ;;  %v1359_v8 = vld [vmem:[#allocation2 + $0x8a8] sm:$0xff]  ;;  %v1360_v18 = vld [vmem:[#allocation2 + $0x8b0] sm:$0xff] }
 0x352   : > { %v2653_v58 = vadd.f32 %v2652_v19, %v2651_v4 }
 0x353   : > { %v2356_v36 = vadd.f32 %v2355_v54, %v2243_v40 }
 0x354   : > { %v2135_v21 = vpop.f32.mrf.mxu1 }
 0x355   : > { %v2469_v22 = vadd.f32 %v2468_v3, %v2356_v36  ;;  %2292 = vmatmul.f32.gmra.mxu2 %v1340_v5  ;;  %v2136_v55 = vadd.f32 %v2135_v21, %v4322_v28  ;;  %v1366_v28 = vld [vmem:[#allocation2 + $0x8e0] sm:$0xff] }
 0x356   : > { %2405 = vmatmul.f32.gmra.mxu3 %v1341_v44  ;;  %v2471_v37 = vpop.f32.mrf.mxu0 }
 0x357   : > { %v2552_v27 = vsel %vm535_vm0, %v2469_v22, 0.0  ;;  %v2612_v29 = vmul.f32 %v2469_v22, %v2469_v22  ;;  %2714 = vst.msk [vmem:[%s4515_s10 + $0x58] sm:$0xff] %vm535_vm0, %v2469_v22  ;;  %2182 = vmatmul.f32.gmra.mxu1 %v1348_v23  ;;  %v1367_v22 = vld [vmem:[#allocation2 + $0x8e8] sm:$0xff] }
 0x358   : > { %v2553_v34 = vadd.f32 %v2552_v27, %v2551_v33  ;;  %v2245_v35 = vpop.f32.mrf.mxu2 }
 0x359   : > { %v2654_v41 = vsel %vm535_vm0, %v2612_v29, 0.0  ;;  %v2246_v49 = vadd.f32 %v2245_v35, %v2133_v26  ;;  %v2358_v43 = vpop.f32.mrf.mxu3  ;;  %2518 = vmatmul.f32.gmra.mxu0 %v1342_v60  ;;  %v1368_v60 = vld [vmem:[#allocation2 + $0x8f0] sm:$0xff]  ;;  %v1369_v29 = vld [vmem:[#allocation2 + $0x8f8] sm:$0xff] }
 0x35a   : > { %v2655_v6 = vadd.f32 %v2654_v41, %v2653_v58 }
 0x35b   : > { %v2359_v47 = vadd.f32 %v2358_v43, %v2246_v49 }
 0x35c   : > { %v2138_v51 = vpop.f32.mrf.mxu1 }
 0x35d   : > { %v2472_v12 = vadd.f32 %v2471_v37, %v2359_v47  ;;  %2295 = vmatmul.f32.gmra.mxu2 %v1349_v17  ;;  %v2139_v19 = vadd.f32 %v2138_v51, %v4332_v45 }
 0x35e   : > { %2408 = vmatmul.f32.gmra.mxu3 %v1350_v48  ;;  %v2474_v13 = vpop.f32.mrf.mxu0 }
 0x35f   : > { %v2554_v4 = vsel %vm535_vm0, %v2472_v12, 0.0  ;;  %v2613_v11 = vmul.f32 %v2472_v12, %v2472_v12  ;;  %2715 = vst.msk [vmem:[%s4515_s10 + $0x60] sm:$0xff] %vm535_vm0, %v2472_v12  ;;  %2185 = vmatmul.f32.gmra.mxu1 %v1357_v20 }
 0x360   : > { %v2555_v57 = vadd.f32 %v2554_v4, %v2553_v34  ;;  %v2248_v7 = vpop.f32.mrf.mxu2 }
 0x361   : > { %v2656_v9 = vsel %vm535_vm0, %v2613_v11, 0.0  ;;  %v2249_v62 = vadd.f32 %v2248_v7, %v2136_v55  ;;  %v2361_v63 = vpop.f32.mrf.mxu3  ;;  %2521 = vmatmul.f32.gmra.mxu0 %v1351_v53 }
 0x362   : > { %v2657_v3 = vadd.f32 %v2656_v9, %v2655_v6 }
 0x363   : > { %v2362_v56 = vadd.f32 %v2361_v63, %v2249_v62 }
 0x364   : > { %v2141_v10 = vpop.f32.mrf.mxu1 }
 0x365   : > { %v2475_v46 = vadd.f32 %v2474_v13, %v2362_v56  ;;  %2298 = vmatmul.f32.gmra.mxu2 %v1358_v32  ;;  %v2142_v34 = vadd.f32 %v2141_v10, %v4342_v0 }
 0x366   : > { %2411 = vmatmul.f32.gmra.mxu3 %v1359_v8  ;;  %v2477_v33 = vpop.f32.mrf.mxu0 }
 0x367   : > { %v2556_v40 = vsel %vm535_vm0, %v2475_v46, 0.0  ;;  %v2614_v54 = vmul.f32 %v2475_v46, %v2475_v46  ;;  %2716 = vst.msk [vmem:[%s4515_s10 + $0x68] sm:$0xff] %vm535_vm0, %v2475_v46  ;;  %2188 = vmatmul.f32.gmra.mxu1 %v1366_v28 }
 0x368   : > { %v2557_v58 = vadd.f32 %v2556_v40, %v2555_v57  ;;  %v2251_v5 = vpop.f32.mrf.mxu2 }
 0x369   : > { %v2658_v36 = vsel %vm535_vm0, %v2614_v54, 0.0  ;;  %v2252_v44 = vadd.f32 %v2251_v5, %v2139_v19  ;;  %v2364_v21 = vpop.f32.mrf.mxu3  ;;  %2524 = vmatmul.f32.gmra.mxu0 %v1360_v18 }
 0x36a   : > { %v2659_v23 = vadd.f32 %v2658_v36, %v2657_v3 }
 0x36b   : > { %v2365_v37 = vadd.f32 %v2364_v21, %v2252_v44 }
 0x36c   : > { %v2144_v26 = vpop.f32.mrf.mxu1 }
 0x36d   : > { %v2478_v45 = vadd.f32 %v2477_v33, %v2365_v37  ;;  %2301 = vmatmul.f32.gmra.mxu2 %v1367_v22  ;;  %v2145_v0 = vadd.f32 %v2144_v26, %v4352_v50 }
 0x36e   : > { %2414 = vmatmul.f32.gmra.mxu3 %v1368_v60  ;;  %v2480_v27 = vpop.f32.mrf.mxu0 }
 0x36f   : > { %v2558_v35 = vsel %vm535_vm0, %v2478_v45, 0.0  ;;  %v2615_v41 = vmul.f32 %v2478_v45, %v2478_v45  ;;  %2717 = vst.msk [vmem:[%s4515_s10 + $0x70] sm:$0xff] %vm535_vm0, %v2478_v45 }
 0x370   : > { %v2559_v49 = vadd.f32 %v2558_v35, %v2557_v58  ;;  %v2254_v43 = vpop.f32.mrf.mxu2 }
 0x371   : > { %v2660_v6 = vsel %vm535_vm0, %v2615_v41, 0.0  ;;  %v2255_v17 = vadd.f32 %v2254_v43, %v2142_v34  ;;  %v2367_v47 = vpop.f32.mrf.mxu3  ;;  %2527 = vmatmul.f32.gmra.mxu0 %v1369_v29 }
 0x372   : > { %v2661_v48 = vadd.f32 %v2660_v6, %v2659_v23 }
 0x373   : > { %v2368_v51 = vadd.f32 %v2367_v47, %v2255_v17 }
 0x374   : > { %v2147_v20 = vpop.f32.mrf.mxu1 }
 0x375   : > { %v2481_v12 = vadd.f32 %v2480_v27, %v2368_v51  ;;  %v2148_v8 = vadd.f32 %v2147_v20, %v4362_v1 }
 0x376   : > { %v2483_v13 = vpop.f32.mrf.mxu0 }
 0x377   : > { %v2560_v53 = vsel %vm535_vm0, %v2481_v12, 0.0  ;;  %v2616_v55 = vmul.f32 %v2481_v12, %v2481_v12  ;;  %2718 = vst.msk [vmem:[%s4515_s10 + $0x78] sm:$0xff] %vm535_vm0, %v2481_v12 }
 0x378   : > { %v2561_v4 = vadd.f32 %v2560_v53, %v2559_v49  ;;  %v2257_v11 = vpop.f32.mrf.mxu2 }
 0x379   : > { %v2662_v57 = vsel %vm535_vm0, %v2616_v55, 0.0  ;;  %v2258_v7 = vadd.f32 %v2257_v11, %v2145_v0  ;;  %v2370_v9 = vpop.f32.mrf.mxu3 }
 0x37a   : > { %v2663_v62 = vadd.f32 %v2662_v57, %v2661_v48 }
 0x37b   : > { %v2371_v63 = vadd.f32 %v2370_v9, %v2258_v7 }
 0x37c   : > { %v2150_v3 = vpop.f32.mrf.mxu1 }
 0x37d   : > { %v2484_v32 = vadd.f32 %v2483_v13, %v2371_v63  ;;  %v2151_v44 = vadd.f32 %v2150_v3, %v4372_v42 }
 0x37e   : > { %v2486_v56 = vpop.f32.mrf.mxu0 }
 0x37f   : > { %v2562_v50 = vsel %vm535_vm0, %v2484_v32, 0.0  ;;  %v2617_v10 = vmul.f32 %v2484_v32, %v2484_v32  ;;  %2719 = vst.msk [vmem:[%s4515_s10 + $0x80] sm:$0xff] %vm535_vm0, %v2484_v32 }
 0x380   : > { %v2563_v28 = vadd.f32 %v2562_v50, %v2561_v4  ;;  %v2260_v46 = vpop.f32.mrf.mxu2 }
 0x381   : > { %v2664_v33 = vsel %vm535_vm0, %v2617_v10, 0.0  ;;  %v2261_v18 = vadd.f32 %v2260_v46, %v2148_v8  ;;  %v2373_v19 = vpop.f32.mrf.mxu3 }
 0x382   : > { %v2665_v40 = vadd.f32 %v2664_v33, %v2663_v62 }
 0x383   : > { %v2374_v54 = vadd.f32 %v2373_v19, %v2261_v18 }
 0x384   : > { %v2153_v58 = vpop.f32.mrf.mxu1 }
 0x385   : > { %v2487_v5 = vadd.f32 %v2486_v56, %v2374_v54  ;;  %v2154_v41 = vadd.f32 %v2153_v58, %v4382_v24 }
 0x386   : > { %v2489_v36 = vpop.f32.mrf.mxu0 }
 0x387   : > { %v2564_v1 = vsel %vm535_vm0, %v2487_v5, 0.0  ;;  %v2618_v21 = vmul.f32 %v2487_v5, %v2487_v5  ;;  %2720 = vst.msk [vmem:[%s4515_s10 + $0x88] sm:$0xff] %vm535_vm0, %v2487_v5 }
 0x388   : > { %v2565_v23 = vadd.f32 %v2564_v1, %v2563_v28  ;;  %v2263_v22 = vpop.f32.mrf.mxu2 }
 0x389   : > { %v2666_v37 = vsel %vm535_vm0, %v2618_v21, 0.0  ;;  %v2264_v60 = vadd.f32 %v2263_v22, %v2151_v44  ;;  %v2376_v26 = vpop.f32.mrf.mxu3 }
 0x38a   : > { %v2667_v45 = vadd.f32 %v2666_v37, %v2665_v40 }
 0x38b   : > { %v2377_v27 = vadd.f32 %v2376_v26, %v2264_v60 }
 0x38c   : > { %v2156_v29 = vpop.f32.mrf.mxu1 }
 0x38d   : > { %v2490_v34 = vadd.f32 %v2489_v36, %v2377_v27  ;;  %v2157_v53 = vadd.f32 %v2156_v29, %v4392_v38 }
 0x38e   : > { %v2492_v35 = vpop.f32.mrf.mxu0 }
 0x38f   : > { %v2566_v42 = vsel %vm535_vm0, %v2490_v34, 0.0  ;;  %v2619_v49 = vmul.f32 %v2490_v34, %v2490_v34  ;;  %2721 = vst.msk [vmem:[%s4515_s10 + $0x90] sm:$0xff] %vm535_vm0, %v2490_v34 }
 0x390   : > { %v2567_v43 = vadd.f32 %v2566_v42, %v2565_v23  ;;  %v2266_v6 = vpop.f32.mrf.mxu2 }
 0x391   : > { %v2668_v17 = vsel %vm535_vm0, %v2619_v49, 0.0  ;;  %v2267_v47 = vadd.f32 %v2266_v6, %v2154_v41  ;;  %v2379_v48 = vpop.f32.mrf.mxu3 }
 0x392   : > { %v2669_v51 = vadd.f32 %v2668_v17, %v2667_v45 }
 0x393   : > { %v2380_v20 = vadd.f32 %v2379_v48, %v2267_v47 }
 0x394   : > { %v2159_v12 = vpop.f32.mrf.mxu1 }
 0x395   : > { %v2493_v13 = vadd.f32 %v2492_v35, %v2380_v20  ;;  %v2160_v8 = vadd.f32 %v2159_v12, %v4402_v59 }
 0x396   : > { %v2495_v0 = vpop.f32.mrf.mxu0 }
 0x397   : > { %v2568_v24 = vsel %vm535_vm0, %v2493_v13, 0.0  ;;  %v2620_v55 = vmul.f32 %v2493_v13, %v2493_v13  ;;  %2722 = vst.msk [vmem:[%s4515_s10 + $0x98] sm:$0xff] %vm535_vm0, %v2493_v13 }
 0x398   : > { %v2569_v4 = vadd.f32 %v2568_v24, %v2567_v43  ;;  %v2269_v11 = vpop.f32.mrf.mxu2 }
 0x399   : > { %v2670_v57 = vsel %vm535_vm0, %v2620_v55, 0.0  ;;  %v2270_v7 = vadd.f32 %v2269_v11, %v2157_v53  ;;  %v2382_v9 = vpop.f32.mrf.mxu3 }
 0x39a   : > { %v2671_v62 = vadd.f32 %v2670_v57, %v2669_v51 }
 0x39b   : > { %v2383_v63 = vadd.f32 %v2382_v9, %v2270_v7 }
 0x39c   : > { %v2162_v3 = vpop.f32.mrf.mxu1 }
 0x39d   : > { %v2496_v32 = vadd.f32 %v2495_v0, %v2383_v63  ;;  %v2163_v36 = vadd.f32 %v2162_v3, %v4412_v14 }
 0x39e   : > { %v2498_v56 = vpop.f32.mrf.mxu0 }
 0x39f   : > { %v2570_v38 = vsel %vm535_vm0, %v2496_v32, 0.0  ;;  %v2621_v50 = vmul.f32 %v2496_v32, %v2496_v32  ;;  %2723 = vst.msk [vmem:[%s4515_s10 + $0xa0] sm:$0xff] %vm535_vm0, %v2496_v32 }
 0x3a0   : > { %v2571_v10 = vadd.f32 %v2570_v38, %v2569_v4  ;;  %v2272_v28 = vpop.f32.mrf.mxu2 }
 0x3a1   : > { %v2672_v46 = vsel %vm535_vm0, %v2621_v50, 0.0  ;;  %v2273_v33 = vadd.f32 %v2272_v28, %v2160_v8  ;;  %v2385_v18 = vpop.f32.mrf.mxu3 }
 0x3a2   : > { %v2673_v19 = vadd.f32 %v2672_v46, %v2671_v62 }
 0x3a3   : > { %v2386_v40 = vadd.f32 %v2385_v18, %v2273_v33 }
 0x3a4   : > { %v2165_v54 = vpop.f32.mrf.mxu1 }
 0x3a5   : > { %v2499_v58 = vadd.f32 %v2498_v56, %v2386_v40  ;;  %v2166_v34 = vadd.f32 %v2165_v54, %v4422_v30 }
 0x3a6   : > { %v2501_v5 = vpop.f32.mrf.mxu0 }
 0x3a7   : > { %v2572_v59 = vsel %vm535_vm0, %v2499_v58, 0.0  ;;  %v2622_v44 = vmul.f32 %v2499_v58, %v2499_v58  ;;  %2724 = vst.msk [vmem:[%s4515_s10 + $0xa8] sm:$0xff] %vm535_vm0, %v2499_v58 }
 0x3a8   : > { %v2573_v1 = vadd.f32 %v2572_v59, %v2571_v10  ;;  %v2275_v21 = vpop.f32.mrf.mxu2 }
 0x3a9   : > { %v2674_v23 = vsel %vm535_vm0, %v2622_v44, 0.0  ;;  %v2276_v22 = vadd.f32 %v2275_v21, %v2163_v36  ;;  %v2388_v37 = vpop.f32.mrf.mxu3 }
 0x3aa   : > { %v2675_v60 = vadd.f32 %v2674_v23, %v2673_v19 }
 0x3ab   : > { %v2389_v26 = vadd.f32 %v2388_v37, %v2276_v22 }
 0x3ac   : > { %v2168_v45 = vpop.f32.mrf.mxu1 }
 0x3ad   : > { %v2502_v27 = vadd.f32 %v2501_v5, %v2389_v26  ;;  %v2169_v12 = vadd.f32 %v2168_v45, %v4432_v52 }
 0x3ae   : > { %v2504_v29 = vpop.f32.mrf.mxu0 }
 0x3af   : > { %v2574_v14 = vsel %vm535_vm0, %v2502_v27, 0.0  ;;  %v2623_v35 = vmul.f32 %v2502_v27, %v2502_v27  ;;  %2725 = vst.msk [vmem:[%s4515_s10 + $0xb0] sm:$0xff] %vm535_vm0, %v2502_v27 }
 0x3b0   : > { %v2575_v41 = vadd.f32 %v2574_v14, %v2573_v1  ;;  %v2278_v42 = vpop.f32.mrf.mxu2 }
 0x3b1   : > { %v2676_v49 = vsel %vm535_vm0, %v2623_v35, 0.0  ;;  %v2279_v43 = vadd.f32 %v2278_v42, %v2166_v34  ;;  %v2391_v6 = vpop.f32.mrf.mxu3 }
 0x3b2   : > { %v2677_v17 = vadd.f32 %v2676_v49, %v2675_v60 }
 0x3b3   : > { %v2392_v47 = vadd.f32 %v2391_v6, %v2279_v43 }
 0x3b4   : > { %v2171_v48 = vpop.f32.mrf.mxu1 }
 0x3b5   : > { %v2505_v51 = vadd.f32 %v2504_v29, %v2392_v47  ;;  %v2172_v63 = vadd.f32 %v2171_v48, %v4442_v2 }
 0x3b6   : > { %v2507_v20 = vpop.f32.mrf.mxu0 }
 0x3b7   : > { %v2576_v30 = vsel %vm535_vm0, %v2505_v51, 0.0  ;;  %v2624_v13 = vmul.f32 %v2505_v51, %v2505_v51  ;;  %2726 = vst.msk [vmem:[%s4515_s10 + $0xb8] sm:$0xff] %vm535_vm0, %v2505_v51 }
 0x3b8   : > { %v2577_v0 = vadd.f32 %v2576_v30, %v2575_v41  ;;  %v2281_v53 = vpop.f32.mrf.mxu2 }
 0x3b9   : > { %v2678_v24 = vsel %vm535_vm0, %v2624_v13, 0.0  ;;  %v2282_v55 = vadd.f32 %v2281_v53, %v2169_v12  ;;  %v2394_v4 = vpop.f32.mrf.mxu3 }
 0x3ba   : > { %v2679_v11 = vadd.f32 %v2678_v24, %v2677_v17 }
 0x3bb   : > { %v2395_v57 = vadd.f32 %v2394_v4, %v2282_v55 }
 0x3bc   : > { %v2174_v7 = vpop.f32.mrf.mxu1 }
 0x3bd   : > { %v2508_v9 = vadd.f32 %v2507_v20, %v2395_v57  ;;  %v2175_v19 = vadd.f32 %v2174_v7, %v4452_v16 }
 0x3be   : > { %v2510_v62 = vpop.f32.mrf.mxu0 }
 0x3bf   : > { %v2578_v52 = vsel %vm535_vm0, %v2508_v9, 0.0  ;;  %v2625_v3 = vmul.f32 %v2508_v9, %v2508_v9  ;;  %2727 = vst.msk [vmem:[%s4515_s10 + $0xc0] sm:$0xff] %vm535_vm0, %v2508_v9 }
 0x3c0   : > { %v2579_v32 = vadd.f32 %v2578_v52, %v2577_v0  ;;  %v2284_v56 = vpop.f32.mrf.mxu2 }
 0x3c1   : > { %v2680_v8 = vsel %vm535_vm0, %v2625_v3, 0.0  ;;  %v2285_v38 = vadd.f32 %v2284_v56, %v2172_v63  ;;  %v2397_v50 = vpop.f32.mrf.mxu3 }
 0x3c2   : > { %v2681_v10 = vadd.f32 %v2680_v8, %v2679_v11 }
 0x3c3   : > { %v2398_v28 = vadd.f32 %v2397_v50, %v2285_v38 }
 0x3c4   : > { %v2177_v46 = vpop.f32.mrf.mxu1 }
 0x3c5   : > { %v2511_v33 = vadd.f32 %v2510_v62, %v2398_v28  ;;  %v2178_v37 = vadd.f32 %v2177_v46, %v4462_v25 }
 0x3c6   : > { %v2513_v18 = vpop.f32.mrf.mxu0 }
 0x3c7   : > { %v2580_v2 = vsel %vm535_vm0, %v2511_v33, 0.0  ;;  %v2626_v40 = vmul.f32 %v2511_v33, %v2511_v33  ;;  %2728 = vst.msk [vmem:[%s4515_s10 + $0xc8] sm:$0xff] %vm535_vm0, %v2511_v33 }
 0x3c8   : > { %v2581_v54 = vadd.f32 %v2580_v2, %v2579_v32  ;;  %v2287_v58 = vpop.f32.mrf.mxu2 }
 0x3c9   : > { %v2682_v5 = vsel %vm535_vm0, %v2626_v40, 0.0  ;;  %v2288_v36 = vadd.f32 %v2287_v58, %v2175_v19  ;;  %v2400_v59 = vpop.f32.mrf.mxu3 }
 0x3ca   : > { %v2683_v44 = vadd.f32 %v2682_v5, %v2681_v10 }
 0x3cb   : > { %v2401_v1 = vadd.f32 %v2400_v59, %v2288_v36 }
 0x3cc   : > { %v2180_v23 = vpop.f32.mrf.mxu1 }
 0x3cd   : > { %v2514_v21 = vadd.f32 %v2513_v18, %v2401_v1  ;;  %v2181_v49 = vadd.f32 %v2180_v23, %v4472_v39 }
 0x3ce   : > { %v2516_v22 = vpop.f32.mrf.mxu0 }
 0x3cf   : > { %v2582_v16 = vsel %vm535_vm0, %v2514_v21, 0.0  ;;  %v2627_v60 = vmul.f32 %v2514_v21, %v2514_v21  ;;  %2729 = vst.msk [vmem:[%s4515_s10 + $0xd0] sm:$0xff] %vm535_vm0, %v2514_v21 }
 0x3d0   : > { %v2583_v26 = vadd.f32 %v2582_v16, %v2581_v54  ;;  %v2290_v45 = vpop.f32.mrf.mxu2 }
 0x3d1   : > { %v2684_v27 = vsel %vm535_vm0, %v2627_v60, 0.0  ;;  %v2291_v29 = vadd.f32 %v2290_v45, %v2178_v37  ;;  %v2403_v34 = vpop.f32.mrf.mxu3 }
 0x3d2   : > { %v2685_v14 = vadd.f32 %v2684_v27, %v2683_v44 }
 0x3d3   : > { %v2404_v35 = vadd.f32 %v2403_v34, %v2291_v29 }
 0x3d4   : > { %v2183_v47 = vpop.f32.mrf.mxu1 }
 0x3d5   : > { %v2517_v41 = vadd.f32 %v2516_v22, %v2404_v35  ;;  %v2184_v53 = vadd.f32 %v2183_v47, %v4482_v61 }
 0x3d6   : > { %v2519_v42 = vpop.f32.mrf.mxu0 }
 0x3d7   : > { %v2584_v25 = vsel %vm535_vm0, %v2517_v41, 0.0  ;;  %v2628_v43 = vmul.f32 %v2517_v41, %v2517_v41  ;;  %2730 = vst.msk [vmem:[%s4515_s10 + $0xd8] sm:$0xff] %vm535_vm0, %v2517_v41 }
 0x3d8   : > { %v2585_v6 = vadd.f32 %v2584_v25, %v2583_v26  ;;  %v2293_v17 = vpop.f32.mrf.mxu2 }
 0x3d9   : > { %v2686_v48 = vsel %vm535_vm0, %v2628_v43, 0.0  ;;  %v2294_v51 = vadd.f32 %v2293_v17, %v2181_v49  ;;  %v2406_v20 = vpop.f32.mrf.mxu3 }
 0x3da   : > { %v2687_v12 = vadd.f32 %v2686_v48, %v2685_v14 }
 0x3db   : > { %v2407_v30 = vadd.f32 %v2406_v20, %v2294_v51 }
 0x3dc   : > { %v2186_v62 = vpop.f32.mrf.mxu1 }
 0x3dd   : > { %v2520_v13 = vadd.f32 %v2519_v42, %v2407_v30  ;;  %v2187_v3 = vadd.f32 %v2186_v62, %v4492_v15 }
 0x3de   : > { %v2522_v0 = vpop.f32.mrf.mxu0 }
 0x3df   : > { %v2586_v39 = vsel %vm535_vm0, %v2520_v13, 0.0  ;;  %v2629_v24 = vmul.f32 %v2520_v13, %v2520_v13  ;;  %2731 = vst.msk [vmem:[%s4515_s10 + $0xe0] sm:$0xff] %vm535_vm0, %v2520_v13 }
 0x3e0   : > { %v2587_v55 = vadd.f32 %v2586_v39, %v2585_v6  ;;  %v2296_v4 = vpop.f32.mrf.mxu2 }
 0x3e1   : > { %v2688_v11 = vsel %vm535_vm0, %v2629_v24, 0.0  ;;  %v2297_v57 = vadd.f32 %v2296_v4, %v2184_v53  ;;  %v2409_v7 = vpop.f32.mrf.mxu3 }
 0x3e2   : > { %v2689_v9 = vadd.f32 %v2688_v11, %v2687_v12 }
 0x3e3   : > { %v2410_v63 = vadd.f32 %v2409_v7, %v2297_v57 }
 0x3e4   : > { %v2189_v18 = vpop.f32.mrf.mxu1 }
 0x3e5   : > { %v2523_v52 = vadd.f32 %v2522_v0, %v2410_v63  ;;  %v2190_v15 = vadd.f32 %v2189_v18, %v4502_v31 }
 0x3e6   : > { %v2525_v38 = vpop.f32.mrf.mxu0 }
 0x3e7   : > { %v2588_v61 = vsel %vm535_vm0, %v2523_v52, 0.0  ;;  %v2630_v32 = vmul.f32 %v2523_v52, %v2523_v52  ;;  %2732 = vst.msk [vmem:[%s4515_s10 + $0xe8] sm:$0xff] %vm535_vm0, %v2523_v52 }
 0x3e8   : > { %v2589_v56 = vadd.f32 %v2588_v61, %v2587_v55  ;;  %v2299_v8 = vpop.f32.mrf.mxu2 }
 0x3e9   : > { %v2690_v50 = vsel %vm535_vm0, %v2630_v32, 0.0  ;;  %v2300_v10 = vadd.f32 %v2299_v8, %v2187_v3  ;;  %v2412_v28 = vpop.f32.mrf.mxu3 }
 0x3ea   : > { %v2691_v46 = vadd.f32 %v2690_v50, %v2689_v9 }
 0x3eb   : > { %v2413_v33 = vadd.f32 %v2412_v28, %v2300_v10 }
 0x3ed   : > { %v2526_v19 = vadd.f32 %v2525_v38, %v2413_v33 }
 0x3ee   : > { %v2528_v1 = vpop.f32.mrf.mxu0 }
 0x3ef   : > { %v2590_v2 = vsel %vm535_vm0, %v2526_v19, 0.0  ;;  %v2631_v40 = vmul.f32 %v2526_v19, %v2526_v19  ;;  %2733 = vst.msk [vmem:[%s4515_s10 + $0xf0] sm:$0xff] %vm535_vm0, %v2526_v19 }
 0x3f0   : > { %v2591_v54 = vadd.f32 %v2590_v2, %v2589_v56  ;;  %v2302_v58 = vpop.f32.mrf.mxu2 }
 0x3f1   : > { %v2692_v5 = vsel %vm535_vm0, %v2631_v40, 0.0  ;;  %v2303_v36 = vadd.f32 %v2302_v58, %v2190_v15  ;;  %v2415_v59 = vpop.f32.mrf.mxu3 }
 0x3f2   : > { %v2693_v44 = vadd.f32 %v2692_v5, %v2691_v46 }
 0x3f3   : > { %v2416_v21 = vadd.f32 %v2415_v59, %v2303_v36 }
 0x3f5   : > { %v2529_v23 = vadd.f32 %v2528_v1, %v2416_v21 }
 0x3f7   : > { %v2592_v22 = vsel %vm535_vm0, %v2529_v23, 0.0  ;;  %v2632_v37 = vmul.f32 %v2529_v23, %v2529_v23  ;;  %2734 = vst.msk [vmem:[%s4515_s10 + $0xf8] sm:$0xff] %vm535_vm0, %v2529_v23 }
 0x3f8   : > { %v2593_v31 = vadd.f32 %v2592_v22, %v2591_v54 }
 0x3f9   : > { %v2694_v16 = vsel %vm535_vm0, %v2632_v37, 0.0 }
 0x3fa   : > { %v2594_v60 = vrot.slane %v2593_v31, 4  ;;  %v2695_v26 = vadd.f32 %v2694_v16, %v2693_v44 }
 0x3fc   : > { %v2595_v45 = vadd.f32 %v2594_v60, %v2593_v31  ;;  %v2696_v27 = vrot.slane %v2695_v26, 4 }
 0x3fe   : > { %v2596_v29 = vrot.slane %v2595_v45, 2  ;;  %v2697_v34 = vadd.f32 %v2696_v27, %v2695_v26 }
 0x400   : > { %v2597_v14 = vadd.f32 %v2596_v29, %v2595_v45  ;;  %v2698_v35 = vrot.slane %v2697_v34, 2 }
 0x402   : > { %v2598_v41 = vrot.slane %v2597_v14, 1  ;;  %v2699_v42 = vadd.f32 %v2698_v35, %v2697_v34 }
 0x404   : > { %v2599_v49 = vadd.f32 %v2598_v41, %v2597_v14  ;;  %v2700_v25 = vrot.slane %v2699_v42, 1 }
 0x406   : > { %v2701_v43 = vadd.f32 %v2700_v25, %v2699_v42  ;;  %2736 = vst.msk [vmem:[%s211_s12] sm:$0x1] %vm2735_vm1, %v2599_v49 }
 0x408   : > { %2737 = vst.msk [vmem:[%s214_s17] sm:$0x1] %vm2735_vm1, %v2701_v43 }
 0x409 PF: > { %s15_s15 = sadd.s32 1, %s3110_s15  }
 0x40a   : > { %p12_p4 = scmp.ge.s32.totalorder %s15_s15, 4  }
 0x40c   :  { %14 = sbr.rel (!%p12_p4) target bundleno = 1 (0x1), region = 84 }

</bundles_post_ra>
